<compile_context>
chip_gen: v5e
topology: v5e:2x2
jax: 0.10.0
libtpu: 0.0.40
codegen_flags: <defaults>
</compile_context>

<pallas_src>
import functools

import jax
import jax.numpy as jnp
from jax.experimental import pallas as pl
from jax.experimental.pallas import tpu as pltpu

EPS = 1e-5
_VMEM_LIMIT = 64 * 1024 * 1024     # <= physical VMEM on v5e/v6e/v7x
_HALO = 8                          # sublane-aligned halo width for the 3x3-conv scratch


def _compiler_params():
    return pltpu.CompilerParams(
        dimension_semantics=("parallel",),
        vmem_limit_bytes=_VMEM_LIMIT,
    )


def _row_tile(nhw, target):
    """Largest divisor of nhw that is <= target and a multiple of 8 (fallback: nhw)."""
    for t in range(min(target, nhw), 7, -1):
        if nhw % t == 0 and t % 8 == 0:
            return t
    return nhw


def _stats_rows(y):
    """(2, C) partial [sum ; sum-of-squares] over the row axis — one sweep of y."""
    return jnp.concatenate(
        [jnp.sum(y, axis=0, keepdims=True),
         jnp.sum(y * y, axis=0, keepdims=True)], axis=0)


def _fold_bn(partial_stats, count, gamma, beta):
    """Fold global BN stats + affine params into a per-channel (scale, shift)."""
    s = jnp.sum(partial_stats, axis=0)                       # (2, C)
    mean = s[0] / count
    var = jnp.maximum(s[1] / count - mean * mean, 0.0)       # biased (training-mode) var
    scale = gamma * jax.lax.rsqrt(var + EPS)                 # (1, C)
    shift = beta - mean * scale                              # (1, C)
    return scale, shift


# ---------------- phase 1: conv1 (1x1) + partial BN1 statistics --------------------
def _conv1x1_stats_kernel(x_ref, w_ref, o_ref, s_ref):
    y = jnp.dot(x_ref[...], w_ref[...], preferred_element_type=jnp.float32)
    o_ref[...] = y
    s_ref[0] = _stats_rows(y)


# ------- phase 2: BN1-apply + ReLU + conv2 (3x3, pad=1) + partial BN2 stats --------
def _bn_relu_conv3x3_stats_kernel(h, w, cmid,
                                  t1_ref, sc_ref, sh_ref, w2_ref,
                                  t2_ref, s_ref, pad_ref):
    p = _HALO
    sc = sc_ref[...].reshape(1, 1, cmid)
    sh = sh_ref[...].reshape(1, 1, cmid)
    a = jnp.maximum(t1_ref[0] * sc + sh, 0.0)                # (h, w, cmid)

    # Zero the halo strips every step (cheap, aligned stores; safe if the grid is
    # split across TensorCores), then write the activation into the sublane-aligned
    # interior.  The 9 taps below are plain unmasked static slices.
    zrow = jnp.zeros((1, w + 2 * p, cmid), jnp.float32)
    zcol = jnp.zeros((h, p, cmid), jnp.float32)
    pad_ref[0:1, :, :] = zrow
    pad_ref[h + 1:h + 2, :, :] = zrow
    pad_ref[1:h + 1, 0:p, :] = zcol
    pad_ref[1:h + 1, p + w:p + w + p, :] = zcol
    pad_ref[1:h + 1, p:p + w, :] = a

    acc = jnp.zeros((h * w, cmid), jnp.float32)
    for k in range(9):
        oy, ox = k // 3, k % 3
        tap = pad_ref[oy:oy + h, p - 1 + ox:p - 1 + ox + w, :]   # (h, w, cmid), no mask
        acc = acc + jnp.dot(tap.reshape(h * w, cmid), w2_ref[k],
                            preferred_element_type=jnp.float32)

    t2_ref[0] = acc.reshape(h, w, cmid)
    s_ref[0] = _stats_rows(acc)


# ------- phase 3: BN2-apply + ReLU + conv3 (1x1) + partial BN3 stats ---------------
def _bn_relu_conv1x1_stats_kernel(t_ref, sc_ref, sh_ref, w_ref, o_ref, s_ref):
    a = jnp.maximum(t_ref[...] * sc_ref[...] + sh_ref[...], 0.0)
    y = jnp.dot(a, w_ref[...], preferred_element_type=jnp.float32)
    o_ref[...] = y
    s_ref[0] = _stats_rows(y)


# ------- phase 4: BN3-apply + residual add + ReLU ----------------------------------
def _bn_add_relu_kernel(t_ref, sc_ref, sh_ref, x_ref, o_ref):
    o_ref[...] = jnp.maximum(
        t_ref[...] * sc_ref[...] + sh_ref[...] + x_ref[...], 0.0)


def bottleneck_forward(x_nchw, params, *, row_tile_target=512):
    """x_nchw: (N, Cin, H, W) float32 with Cin == out_channel * 4 (stride=1 path)."""
    (w1, g1, b1, w2, g2, b2, w3, g3, b3) = params
    n, cin, h, w = x_nchw.shape
    cmid = w1.shape[1]
    cout = w3.shape[1]
    assert cin == cout, "identity add requires in_channel == out_channel * expansion"
    nhw = n * h * w

    # layout glue: NCHW -> NHWC -> (NHW, C) so channels sit on the lane dimension.
    x_flat = jnp.transpose(x_nchw, (0, 2, 3, 1)).reshape(nhw, cin)

    tm = _row_tile(nhw, row_tile_target)
    rt = nhw // tm
    cp = _compiler_params()

    # ---- phase 1: conv1 + partial BN1 stats (row-tiled) ----
    t1, s1 = pl.pallas_call(
        _conv1x1_stats_kernel,
        grid=(rt,),
        in_specs=[pl.BlockSpec((tm, cin), lambda i: (i, 0)),
                  pl.BlockSpec((cin, cmid), lambda i: (0, 0))],
        out_specs=(pl.BlockSpec((tm, cmid), lambda i: (i, 0)),
                   pl.BlockSpec((1, 2, cmid), lambda i: (i, 0, 0))),
        out_shape=(jax.ShapeDtypeStruct((nhw, cmid), jnp.float32),
                   jax.ShapeDtypeStruct((rt, 2, cmid), jnp.float32)),
        compiler_params=cp,
    )(x_flat, w1)
    scale1, shift1 = _fold_bn(s1, nhw, g1, b1)

    # ---- phase 2: bn1 + relu + 3x3 conv + partial BN2 stats (one image per step) ----
    t1_img = t1.reshape(n, h, w, cmid)      # free row-major reshape
    t2, s2 = pl.pallas_call(
        functools.partial(_bn_relu_conv3x3_stats_kernel, h, w, cmid),
        grid=(n,),
        in_specs=[pl.BlockSpec((1, h, w, cmid), lambda i: (i, 0, 0, 0)),
                  pl.BlockSpec((1, cmid), lambda i: (0, 0)),
                  pl.BlockSpec((1, cmid), lambda i: (0, 0)),
                  pl.BlockSpec((9, cmid, cmid), lambda i: (0, 0, 0))],
        out_specs=(pl.BlockSpec((1, h, w, cmid), lambda i: (i, 0, 0, 0)),
                   pl.BlockSpec((1, 2, cmid), lambda i: (i, 0, 0))),
        out_shape=(jax.ShapeDtypeStruct((n, h, w, cmid), jnp.float32),
                   jax.ShapeDtypeStruct((n, 2, cmid), jnp.float32)),
        scratch_shapes=[pltpu.VMEM((h + 2, w + 2 * _HALO, cmid), jnp.float32)],
        compiler_params=cp,
    )(t1_img, scale1, shift1, w2)
    scale2, shift2 = _fold_bn(s2, nhw, g2, b2)

    # ---- phase 3: bn2 + relu + conv3 + partial BN3 stats (row-tiled) ----
    t2_flat = t2.reshape(nhw, cmid)
    t3, s3 = pl.pallas_call(
        _bn_relu_conv1x1_stats_kernel,
        grid=(rt,),
        in_specs=[pl.BlockSpec((tm, cmid), lambda i: (i, 0)),
                  pl.BlockSpec((1, cmid), lambda i: (0, 0)),
                  pl.BlockSpec((1, cmid), lambda i: (0, 0)),
                  pl.BlockSpec((cmid, cout), lambda i: (0, 0))],
        out_specs=(pl.BlockSpec((tm, cout), lambda i: (i, 0)),
                   pl.BlockSpec((1, 2, cout), lambda i: (i, 0, 0))),
        out_shape=(jax.ShapeDtypeStruct((nhw, cout), jnp.float32),
                   jax.ShapeDtypeStruct((rt, 2, cout), jnp.float32)),
        compiler_params=cp,
    )(t2_flat, scale2, shift2, w3)
    scale3, shift3 = _fold_bn(s3, nhw, g3, b3)

    # ---- phase 4: bn3 + residual add + relu (row-tiled; X only loaded here) ----
    out_flat = pl.pallas_call(
        _bn_add_relu_kernel,
        grid=(rt,),
        in_specs=[pl.BlockSpec((tm, cout), lambda i: (i, 0)),
                  pl.BlockSpec((1, cout), lambda i: (0, 0)),
                  pl.BlockSpec((1, cout), lambda i: (0, 0)),
                  pl.BlockSpec((tm, cin), lambda i: (i, 0))],
        out_specs=pl.BlockSpec((tm, cout), lambda i: (i, 0)),
        out_shape=jax.ShapeDtypeStruct((nhw, cout), jnp.float32),
        compiler_params=cp,
    )(t3, scale3, shift3, x_flat)

    # layout glue back: (NHW, C) -> NHWC -> NCHW
    return jnp.transpose(out_flat.reshape(n, h, w, cout), (0, 3, 1, 2))


def bottleneck_reference(x_nchw, params):
    """Pure-JAX reference (same semantics, two-pass BN) for validation."""
    (w1, g1, b1, w2, g2, b2, w3, g3, b3) = params
    n, cin, h, w = x_nchw.shape
    cmid = w1.shape[1]
    x = jnp.transpose(x_nchw, (0, 2, 3, 1))                  # NHWC

    def bn(y, gamma, beta):
        flat = y.reshape(-1, y.shape[-1])
        mean = jnp.mean(flat, axis=0)
        var = jnp.mean(jnp.square(flat - mean), axis=0)
        return (y - mean) * jax.lax.rsqrt(var + EPS) * gamma + beta

    y = jnp.einsum("nhwc,cd->nhwd", x, w1)
    y = jnp.maximum(bn(y, g1[0], b1[0]), 0.0)
    y = jax.lax.conv_general_dilated(
        y, w2.reshape(3, 3, cmid, cmid), window_strides=(1, 1),
        padding=((1, 1), (1, 1)),
        dimension_numbers=("NHWC", "HWIO", "NHWC"))
    y = jnp.maximum(bn(y, g2[0], b2[0]), 0.0)
    y = jnp.einsum("nhwc,cd->nhwd", y, w3)
    y = bn(y, g3[0], b3[0])
    out = jnp.maximum(y + x, 0.0)
    return jnp.transpose(out, (0, 3, 1, 2))


if __name__ == "__main__":
    # Small shapes consistent with the module: expansion=4, so for the default
    # (downsample=None, stride=1) config: in_channel = out_channel * 4.
    N, H, W = 2, 16, 16
    OUT_CH = 4
    IN_CH = OUT_CH * 4          # = 16

    key = jax.random.PRNGKey(0)
    ks = jax.random.split(key, 10)

    x = jax.random.normal(ks[0], (N, IN_CH, H, W), jnp.float32)

    w1 = 0.1 * jax.random.normal(ks[1], (IN_CH, OUT_CH), jnp.float32)
    w2 = 0.1 * jax.random.normal(ks[2], (9, OUT_CH, OUT_CH), jnp.float32)   # (ky*3+kx, ci, co)
    w3 = 0.1 * jax.random.normal(ks[3], (OUT_CH, IN_CH), jnp.float32)
    g1 = 1.0 + 0.1 * jax.random.normal(ks[4], (1, OUT_CH), jnp.float32)
    b1 = 0.1 * jax.random.normal(ks[5], (1, OUT_CH), jnp.float32)
    g2 = 1.0 + 0.1 * jax.random.normal(ks[6], (1, OUT_CH), jnp.float32)
    b2 = 0.1 * jax.random.normal(ks[7], (1, OUT_CH), jnp.float32)
    g3 = 1.0 + 0.1 * jax.random.normal(ks[8], (1, IN_CH), jnp.float32)
    b3 = 0.1 * jax.random.normal(ks[9], (1, IN_CH), jnp.float32)

    params = (w1, g1, b1, w2, g2, b2, w3, g3, b3)

    # Small row tile here so the toy shape (NHW = 512) exercises a multi-step grid;
    # production sizes should use the default (512) or larger.
    fwd = jax.jit(functools.partial(bottleneck_forward, row_tile_target=128))
    out = jax.block_until_ready(fwd(x, params))
    ref = jax.block_until_ready(bottleneck_reference(x, params))

    assert out.shape == (N, IN_CH, H, W)
    err = jnp.max(jnp.abs(out - ref))
    assert jnp.allclose(out, ref, atol=5e-4, rtol=5e-4), f"max abs err = {err}"
    print("KERNEL_OK")
</pallas_src>

<mosaic_0001>
module attributes {stable_mosaic.version = 11 : i64} {
  func.func @_conv1x1_stats_kernel(%arg0: i32, %arg1: memref<128x16xf32, #tpu.memory_space<vmem>>, %arg2: memref<16x4xf32, #tpu.memory_space<vmem>>, %arg3: memref<128x4xf32, #tpu.memory_space<vmem>>, %arg4: memref<1x2x4xf32, #tpu.memory_space<vmem>>) attributes {dimension_semantics = [#tpu.dimension_semantics<parallel>], iteration_bounds = array<i64: 4>, scalar_prefetch = 0 : i64, scratch_operands = 0 : i64, tpu.core_type = #tpu.core_type<tc>, window_params = [{transform_indices = @transform_0, window_bounds = array<i64: 128, 16>}, {pipeline_mode = #tpu.pipeline_mode<synchronous>, transform_indices = @transform_1, window_bounds = array<i64: 16, 4>}, {transform_indices = @transform_2, window_bounds = array<i64: 128, 4>}, {transform_indices = @transform_3, window_bounds = array<i64: 1, 2, 4>}]} {
    %c0 = arith.constant 0 : index
    %c0_0 = arith.constant 0 : index
    %0 = vector.load %arg1[%c0, %c0_0] : memref<128x16xf32, #tpu.memory_space<vmem>>, vector<128x16xf32>
    %c0_1 = arith.constant 0 : index
    %c0_2 = arith.constant 0 : index
    %1 = vector.load %arg2[%c0_1, %c0_2] : memref<16x4xf32, #tpu.memory_space<vmem>>, vector<16x4xf32>
    %cst = arith.constant dense<0.000000e+00> : vector<128x4xf32>
    %2 = tpu.matmul %0, %1, %cst {dimension_numbers = #tpu.dot_dimension_numbers<[1], [0], [0], [1], [0, 0, 1, 1], [], []>} : vector<128x16xf32>, vector<16x4xf32>, vector<128x4xf32> -> vector<128x4xf32>
    %c0_3 = arith.constant 0 : index
    %c0_4 = arith.constant 0 : index
    %3 = vector.load %arg3[%c0_3, %c0_4] : memref<128x4xf32, #tpu.memory_space<vmem>>, vector<128x4xf32>
    tpu.vector_store %arg3[%c0_3, %c0_4], %2 {strides = array<i32>} : memref<128x4xf32, #tpu.memory_space<vmem>>, vector<128x4xf32>,
    %cst_5 = arith.constant dense<0.000000e+00> : vector<4xf32>
    %4 = vector.multi_reduction <add>, %2, %cst_5 [0] : vector<128x4xf32> to vector<4xf32>
    %5 = vector.shape_cast %4 : vector<4xf32> to vector<1x4xf32>
    %6 = arith.mulf %2, %2 : vector<128x4xf32>
    %cst_6 = arith.constant dense<0.000000e+00> : vector<4xf32>
    %7 = vector.multi_reduction <add>, %6, %cst_6 [0] : vector<128x4xf32> to vector<4xf32>
    %8 = vector.shape_cast %7 : vector<4xf32> to vector<1x4xf32>
    %9 = tpu.concatenate %5, %8 in 0 : vector<1x4xf32>, vector<1x4xf32> -> vector<2x4xf32>
    %c0_7 = arith.constant 0 : index
    %c0_8 = arith.constant 0 : index
    %c0_9 = arith.constant 0 : index
    %10 = vector.load %arg4[%c0_7, %c0_8, %c0_9] : memref<1x2x4xf32, #tpu.memory_space<vmem>>, vector<1x2x4xf32>
    %11 = vector.shape_cast %10 : vector<1x2x4xf32> to vector<2x4xf32>
    %12 = vector.shape_cast %9 : vector<2x4xf32> to vector<1x2x4xf32>
    tpu.vector_store %arg4[%c0_7, %c0_8, %c0_9], %12 {strides = array<i32>} : memref<1x2x4xf32, #tpu.memory_space<vmem>>, vector<1x2x4xf32>,
    return
  }
  func.func @transform_0(%arg0: i32) -> (i32, i32) {
    %c0_i32 = arith.constant 0 : i32
    %c0_i32_0 = arith.constant 0 : i32
    return %arg0, %c0_i32 : i32, i32
  }
  func.func @transform_1(%arg0: i32) -> (i32, i32) {
    %c0_i32 = arith.constant 0 : i32
    %c0_i32_0 = arith.constant 0 : i32
    %c0_i32_1 = arith.constant 0 : i32
    return %c0_i32, %c0_i32_0 : i32, i32
  }
  func.func @transform_2(%arg0: i32) -> (i32, i32) {
    %c0_i32 = arith.constant 0 : i32
    %c0_i32_0 = arith.constant 0 : i32
    return %arg0, %c0_i32 : i32, i32
  }
  func.func @transform_3(%arg0: i32) -> (i32, i32, i32) {
    %c0_i32 = arith.constant 0 : i32
    %c0_i32_0 = arith.constant 0 : i32
    %c0_i32_1 = arith.constant 0 : i32
    return %arg0, %c0_i32, %c0_i32_0 : i32, i32, i32
  }
}

module attributes {stable_mosaic.version = 11 : i64} {
  func.func @_bn_relu_conv3x3_stats_kernel(%arg0: i32, %arg1: memref<1x16x16x4xf32, #tpu.memory_space<vmem>>, %arg2: memref<1x4xf32, #tpu.memory_space<vmem>>, %arg3: memref<1x4xf32, #tpu.memory_space<vmem>>, %arg4: memref<9x4x4xf32, #tpu.memory_space<vmem>>, %arg5: memref<1x16x16x4xf32, #tpu.memory_space<vmem>>, %arg6: memref<1x2x4xf32, #tpu.memory_space<vmem>>, %arg7: memref<18x32x4xf32, #tpu.memory_space<vmem>>) attributes {dimension_semantics = [#tpu.dimension_semantics<parallel>], iteration_bounds = array<i64: 2>, scalar_prefetch = 0 : i64, scratch_operands = 1 : i64, tpu.core_type = #tpu.core_type<tc>, window_params = [{transform_indices = @transform_0, window_bounds = array<i64: 1, 16, 16, 4>}, {pipeline_mode = #tpu.pipeline_mode<synchronous>, transform_indices = @transform_1, window_bounds = array<i64: 1, 4>}, {pipeline_mode = #tpu.pipeline_mode<synchronous>, transform_indices = @transform_2, window_bounds = array<i64: 1, 4>}, {pipeline_mode = #tpu.pipeline_mode<synchronous>, transform_indices = @transform_3, window_bounds = array<i64: 9, 4, 4>}, {transform_indices = @transform_4, window_bounds = array<i64: 1, 16, 16, 4>}, {transform_indices = @transform_5, window_bounds = array<i64: 1, 2, 4>}]} {
    %c0 = arith.constant 0 : index
    %c0_0 = arith.constant 0 : index
    %0 = vector.load %arg2[%c0, %c0_0] : memref<1x4xf32, #tpu.memory_space<vmem>>, vector<1x4xf32>
    %1 = vector.shape_cast %0 : vector<1x4xf32> to vector<1x1x4xf32>
    %c0_1 = arith.constant 0 : index
    %c0_2 = arith.constant 0 : index
    %2 = vector.load %arg3[%c0_1, %c0_2] : memref<1x4xf32, #tpu.memory_space<vmem>>, vector<1x4xf32>
    %3 = vector.shape_cast %2 : vector<1x4xf32> to vector<1x1x4xf32>
    %c0_3 = arith.constant 0 : index
    %c0_4 = arith.constant 0 : index
    %c0_5 = arith.constant 0 : index
    %c0_6 = arith.constant 0 : index
    %4 = vector.load %arg1[%c0_3, %c0_4, %c0_5, %c0_6] : memref<1x16x16x4xf32, #tpu.memory_space<vmem>>, vector<1x16x16x4xf32>
    %5 = vector.shape_cast %4 : vector<1x16x16x4xf32> to vector<16x16x4xf32>
    %6 = vector.broadcast %1 : vector<1x1x4xf32> to vector<16x16x4xf32>
    %7 = arith.mulf %5, %6 : vector<16x16x4xf32>
    %8 = vector.broadcast %3 : vector<1x1x4xf32> to vector<16x16x4xf32>
    %9 = arith.addf %7, %8 : vector<16x16x4xf32>
    %cst = arith.constant 0.000000e+00 : f32
    %10 = vector.broadcast %cst : f32 to vector<16x16x4xf32>
    %11 = arith.maximumf %9, %10 : vector<16x16x4xf32>
    %cst_7 = arith.constant 0.000000e+00 : f32
    %12 = vector.broadcast %cst_7 : f32 to vector<1x32x4xf32>
    %cst_8 = arith.constant 0.000000e+00 : f32
    %13 = vector.broadcast %cst_8 : f32 to vector<16x8x4xf32>
    %c0_9 = arith.constant 0 : index
    %c0_10 = arith.constant 0 : index
    %c0_11 = arith.constant 0 : index
    %14 = vector.load %arg7[%c0_9, %c0_10, %c0_11] : memref<18x32x4xf32, #tpu.memory_space<vmem>>, vector<1x32x4xf32>
    tpu.vector_store %arg7[%c0_9, %c0_10, %c0_11], %12 {strides = array<i32>} : memref<18x32x4xf32, #tpu.memory_space<vmem>>, vector<1x32x4xf32>,
    %c17 = arith.constant 17 : index
    %c0_12 = arith.constant 0 : index
    %c0_13 = arith.constant 0 : index
    %15 = vector.load %arg7[%c17, %c0_12, %c0_13] : memref<18x32x4xf32, #tpu.memory_space<vmem>>, vector<1x32x4xf32>
    tpu.vector_store %arg7[%c17, %c0_12, %c0_13], %12 {strides = array<i32>} : memref<18x32x4xf32, #tpu.memory_space<vmem>>, vector<1x32x4xf32>,
    %c1 = arith.constant 1 : index
    %c0_14 = arith.constant 0 : index
    %c0_15 = arith.constant 0 : index
    %16 = vector.load %arg7[%c1, %c0_14, %c0_15] : memref<18x32x4xf32, #tpu.memory_space<vmem>>, vector<16x8x4xf32>
    tpu.vector_store %arg7[%c1, %c0_14, %c0_15], %13 {strides = array<i32>} : memref<18x32x4xf32, #tpu.memory_space<vmem>>, vector<16x8x4xf32>,
    %c1_16 = arith.constant 1 : index
    %c24 = arith.constant 24 : index
    %c0_17 = arith.constant 0 : index
    %17 = vector.load %arg7[%c1_16, %c24, %c0_17] : memref<18x32x4xf32, #tpu.memory_space<vmem>>, vector<16x8x4xf32>
    tpu.vector_store %arg7[%c1_16, %c24, %c0_17], %13 {strides = array<i32>} : memref<18x32x4xf32, #tpu.memory_space<vmem>>, vector<16x8x4xf32>,
    %c1_18 = arith.constant 1 : index
    %c8 = arith.constant 8 : index
    %c0_19 = arith.constant 0 : index
    %18 = vector.load %arg7[%c1_18, %c8, %c0_19] : memref<18x32x4xf32, #tpu.memory_space<vmem>>, vector<16x16x4xf32>
    tpu.vector_store %arg7[%c1_18, %c8, %c0_19], %11 {strides = array<i32>} : memref<18x32x4xf32, #tpu.memory_space<vmem>>, vector<16x16x4xf32>,
    %cst_20 = arith.constant 0.000000e+00 : f32
    %19 = vector.broadcast %cst_20 : f32 to vector<256x4xf32>
    %c0_21 = arith.constant 0 : index
    %c7 = arith.constant 7 : index
    %c0_22 = arith.constant 0 : index
    %20 = vector.load %arg7[%c0_21, %c7, %c0_22] : memref<18x32x4xf32, #tpu.memory_space<vmem>>, vector<16x16x4xf32>
    %21 = vector.shape_cast %20 : vector<16x16x4xf32> to vector<256x4xf32>
    %c0_23 = arith.constant 0 : index
    %c0_24 = arith.constant 0 : index
    %c0_25 = arith.constant 0 : index
    %22 = vector.load %arg4[%c0_23, %c0_24, %c0_25] : memref<9x4x4xf32, #tpu.memory_space<vmem>>, vector<1x4x4xf32>
    %23 = vector.shape_cast %22 : vector<1x4x4xf32> to vector<4x4xf32>
    %cst_26 = arith.constant dense<0.000000e+00> : vector<256x4xf32>
    %24 = tpu.matmul %21, %23, %cst_26 {dimension_numbers = #tpu.dot_dimension_numbers<[1], [0], [0], [1], [0, 0, 1, 1], [], []>} : vector<256x4xf32>, vector<4x4xf32>, vector<256x4xf32> -> vector<256x4xf32>
    %25 = arith.addf %19, %24 : vector<256x4xf32>
    %c0_27 = arith.constant 0 : index
    %c8_28 = arith.constant 8 : index
    %c0_29 = arith.constant 0 : index
    %26 = vector.load %arg7[%c0_27, %c8_28, %c0_29] : memref<18x32x4xf32, #tpu.memory_space<vmem>>, vector<16x16x4xf32>
    %27 = vector.shape_cast %26 : vector<16x16x4xf32> to vector<256x4xf32>
    %c1_30 = arith.constant 1 : index
    %c0_31 = arith.constant 0 : index
    %c0_32 = arith.constant 0 : index
    %28 = vector.load %arg4[%c1_30, %c0_31, %c0_32] : memref<9x4x4xf32, #tpu.memory_space<vmem>>, vector<1x4x4xf32>
    %29 = vector.shape_cast %28 : vector<1x4x4xf32> to vector<4x4xf32>
    %cst_33 = arith.constant dense<0.000000e+00> : vector<256x4xf32>
    %30 = tpu.matmul %27, %29, %cst_33 {dimension_numbers = #tpu.dot_dimension_numbers<[1], [0], [0], [1], [0, 0, 1, 1], [], []>} : vector<256x4xf32>, vector<4x4xf32>, vector<256x4xf32> -> vector<256x4xf32>
    %31 = arith.addf %25, %30 : vector<256x4xf32>
    %c0_34 = arith.constant 0 : index
    %c9 = arith.constant 9 : index
    %c0_35 = arith.constant 0 : index
    %32 = vector.load %arg7[%c0_34, %c9, %c0_35] : memref<18x32x4xf32, #tpu.memory_space<vmem>>, vector<16x16x4xf32>
    %33 = vector.shape_cast %32 : vector<16x16x4xf32> to vector<256x4xf32>
    %c2 = arith.constant 2 : index
    %c0_36 = arith.constant 0 : index
    %c0_37 = arith.constant 0 : index
    %34 = vector.load %arg4[%c2, %c0_36, %c0_37] : memref<9x4x4xf32, #tpu.memory_space<vmem>>, vector<1x4x4xf32>
    %35 = vector.shape_cast %34 : vector<1x4x4xf32> to vector<4x4xf32>
    %cst_38 = arith.constant dense<0.000000e+00> : vector<256x4xf32>
    %36 = tpu.matmul %33, %35, %cst_38 {dimension_numbers = #tpu.dot_dimension_numbers<[1], [0], [0], [1], [0, 0, 1, 1], [], []>} : vector<256x4xf32>, vector<4x4xf32>, vector<256x4xf32> -> vector<256x4xf32>
    %37 = arith.addf %31, %36 : vector<256x4xf32>
    %c1_39 = arith.constant 1 : index
    %c7_40 = arith.constant 7 : index
    %c0_41 = arith.constant 0 : index
    %38 = vector.load %arg7[%c1_39, %c7_40, %c0_41] : memref<18x32x4xf32, #tpu.memory_space<vmem>>, vector<16x16x4xf32>
    %39 = vector.shape_cast %38 : vector<16x16x4xf32> to vector<256x4xf32>
    %c3 = arith.constant 3 : index
    %c0_42 = arith.constant 0 : index
    %c0_43 = arith.constant 0 : index
    %40 = vector.load %arg4[%c3, %c0_42, %c0_43] : memref<9x4x4xf32, #tpu.memory_space<vmem>>, vector<1x4x4xf32>
    %41 = vector.shape_cast %40 : vector<1x4x4xf32> to vector<4x4xf32>
    %cst_44 = arith.constant dense<0.000000e+00> : vector<256x4xf32>
    %42 = tpu.matmul %39, %41, %cst_44 {dimension_numbers = #tpu.dot_dimension_numbers<[1], [0], [0], [1], [0, 0, 1, 1], [], []>} : vector<256x4xf32>, vector<4x4xf32>, vector<256x4xf32> -> vector<256x4xf32>
    %43 = arith.addf %37, %42 : vector<256x4xf32>
    %c1_45 = arith.constant 1 : index
    %c8_46 = arith.constant 8 : index
    %c0_47 = arith.constant 0 : index
    %44 = vector.load %arg7[%c1_45, %c8_46, %c0_47] : memref<18x32x4xf32, #tpu.memory_space<vmem>>, vector<16x16x4xf32>
    %45 = vector.shape_cast %44 : vector<16x16x4xf32> to vector<256x4xf32>
    %c4 = arith.constant 4 : index
    %c0_48 = arith.constant 0 : index
    %c0_49 = arith.constant 0 : index
    %46 = vector.load %arg4[%c4, %c0_48, %c0_49] : memref<9x4x4xf32, #tpu.memory_space<vmem>>, vector<1x4x4xf32>
    %47 = vector.shape_cast %46 : vector<1x4x4xf32> to vector<4x4xf32>
    %cst_50 = arith.constant dense<0.000000e+00> : vector<256x4xf32>
    %48 = tpu.matmul %45, %47, %cst_50 {dimension_numbers = #tpu.dot_dimension_numbers<[1], [0], [0], [1], [0, 0, 1, 1], [], []>} : vector<256x4xf32>, vector<4x4xf32>, vector<256x4xf32> -> vector<256x4xf32>
    %49 = arith.addf %43, %48 : vector<256x4xf32>
    %c1_51 = arith.constant 1 : index
    %c9_52 = arith.constant 9 : index
    %c0_53 = arith.constant 0 : index
    %50 = vector.load %arg7[%c1_51, %c9_52, %c0_53] : memref<18x32x4xf32, #tpu.memory_space<vmem>>, vector<16x16x4xf32>
    %51 = vector.shape_cast %50 : vector<16x16x4xf32> to vector<256x4xf32>
    %c5 = arith.constant 5 : index
    %c0_54 = arith.constant 0 : index
    %c0_55 = arith.constant 0 : index
    %52 = vector.load %arg4[%c5, %c0_54, %c0_55] : memref<9x4x4xf32, #tpu.memory_space<vmem>>, vector<1x4x4xf32>
    %53 = vector.shape_cast %52 : vector<1x4x4xf32> to vector<4x4xf32>
    %cst_56 = arith.constant dense<0.000000e+00> : vector<256x4xf32>
    %54 = tpu.matmul %51, %53, %cst_56 {dimension_numbers = #tpu.dot_dimension_numbers<[1], [0], [0], [1], [0, 0, 1, 1], [], []>} : vector<256x4xf32>, vector<4x4xf32>, vector<256x4xf32> -> vector<256x4xf32>
    %55 = arith.addf %49, %54 : vector<256x4xf32>
    %c2_57 = arith.constant 2 : index
    %c7_58 = arith.constant 7 : index
    %c0_59 = arith.constant 0 : index
    %56 = vector.load %arg7[%c2_57, %c7_58, %c0_59] : memref<18x32x4xf32, #tpu.memory_space<vmem>>, vector<16x16x4xf32>
    %57 = vector.shape_cast %56 : vector<16x16x4xf32> to vector<256x4xf32>
    %c6 = arith.constant 6 : index
    %c0_60 = arith.constant 0 : index
    %c0_61 = arith.constant 0 : index
    %58 = vector.load %arg4[%c6, %c0_60, %c0_61] : memref<9x4x4xf32, #tpu.memory_space<vmem>>, vector<1x4x4xf32>
    %59 = vector.shape_cast %58 : vector<1x4x4xf32> to vector<4x4xf32>
    %cst_62 = arith.constant dense<0.000000e+00> : vector<256x4xf32>
    %60 = tpu.matmul %57, %59, %cst_62 {dimension_numbers = #tpu.dot_dimension_numbers<[1], [0], [0], [1], [0, 0, 1, 1], [], []>} : vector<256x4xf32>, vector<4x4xf32>, vector<256x4xf32> -> vector<256x4xf32>
    %61 = arith.addf %55, %60 : vector<256x4xf32>
    %c2_63 = arith.constant 2 : index
    %c8_64 = arith.constant 8 : index
    %c0_65 = arith.constant 0 : index
    %62 = vector.load %arg7[%c2_63, %c8_64, %c0_65] : memref<18x32x4xf32, #tpu.memory_space<vmem>>, vector<16x16x4xf32>
    %63 = vector.shape_cast %62 : vector<16x16x4xf32> to vector<256x4xf32>
    %c7_66 = arith.constant 7 : index
    %c0_67 = arith.constant 0 : index
    %c0_68 = arith.constant 0 : index
    %64 = vector.load %arg4[%c7_66, %c0_67, %c0_68] : memref<9x4x4xf32, #tpu.memory_space<vmem>>, vector<1x4x4xf32>
    %65 = vector.shape_cast %64 : vector<1x4x4xf32> to vector<4x4xf32>
    %cst_69 = arith.constant dense<0.000000e+00> : vector<256x4xf32>
    %66 = tpu.matmul %63, %65, %cst_69 {dimension_numbers = #tpu.dot_dimension_numbers<[1], [0], [0], [1], [0, 0, 1, 1], [], []>} : vector<256x4xf32>, vector<4x4xf32>, vector<256x4xf32> -> vector<256x4xf32>
    %67 = arith.addf %61, %66 : vector<256x4xf32>
    %c2_70 = arith.constant 2 : index
    %c9_71 = arith.constant 9 : index
    %c0_72 = arith.constant 0 : index
    %68 = vector.load %arg7[%c2_70, %c9_71, %c0_72] : memref<18x32x4xf32, #tpu.memory_space<vmem>>, vector<16x16x4xf32>
    %69 = vector.shape_cast %68 : vector<16x16x4xf32> to vector<256x4xf32>
    %c8_73 = arith.constant 8 : index
    %c0_74 = arith.constant 0 : index
    %c0_75 = arith.constant 0 : index
    %70 = vector.load %arg4[%c8_73, %c0_74, %c0_75] : memref<9x4x4xf32, #tpu.memory_space<vmem>>, vector<1x4x4xf32>
    %71 = vector.shape_cast %70 : vector<1x4x4xf32> to vector<4x4xf32>
    %cst_76 = arith.constant dense<0.000000e+00> : vector<256x4xf32>
    %72 = tpu.matmul %69, %71, %cst_76 {dimension_numbers = #tpu.dot_dimension_numbers<[1], [0], [0], [1], [0, 0, 1, 1], [], []>} : vector<256x4xf32>, vector<4x4xf32>, vector<256x4xf32> -> vector<256x4xf32>
    %73 = arith.addf %67, %72 : vector<256x4xf32>
    %74 = vector.shape_cast %73 : vector<256x4xf32> to vector<16x16x4xf32>
    %c0_77 = arith.constant 0 : index
    %c0_78 = arith.constant 0 : index
    %c0_79 = arith.constant 0 : index
    %c0_80 = arith.constant 0 : index
    %75 = vector.load %arg5[%c0_77, %c0_78, %c0_79, %c0_80] : memref<1x16x16x4xf32, #tpu.memory_space<vmem>>, vector<1x16x16x4xf32>
    %76 = vector.shape_cast %75 : vector<1x16x16x4xf32> to vector<16x16x4xf32>
    %77 = vector.shape_cast %74 : vector<16x16x4xf32> to vector<1x16x16x4xf32>
    tpu.vector_store %arg5[%c0_77, %c0_78, %c0_79, %c0_80], %77 {strides = array<i32>} : memref<1x16x16x4xf32, #tpu.memory_space<vmem>>, vector<1x16x16x4xf32>,
    %cst_81 = arith.constant dense<0.000000e+00> : vector<4xf32>
    %78 = vector.multi_reduction <add>, %73, %cst_81 [0] : vector<256x4xf32> to vector<4xf32>
    %79 = vector.shape_cast %78 : vector<4xf32> to vector<1x4xf32>
    %80 = arith.mulf %73, %73 : vector<256x4xf32>
    %cst_82 = arith.constant dense<0.000000e+00> : vector<4xf32>
    %81 = vector.multi_reduction <add>, %80, %cst_82 [0] : vector<256x4xf32> to vector<4xf32>
    %82 = vector.shape_cast %81 : vector<4xf32> to vector<1x4xf32>
    %83 = tpu.concatenate %79, %82 in 0 : vector<1x4xf32>, vector<1x4xf32> -> vector<2x4xf32>
    %c0_83 = arith.constant 0 : index
    %c0_84 = arith.constant 0 : index
    %c0_85 = arith.constant 0 : index
    %84 = vector.load %arg6[%c0_83, %c0_84, %c0_85] : memref<1x2x4xf32, #tpu.memory_space<vmem>>, vector<1x2x4xf32>
    %85 = vector.shape_cast %84 : vector<1x2x4xf32> to vector<2x4xf32>
    %86 = vector.shape_cast %83 : vector<2x4xf32> to vector<1x2x4xf32>
    tpu.vector_store %arg6[%c0_83, %c0_84, %c0_85], %86 {strides = array<i32>} : memref<1x2x4xf32, #tpu.memory_space<vmem>>, vector<1x2x4xf32>,
    return
  }
  func.func @transform_0(%arg0: i32) -> (i32, i32, i32, i32) {
    %c0_i32 = arith.constant 0 : i32
    %c0_i32_0 = arith.constant 0 : i32
    %c0_i32_1 = arith.constant 0 : i32
    %c0_i32_2 = arith.constant 0 : i32
    return %arg0, %c0_i32, %c0_i32_0, %c0_i32_1 : i32, i32, i32, i32
  }
  func.func @transform_1(%arg0: i32) -> (i32, i32) {
    %c0_i32 = arith.constant 0 : i32
    %c0_i32_0 = arith.constant 0 : i32
    %c0_i32_1 = arith.constant 0 : i32
    return %c0_i32, %c0_i32_0 : i32, i32
  }
  func.func @transform_2(%arg0: i32) -> (i32, i32) {
    %c0_i32 = arith.constant 0 : i32
    %c0_i32_0 = arith.constant 0 : i32
    %c0_i32_1 = arith.constant 0 : i32
    return %c0_i32, %c0_i32_0 : i32, i32
  }
  func.func @transform_3(%arg0: i32) -> (i32, i32, i32) {
    %c0_i32 = arith.constant 0 : i32
    %c0_i32_0 = arith.constant 0 : i32
    %c0_i32_1 = arith.constant 0 : i32
    %c0_i32_2 = arith.constant 0 : i32
    return %c0_i32, %c0_i32_0, %c0_i32_1 : i32, i32, i32
  }
  func.func @transform_4(%arg0: i32) -> (i32, i32, i32, i32) {
    %c0_i32 = arith.constant 0 : i32
    %c0_i32_0 = arith.constant 0 : i32
    %c0_i32_1 = arith.constant 0 : i32
    %c0_i32_2 = arith.constant 0 : i32
    return %arg0, %c0_i32, %c0_i32_0, %c0_i32_1 : i32, i32, i32, i32
  }
  func.func @transform_5(%arg0: i32) -> (i32, i32, i32) {
    %c0_i32 = arith.constant 0 : i32
    %c0_i32_0 = arith.constant 0 : i32
    %c0_i32_1 = arith.constant 0 : i32
    return %arg0, %c0_i32, %c0_i32_0 : i32, i32, i32
  }
}

module attributes {stable_mosaic.version = 11 : i64} {
  func.func @_bn_relu_conv1x1_stats_kernel(%arg0: i32, %arg1: memref<128x4xf32, #tpu.memory_space<vmem>>, %arg2: memref<1x4xf32, #tpu.memory_space<vmem>>, %arg3: memref<1x4xf32, #tpu.memory_space<vmem>>, %arg4: memref<4x16xf32, #tpu.memory_space<vmem>>, %arg5: memref<128x16xf32, #tpu.memory_space<vmem>>, %arg6: memref<1x2x16xf32, #tpu.memory_space<vmem>>) attributes {dimension_semantics = [#tpu.dimension_semantics<parallel>], iteration_bounds = array<i64: 4>, scalar_prefetch = 0 : i64, scratch_operands = 0 : i64, tpu.core_type = #tpu.core_type<tc>, window_params = [{transform_indices = @transform_0, window_bounds = array<i64: 128, 4>}, {pipeline_mode = #tpu.pipeline_mode<synchronous>, transform_indices = @transform_1, window_bounds = array<i64: 1, 4>}, {pipeline_mode = #tpu.pipeline_mode<synchronous>, transform_indices = @transform_2, window_bounds = array<i64: 1, 4>}, {pipeline_mode = #tpu.pipeline_mode<synchronous>, transform_indices = @transform_3, window_bounds = array<i64: 4, 16>}, {transform_indices = @transform_4, window_bounds = array<i64: 128, 16>}, {transform_indices = @transform_5, window_bounds = array<i64: 1, 2, 16>}]} {
    %c0 = arith.constant 0 : index
    %c0_0 = arith.constant 0 : index
    %0 = vector.load %arg1[%c0, %c0_0] : memref<128x4xf32, #tpu.memory_space<vmem>>, vector<128x4xf32>
    %c0_1 = arith.constant 0 : index
    %c0_2 = arith.constant 0 : index
    %1 = vector.load %arg2[%c0_1, %c0_2] : memref<1x4xf32, #tpu.memory_space<vmem>>, vector<1x4xf32>
    %2 = vector.broadcast %1 : vector<1x4xf32> to vector<128x4xf32>
    %3 = arith.mulf %0, %2 : vector<128x4xf32>
    %c0_3 = arith.constant 0 : index
    %c0_4 = arith.constant 0 : index
    %4 = vector.load %arg3[%c0_3, %c0_4] : memref<1x4xf32, #tpu.memory_space<vmem>>, vector<1x4xf32>
    %5 = vector.broadcast %4 : vector<1x4xf32> to vector<128x4xf32>
    %6 = arith.addf %3, %5 : vector<128x4xf32>
    %cst = arith.constant 0.000000e+00 : f32
    %7 = vector.broadcast %cst : f32 to vector<128x4xf32>
    %8 = arith.maximumf %6, %7 : vector<128x4xf32>
    %c0_5 = arith.constant 0 : index
    %c0_6 = arith.constant 0 : index
    %9 = vector.load %arg4[%c0_5, %c0_6] : memref<4x16xf32, #tpu.memory_space<vmem>>, vector<4x16xf32>
    %cst_7 = arith.constant dense<0.000000e+00> : vector<128x16xf32>
    %10 = tpu.matmul %8, %9, %cst_7 {dimension_numbers = #tpu.dot_dimension_numbers<[1], [0], [0], [1], [0, 0, 1, 1], [], []>} : vector<128x4xf32>, vector<4x16xf32>, vector<128x16xf32> -> vector<128x16xf32>
    %c0_8 = arith.constant 0 : index
    %c0_9 = arith.constant 0 : index
    %11 = vector.load %arg5[%c0_8, %c0_9] : memref<128x16xf32, #tpu.memory_space<vmem>>, vector<128x16xf32>
    tpu.vector_store %arg5[%c0_8, %c0_9], %10 {strides = array<i32>} : memref<128x16xf32, #tpu.memory_space<vmem>>, vector<128x16xf32>,
    %cst_10 = arith.constant dense<0.000000e+00> : vector<16xf32>
    %12 = vector.multi_reduction <add>, %10, %cst_10 [0] : vector<128x16xf32> to vector<16xf32>
    %13 = vector.shape_cast %12 : vector<16xf32> to vector<1x16xf32>
    %14 = arith.mulf %10, %10 : vector<128x16xf32>
    %cst_11 = arith.constant dense<0.000000e+00> : vector<16xf32>
    %15 = vector.multi_reduction <add>, %14, %cst_11 [0] : vector<128x16xf32> to vector<16xf32>
    %16 = vector.shape_cast %15 : vector<16xf32> to vector<1x16xf32>
    %17 = tpu.concatenate %13, %16 in 0 : vector<1x16xf32>, vector<1x16xf32> -> vector<2x16xf32>
    %c0_12 = arith.constant 0 : index
    %c0_13 = arith.constant 0 : index
    %c0_14 = arith.constant 0 : index
    %18 = vector.load %arg6[%c0_12, %c0_13, %c0_14] : memref<1x2x16xf32, #tpu.memory_space<vmem>>, vector<1x2x16xf32>
    %19 = vector.shape_cast %18 : vector<1x2x16xf32> to vector<2x16xf32>
    %20 = vector.shape_cast %17 : vector<2x16xf32> to vector<1x2x16xf32>
    tpu.vector_store %arg6[%c0_12, %c0_13, %c0_14], %20 {strides = array<i32>} : memref<1x2x16xf32, #tpu.memory_space<vmem>>, vector<1x2x16xf32>,
    return
  }
  func.func @transform_0(%arg0: i32) -> (i32, i32) {
    %c0_i32 = arith.constant 0 : i32
    %c0_i32_0 = arith.constant 0 : i32
    return %arg0, %c0_i32 : i32, i32
  }
  func.func @transform_1(%arg0: i32) -> (i32, i32) {
    %c0_i32 = arith.constant 0 : i32
    %c0_i32_0 = arith.constant 0 : i32
    %c0_i32_1 = arith.constant 0 : i32
    return %c0_i32, %c0_i32_0 : i32, i32
  }
  func.func @transform_2(%arg0: i32) -> (i32, i32) {
    %c0_i32 = arith.constant 0 : i32
    %c0_i32_0 = arith.constant 0 : i32
    %c0_i32_1 = arith.constant 0 : i32
    return %c0_i32, %c0_i32_0 : i32, i32
  }
  func.func @transform_3(%arg0: i32) -> (i32, i32) {
    %c0_i32 = arith.constant 0 : i32
    %c0_i32_0 = arith.constant 0 : i32
    %c0_i32_1 = arith.constant 0 : i32
    return %c0_i32, %c0_i32_0 : i32, i32
  }
  func.func @transform_4(%arg0: i32) -> (i32, i32) {
    %c0_i32 = arith.constant 0 : i32
    %c0_i32_0 = arith.constant 0 : i32
    return %arg0, %c0_i32 : i32, i32
  }
  func.func @transform_5(%arg0: i32) -> (i32, i32, i32) {
    %c0_i32 = arith.constant 0 : i32
    %c0_i32_0 = arith.constant 0 : i32
    %c0_i32_1 = arith.constant 0 : i32
    return %arg0, %c0_i32, %c0_i32_0 : i32, i32, i32
  }
}

module attributes {stable_mosaic.version = 11 : i64} {
  func.func @_bn_add_relu_kernel(%arg0: i32, %arg1: memref<128x16xf32, #tpu.memory_space<vmem>>, %arg2: memref<1x16xf32, #tpu.memory_space<vmem>>, %arg3: memref<1x16xf32, #tpu.memory_space<vmem>>, %arg4: memref<128x16xf32, #tpu.memory_space<vmem>>, %arg5: memref<128x16xf32, #tpu.memory_space<vmem>>) attributes {dimension_semantics = [#tpu.dimension_semantics<parallel>], iteration_bounds = array<i64: 4>, scalar_prefetch = 0 : i64, scratch_operands = 0 : i64, tpu.core_type = #tpu.core_type<tc>, window_params = [{transform_indices = @transform_0, window_bounds = array<i64: 128, 16>}, {pipeline_mode = #tpu.pipeline_mode<synchronous>, transform_indices = @transform_1, window_bounds = array<i64: 1, 16>}, {pipeline_mode = #tpu.pipeline_mode<synchronous>, transform_indices = @transform_2, window_bounds = array<i64: 1, 16>}, {transform_indices = @transform_3, window_bounds = array<i64: 128, 16>}, {transform_indices = @transform_4, window_bounds = array<i64: 128, 16>}]} {
    %c0 = arith.constant 0 : index
    %c0_0 = arith.constant 0 : index
    %0 = vector.load %arg1[%c0, %c0_0] : memref<128x16xf32, #tpu.memory_space<vmem>>, vector<128x16xf32>
    %c0_1 = arith.constant 0 : index
    %c0_2 = arith.constant 0 : index
    %1 = vector.load %arg2[%c0_1, %c0_2] : memref<1x16xf32, #tpu.memory_space<vmem>>, vector<1x16xf32>
    %2 = vector.broadcast %1 : vector<1x16xf32> to vector<128x16xf32>
    %3 = arith.mulf %0, %2 : vector<128x16xf32>
    %c0_3 = arith.constant 0 : index
    %c0_4 = arith.constant 0 : index
    %4 = vector.load %arg3[%c0_3, %c0_4] : memref<1x16xf32, #tpu.memory_space<vmem>>, vector<1x16xf32>
    %5 = vector.broadcast %4 : vector<1x16xf32> to vector<128x16xf32>
    %6 = arith.addf %3, %5 : vector<128x16xf32>
    %c0_5 = arith.constant 0 : index
    %c0_6 = arith.constant 0 : index
    %7 = vector.load %arg4[%c0_5, %c0_6] : memref<128x16xf32, #tpu.memory_space<vmem>>, vector<128x16xf32>
    %8 = arith.addf %6, %7 : vector<128x16xf32>
    %cst = arith.constant 0.000000e+00 : f32
    %9 = vector.broadcast %cst : f32 to vector<128x16xf32>
    %10 = arith.maximumf %8, %9 : vector<128x16xf32>
    %c0_7 = arith.constant 0 : index
    %c0_8 = arith.constant 0 : index
    %11 = vector.load %arg5[%c0_7, %c0_8] : memref<128x16xf32, #tpu.memory_space<vmem>>, vector<128x16xf32>
    tpu.vector_store %arg5[%c0_7, %c0_8], %10 {strides = array<i32>} : memref<128x16xf32, #tpu.memory_space<vmem>>, vector<128x16xf32>,
    return
  }
  func.func @transform_0(%arg0: i32) -> (i32, i32) {
    %c0_i32 = arith.constant 0 : i32
    %c0_i32_0 = arith.constant 0 : i32
    return %arg0, %c0_i32 : i32, i32
  }
  func.func @transform_1(%arg0: i32) -> (i32, i32) {
    %c0_i32 = arith.constant 0 : i32
    %c0_i32_0 = arith.constant 0 : i32
    %c0_i32_1 = arith.constant 0 : i32
    return %c0_i32, %c0_i32_0 : i32, i32
  }
  func.func @transform_2(%arg0: i32) -> (i32, i32) {
    %c0_i32 = arith.constant 0 : i32
    %c0_i32_0 = arith.constant 0 : i32
    %c0_i32_1 = arith.constant 0 : i32
    return %c0_i32, %c0_i32_0 : i32, i32
  }
  func.func @transform_3(%arg0: i32) -> (i32, i32) {
    %c0_i32 = arith.constant 0 : i32
    %c0_i32_0 = arith.constant 0 : i32
    return %arg0, %c0_i32 : i32, i32
  }
  func.func @transform_4(%arg0: i32) -> (i32, i32) {
    %c0_i32 = arith.constant 0 : i32
    %c0_i32_0 = arith.constant 0 : i32
    return %arg0, %c0_i32 : i32, i32
  }
}

</mosaic_0001>

<bundles_post_ra>
// kernel: bottleneck_forward.4
= control target key start
LH: loop header
LB: loop body
LE: loop exit
PB: predicated region body
PF: predicated region fallthrough
CT: control target
= control target key end

     0   :  { %s585_s12 = smov 0   ;;  %s729_s0 = inlined_call_operand.vmem [shape: f32[512,16], index: 0, kind: input, shape index: {}]   ;;  %s730_s1 = inlined_call_operand.vmem [shape: f32[16,4], index: 1, kind: input, shape index: {}]   ;;  %s731_s2 = inlined_call_operand.vmem [shape: f32[512,4], index: 2, kind: output, shape index: {0}]   ;;  %s732_s3 = inlined_call_operand.vmem [shape: f32[4,2,4], index: 3, kind: output, shape index: {1}]  }
   0x1 LB: > { %s591_s13 = sadd.s32 4294967295, %s563_s12   ;;  %p519_p0 = scmp.ge.s32.totalorder %s563_s12, 1  ;;  %s563_s12 = sphi %s585_s12, %s14_s12  }
   0x2   : > { %p141_p1 = scmp.lt.s32.totalorder %s563_s12, 5 }
   0x4   : > { %p142_p2 = pnand %p519_p0, %p141_p1 }
   0x5   : > { %s520_s18 = sshll.u32 (!%p142_p2), %s591_s13, 4  ;;  %p181_p4 = scmp.lt.s32.totalorder (!%p142_p2), %s591_s13, 3 }
   0x6   : > { %145 = sbr.rel (%p142_p2) target bundleno = 209 (0xd1), region = 28  ;;  %p170_p3 = scmp.lt.s32.totalorder (!%p142_p2), %s520_s18, 63 }
   0xb   : > { %v202_v0 = vld [vmem:[%s730_s1 + $0x8] sm:$0xff]  ;;  %v201_v1 = vld [vmem:[%s730_s1] sm:$0xff]  ;;  %s734_s18 = smov (!%p170_p3, %s520_s18), 63  ;;  %vm203_vm0 = vcmask 130048   ;;  %vm317_vm1 = vcmask 31744   ;;  %s736_s13 = smov (!%p181_p4, %s591_s13), 3 }
   0xc   : > { %266 = vmatpush.msra.mxu0 %v202_v0  ;;  %543 = vmatpush.msra.mxu1 %v202_v0  ;;  %s521_s19 = sshll.u32 %s734_s18, 3  ;;  %s524_s26 = sshll.u32 %s736_s13, 1  ;;  %vm424_vm2 = vcmask 1040384   ;;  %vm426_vm3 = vcmask 25600  }
   0xd   : > { %544 = vmatpush.msra.mxu2 %v202_v0  ;;  %545 = vmatpush.msra.mxu3 %v202_v0  ;;  %s173_s22 = scalar_lea.vmem %s729_s0, %s521_s19  ;;  %s631_s25 = scalar_lea.vmem %s731_s2, %s521_s19 }
   0xe   : > { %267 = vmatpush.msra.mxu0 %v201_v1  ;;  %546 = vmatpush.msra.mxu1 %v201_v1  ;;  %v185_v2 = vld [vmem:[%s173_s22] sm:$0xff]  ;;  %v186_v6 = vld [vmem:[%s173_s22 + $0x8] sm:$0xff]  ;;  %v187_v10 = vld [vmem:[%s173_s22 + $0x10] sm:$0xff]  ;;  %s184_s29 = scalar_lea.vmem %s732_s3, %s524_s26 }
   0xf   : > { %547 = vmatpush.msra.mxu2 %v201_v1  ;;  %548 = vmatpush.msra.mxu3 %v201_v1  ;;  %v189_v3 = vld [vmem:[%s173_s22 + $0x20] sm:$0xff]  ;;  %v190_v7 = vld [vmem:[%s173_s22 + $0x28] sm:$0xff]  ;;  %v191_v11 = vld [vmem:[%s173_s22 + $0x30] sm:$0xff] }
  0x10   : > { %525 = vmatmul.msk.f32.vlgmr.msra.gmra.mxu0 %vm203_vm0, %v185_v2  ;;  %529 = vmatmul.msk.f32.vlgmr.msra.gmra.mxu1 %vm203_vm0, %v189_v3  ;;  %v193_v4 = vld [vmem:[%s173_s22 + $0x40] sm:$0xff]  ;;  %v194_v8 = vld [vmem:[%s173_s22 + $0x48] sm:$0xff]  ;;  %v195_v12 = vld [vmem:[%s173_s22 + $0x50] sm:$0xff] }
  0x11   : > { %533 = vmatmul.msk.f32.vlgmr.msra.gmra.mxu2 %vm203_vm0, %v193_v4  ;;  %v197_v5 = vld [vmem:[%s173_s22 + $0x60] sm:$0xff]  ;;  %v198_v9 = vld [vmem:[%s173_s22 + $0x68] sm:$0xff]  ;;  %v199_v13 = vld [vmem:[%s173_s22 + $0x70] sm:$0xff] }
  0x12   : > { %537 = vmatmul.msk.f32.vlgmr.msra.gmra.mxu3 %vm203_vm0, %v197_v5  ;;  %v188_v14 = vld [vmem:[%s173_s22 + $0x18] sm:$0xff] }
  0x13   : > { %v192_v15 = vld [vmem:[%s173_s22 + $0x38] sm:$0xff] }
  0x14   : > { %v196_v16 = vld [vmem:[%s173_s22 + $0x58] sm:$0xff] }
  0x15   : > { %v200_v17 = vld [vmem:[%s173_s22 + $0x78] sm:$0xff] }
  0x18   : > { %526 = vmatmul.msk.f32.gmra.mxu0 %vm203_vm0, %v186_v6  ;;  %530 = vmatmul.msk.f32.gmra.mxu1 %vm203_vm0, %v190_v7 }
  0x19   : > { %534 = vmatmul.msk.f32.gmra.mxu2 %vm203_vm0, %v194_v8 }
  0x1a   : > { %538 = vmatmul.msk.f32.gmra.mxu3 %vm203_vm0, %v198_v9 }
  0x20   : > { %527 = vmatmul.msk.f32.gmra.mxu0 %vm203_vm0, %v187_v10  ;;  %531 = vmatmul.msk.f32.gmra.mxu1 %vm203_vm0, %v191_v11 }
  0x21   : > { %535 = vmatmul.msk.f32.gmra.mxu2 %vm203_vm0, %v195_v12 }
  0x22   : > { %539 = vmatmul.msk.f32.gmra.mxu3 %vm203_vm0, %v199_v13 }
  0x28   : > { %528 = vmatmul.msk.f32.gmra.mxu0 %vm203_vm0, %v188_v14  ;;  %532 = vmatmul.msk.f32.gmra.mxu1 %vm203_vm0, %v192_v15 }
  0x29   : > { %536 = vmatmul.msk.f32.gmra.mxu2 %vm203_vm0, %v196_v16 }
  0x2a   : > { %540 = vmatmul.msk.f32.gmra.mxu3 %vm203_vm0, %v200_v17 }
  0x8d   : > { %v269_v18 = vpop.f32.mrf.mxu0  ;;  %v281_v19 = vpop.f32.mrf.mxu1 }
  0x8e   : > { %318 = vst.msk [vmem:[%s631_s25] sm:$0xff] %vm317_vm1, %v269_v18  ;;  %v371_v29 = vmul.f32 %v269_v18, %v269_v18  ;;  %v334_v32 = vsel %vm317_vm1, %v269_v18, 0.0  ;;  %v375_v43 = vmul.f32 %v281_v19, %v281_v19  ;;  %v341_v49 = vsel %vm317_vm1, %v281_v19, 0.0 }
  0x8f   : > { %322 = vst.msk [vmem:[%s631_s25 + $0x20] sm:$0xff] %vm317_vm1, %v281_v19 }
  0x90   : > { %v387_v36 = vsel %vm317_vm1, %v371_v29, 0.0  ;;  %v394_v54 = vsel %vm317_vm1, %v375_v43, 0.0 }
  0x94   : > { %v637_v20 = vpop.f32.mrf.mxu2 }
  0x95   : > { %v272_v21 = vpop.f32.mrf.mxu0  ;;  %v284_v22 = vpop.f32.mrf.mxu1  ;;  %326 = vst.msk [vmem:[%s631_s25 + $0x40] sm:$0xff] %vm317_vm1, %v637_v20  ;;  %v379_v2 = vmul.f32 %v637_v20, %v637_v20  ;;  %v349_v8 = vsel %vm317_vm1, %v637_v20, 0.0 }
  0x96   : > { %319 = vst.msk [vmem:[%s631_s25 + $0x8] sm:$0xff] %vm317_vm1, %v272_v21  ;;  %v644_v23 = vpop.f32.mrf.mxu3  ;;  %v372_v27 = vmul.f32 %v272_v21, %v272_v21  ;;  %v335_v30 = vsel %vm317_vm1, %v272_v21, 0.0  ;;  %v376_v50 = vmul.f32 %v284_v22, %v284_v22  ;;  %v343_v55 = vsel %vm317_vm1, %v284_v22, 0.0 }
  0x97   : > { %323 = vst.msk [vmem:[%s631_s25 + $0x28] sm:$0xff] %vm317_vm1, %v284_v22  ;;  %v336_v35 = vadd.f32 %v335_v30, %v334_v32  ;;  %v402_v12 = vsel %vm317_vm1, %v379_v2, 0.0  ;;  %v357_v30 = vsel %vm317_vm1, %v644_v23, 0.0 }
  0x98   : > { %330 = vst.msk [vmem:[%s631_s25 + $0x60] sm:$0xff] %vm317_vm1, %v644_v23  ;;  %v388_v33 = vsel %vm317_vm1, %v372_v27, 0.0  ;;  %v396_v60 = vsel %vm317_vm1, %v376_v50, 0.0 }
  0x99   : > { %v389_v39 = vadd.f32 %v388_v33, %v387_v36 }
  0x9c   : > { %v651_v24 = vpop.f32.mrf.mxu2 }
  0x9d   : > { %v275_v25 = vpop.f32.mrf.mxu0  ;;  %v287_v26 = vpop.f32.mrf.mxu1  ;;  %327 = vst.msk [vmem:[%s631_s25 + $0x48] sm:$0xff] %vm317_vm1, %v651_v24  ;;  %v380_v9 = vmul.f32 %v651_v24, %v651_v24  ;;  %v351_v13 = vsel %vm317_vm1, %v651_v24, 0.0 }
  0x9e   : > { %320 = vst.msk [vmem:[%s631_s25 + $0x10] sm:$0xff] %vm317_vm1, %v275_v25  ;;  %v658_v28 = vpop.f32.mrf.mxu3  ;;  %v373_v31 = vmul.f32 %v275_v25, %v275_v25  ;;  %v337_v34 = vsel %vm317_vm1, %v275_v25, 0.0  ;;  %v377_v56 = vmul.f32 %v287_v26, %v287_v26  ;;  %v345_v61 = vsel %vm317_vm1, %v287_v26, 0.0 }
  0x9f   : > { %324 = vst.msk [vmem:[%s631_s25 + $0x30] sm:$0xff] %vm317_vm1, %v287_v26  ;;  %v338_v40 = vadd.f32 %v337_v34, %v336_v35  ;;  %v404_v18 = vsel %vm317_vm1, %v380_v9, 0.0  ;;  %v383_v25 = vmul.f32 %v644_v23, %v644_v23  ;;  %v359_v35 = vsel %vm317_vm1, %v658_v28, 0.0 }
  0xa0   : > { %331 = vst.msk [vmem:[%s631_s25 + $0x68] sm:$0xff] %vm317_vm1, %v658_v28  ;;  %v390_v37 = vsel %vm317_vm1, %v373_v31, 0.0  ;;  %v398_v3 = vsel %vm317_vm1, %v377_v56, 0.0  ;;  %v384_v31 = vmul.f32 %v658_v28, %v658_v28 }
  0xa1   : > { %v391_v47 = vadd.f32 %v390_v37, %v389_v39  ;;  %v410_v34 = vsel %vm317_vm1, %v383_v25, 0.0 }
  0xa4   : > { %v299_v38 = vpop.f32.mrf.mxu2 }
  0xa5   : > { %v278_v41 = vpop.f32.mrf.mxu0  ;;  %v290_v42 = vpop.f32.mrf.mxu1  ;;  %328 = vst.msk [vmem:[%s631_s25 + $0x50] sm:$0xff] %vm317_vm1, %v299_v38  ;;  %v381_v14 = vmul.f32 %v299_v38, %v299_v38  ;;  %v353_v19 = vsel %vm317_vm1, %v299_v38, 0.0 }
  0xa6   : > { %321 = vst.msk [vmem:[%s631_s25 + $0x18] sm:$0xff] %vm317_vm1, %v278_v41  ;;  %v339_v44 = vsel %vm317_vm1, %v278_v41, 0.0  ;;  %v374_v45 = vmul.f32 %v278_v41, %v278_v41  ;;  %v311_v46 = vpop.f32.mrf.mxu3  ;;  %v378_v57 = vmul.f32 %v290_v42, %v290_v42  ;;  %v347_v62 = vsel %vm317_vm1, %v290_v42, 0.0 }
  0xa7   : > { %v340_v48 = vadd.f32 %v339_v44, %v338_v40  ;;  %325 = vst.msk [vmem:[%s631_s25 + $0x38] sm:$0xff] %vm317_vm1, %v290_v42  ;;  %v406_v26 = vsel %vm317_vm1, %v381_v14, 0.0  ;;  %v385_v36 = vmul.f32 %v311_v46, %v311_v46  ;;  %v412_v40 = vsel %vm317_vm1, %v384_v31, 0.0 }
  0xa8   : > { %v392_v51 = vsel %vm317_vm1, %v374_v45, 0.0  ;;  %332 = vst.msk [vmem:[%s631_s25 + $0x70] sm:$0xff] %vm317_vm1, %v311_v46  ;;  %v400_v4 = vsel %vm317_vm1, %v378_v57, 0.0  ;;  %v361_v23 = vsel %vm317_vm1, %v311_v46, 0.0 }
  0xa9   : > { %v342_v52 = vadd.f32 %v341_v49, %v340_v48  ;;  %v393_v53 = vadd.f32 %v392_v51, %v391_v47  ;;  %v414_v44 = vsel %vm317_vm1, %v385_v36, 0.0 }
  0xab   : > { %v395_v58 = vadd.f32 %v394_v54, %v393_v53  ;;  %v344_v59 = vadd.f32 %v343_v55, %v342_v52 }
  0xac   : > { %v302_v63 = vpop.f32.mrf.mxu2 }
  0xad   : > { %v346_v0 = vadd.f32 %v345_v61, %v344_v59  ;;  %v397_v1 = vadd.f32 %v396_v60, %v395_v58  ;;  %329 = vst.msk [vmem:[%s631_s25 + $0x58] sm:$0xff] %vm317_vm1, %v302_v63  ;;  %v382_v15 = vmul.f32 %v302_v63, %v302_v63  ;;  %v355_v20 = vsel %vm317_vm1, %v302_v63, 0.0 }
  0xae   : > { %v314_v5 = vpop.f32.mrf.mxu3 }
  0xaf   : > { %v399_v6 = vadd.f32 %v398_v3, %v397_v1  ;;  %v348_v7 = vadd.f32 %v347_v62, %v346_v0  ;;  %333 = vst.msk [vmem:[%s631_s25 + $0x78] sm:$0xff] %vm317_vm1, %v314_v5  ;;  %v408_v27 = vsel %vm317_vm1, %v382_v15, 0.0  ;;  %v386_v37 = vmul.f32 %v314_v5, %v314_v5 }
  0xb0   : > { %v363_v41 = vsel %vm317_vm1, %v314_v5, 0.0 }
  0xb1   : > { %v350_v10 = vadd.f32 %v349_v8, %v348_v7  ;;  %v401_v11 = vadd.f32 %v400_v4, %v399_v6  ;;  %v416_v45 = vsel %vm317_vm1, %v386_v37, 0.0 }
  0xb3   : > { %v403_v16 = vadd.f32 %v402_v12, %v401_v11  ;;  %v352_v17 = vadd.f32 %v351_v13, %v350_v10 }
  0xb5   : > { %v354_v21 = vadd.f32 %v353_v19, %v352_v17  ;;  %v405_v22 = vadd.f32 %v404_v18, %v403_v16 }
  0xb7   : > { %v407_v24 = vadd.f32 %v406_v26, %v405_v22  ;;  %v356_v29 = vadd.f32 %v355_v20, %v354_v21 }
  0xb9   : > { %v358_v32 = vadd.f32 %v357_v30, %v356_v29  ;;  %v409_v33 = vadd.f32 %v408_v27, %v407_v24 }
  0xbb   : > { %v411_v38 = vadd.f32 %v410_v34, %v409_v33  ;;  %v360_v39 = vadd.f32 %v359_v35, %v358_v32 }
  0xbd   : > { %v362_v42 = vadd.f32 %v361_v23, %v360_v39  ;;  %v413_v43 = vadd.f32 %v412_v40, %v411_v38 }
  0xbf   : > { %v415_v47 = vadd.f32 %v414_v44, %v413_v43  ;;  %v364_v28 = vadd.f32 %v363_v41, %v362_v42 }
  0xc1   : > { %v365_v48 = vrot.slane %v364_v28, 4  ;;  %v417_v49 = vadd.f32 %v416_v45, %v415_v47 }
  0xc3   : > { %v366_v50 = vadd.f32 %v365_v48, %v364_v28  ;;  %v418_v51 = vrot.slane %v417_v49, 4 }
  0xc5   : > { %v367_v52 = vrot.slane %v366_v50, 2  ;;  %v419_v53 = vadd.f32 %v418_v51, %v417_v49 }
  0xc7   : > { %v368_v54 = vadd.f32 %v367_v52, %v366_v50  ;;  %v420_v46 = vrot.slane %v419_v53, 2 }
  0xc9   : > { %v369_v55 = vrot.slane %v368_v54, 1  ;;  %v421_v56 = vadd.f32 %v420_v46, %v419_v53 }
  0xcb   : > { %v422_v57 = vrot.slane %v421_v56, 1  ;;  %v370_v58 = vadd.f32 %v369_v55, %v368_v54 }
  0xcd   : > { %v423_v59 = vadd.f32 %v422_v57, %v421_v56 }
  0xcf   : > { %v425_v60 = vsel %vm424_vm2, %v370_v58, %v423_v59 }
  0xd0   : > { %427 = vst.msk [vmem:[%s184_s29] sm:$0x3] %vm426_vm3, %v425_v60 }
  0xd1 PF: > { %s14_s12 = sadd.s32 1, %s563_s12  }
  0xd2   : > { %p11_p5 = scmp.ge.s32.totalorder %s14_s12, 6  }
  0xd4   :  { %13 = sbr.rel (!%p11_p5) target bundleno = 1 (0x1), region = 70 }

// kernel: bottleneck_forward.6
= control target key start
LH: loop header
LB: loop body
LE: loop exit
PB: predicated region body
PF: predicated region fallthrough
CT: control target
= control target key end

     0   :  { %s708_s18 = smov 0   ;;  %s909_s0 = inlined_call_operand.vmem [shape: f32[512,4], index: 0, kind: input, shape index: {}]   ;;  %s910_s1 = inlined_call_operand.vmem [shape: f32[1,4], index: 1, kind: input, shape index: {}]   ;;  %s911_s2 = inlined_call_operand.vmem [shape: f32[1,4], index: 2, kind: input, shape index: {}]   ;;  %s912_s3 = inlined_call_operand.vmem [shape: f32[4,16], index: 3, kind: input, shape index: {}]   ;;  %s913_s4 = inlined_call_operand.vmem [shape: f32[512,16], index: 4, kind: output, shape index: {0}]   ;;  %s914_s5 = inlined_call_operand.vmem [shape: f32[4,2,16], index: 5, kind: output, shape index: {1}]  }
   0x1 LB: > { %s714_s19 = sadd.s32 4294967295, %s676_s18   ;;  %p632_p0 = scmp.ge.s32.totalorder %s676_s18, 1  ;;  %s676_s18 = sphi %s708_s18, %s16_s18  }
   0x2   : > { %p191_p1 = scmp.lt.s32.totalorder %s676_s18, 5 }
   0x4   : > { %p192_p2 = pnand %p632_p0, %p191_p1 }
   0x5   : > { %s633_s22 = sshll.u32 (!%p192_p2), %s714_s19, 4  ;;  %p235_p4 = scmp.lt.s32.totalorder (!%p192_p2), %s714_s19, 3 }
   0x6   : > { %195 = sbr.rel (%p192_p2) target bundleno = 214 (0xd6), region = 36  ;;  %p224_p3 = scmp.lt.s32.totalorder (!%p192_p2), %s633_s22, 63 }
   0xb   : > { %v311_v0 = vld [vmem:[%s912_s3] sm:$0xf]  ;;  %vm361_vm0 = vcmask 1043456   ;;  %s916_s22 = smov (!%p224_p3, %s633_s22), 63  ;;  %vm312_vm1 = vcmask 31744   ;;  %vm430_vm2 = vcmask 130048  }
   0xc   : > { %638 = vmatpush.msk.msra.mxu0 %vm361_vm0, %v311_v0  ;;  %657 = vmatpush.msk.msra.mxu1 %vm361_vm0, %v311_v0  ;;  %v727_v1 = vld [vmem:[%s910_s1] ss:$0 sm:$0xff]  ;;  %s634_s25 = sshll.u32 %s916_s22, 3  ;;  %s918_s19 = smov (!%p235_p4, %s714_s19), 3  ;;  %vm537_vm3 = vcmask 1040384   ;;  %vm539_vm4 = vcmask 123904  }
   0xd   : > { %658 = vmatpush.msk.msra.mxu2 %vm361_vm0, %v311_v0  ;;  %659 = vmatpush.msk.msra.mxu3 %vm361_vm0, %v311_v0  ;;  %s735_s28 = scalar_lea.vmem %s909_s0, %s634_s25  ;;  %v740_v2 = vld [vmem:[%s911_s2] ss:$0 sm:$0xff]  ;;  %s811_s8 = scalar_lea.vmem %s913_s4, %s634_s25 }
   0xe   : > { %v239_v3 = vld [vmem:[%s735_s28] sm:$0xff]  ;;  %v240_v4 = vld [vmem:[%s735_s28 + $0x8] sm:$0xff]  ;;  %v241_v27 = vld [vmem:[%s735_s28 + $0x10] sm:$0xff]  ;;  %s637_s9 = sshll.u32 %s918_s19, 1 }
   0xf   : > { %v243_v5 = vld [vmem:[%s735_s28 + $0x20] sm:$0xff]  ;;  %v259_v6 = vmul.f32 %v727_v1, %v239_v3  ;;  %v244_v9 = vld [vmem:[%s735_s28 + $0x28] sm:$0xff]  ;;  %v260_v14 = vmul.f32 %v727_v1, %v240_v4  ;;  %v245_v30 = vld [vmem:[%s735_s28 + $0x30] sm:$0xff]  ;;  %v261_v35 = vmul.f32 %v727_v1, %v241_v27  ;;  %s238_s12 = scalar_lea.vmem %s914_s5, %s637_s9 }
  0x10   : > { %v263_v7 = vmul.f32 %v727_v1, %v243_v5  ;;  %v247_v8 = vld [vmem:[%s735_s28 + $0x40] sm:$0xff]  ;;  %v248_v11 = vld [vmem:[%s735_s28 + $0x48] sm:$0xff]  ;;  %v264_v16 = vmul.f32 %v727_v1, %v244_v9  ;;  %v249_v32 = vld [vmem:[%s735_s28 + $0x50] sm:$0xff]  ;;  %v265_v37 = vmul.f32 %v727_v1, %v245_v30 }
  0x11   : > { %v267_v10 = vmul.f32 %v727_v1, %v247_v8  ;;  %v251_v12 = vld [vmem:[%s735_s28 + $0x60] sm:$0xff]  ;;  %v279_v13 = vadd.f32 %v740_v2, %v259_v6  ;;  %v268_v18 = vmul.f32 %v727_v1, %v248_v11  ;;  %v252_v22 = vld [vmem:[%s735_s28 + $0x68] sm:$0xff]  ;;  %v280_v25 = vadd.f32 %v740_v2, %v260_v14  ;;  %v253_v38 = vld [vmem:[%s735_s28 + $0x70] sm:$0xff] }
  0x12   : > { %v283_v15 = vadd.f32 %v740_v2, %v263_v7  ;;  %v271_v19 = vmul.f32 %v727_v1, %v251_v12  ;;  %v284_v26 = vadd.f32 %v740_v2, %v264_v16  ;;  %v272_v31 = vmul.f32 %v727_v1, %v252_v22  ;;  %v242_v45 = vld [vmem:[%s735_s28 + $0x18] sm:$0xff] }
  0x13   : > { %v287_v17 = vadd.f32 %v740_v2, %v267_v10  ;;  %v295_v20 = vmax.f32 %v279_v13, 0.0  ;;  %v288_v28 = vadd.f32 %v740_v2, %v268_v18  ;;  %v296_v34 = vmax.f32 %v280_v25, 0.0  ;;  %v246_v47 = vld [vmem:[%s735_s28 + $0x38] sm:$0xff] }
  0x14   : > { %v299_v21 = vmax.f32 %v283_v15, 0.0  ;;  %v291_v24 = vadd.f32 %v740_v2, %v271_v19  ;;  %v292_v33 = vadd.f32 %v740_v2, %v272_v31  ;;  %v300_v36 = vmax.f32 %v284_v26, 0.0  ;;  %v250_v48 = vld [vmem:[%s735_s28 + $0x58] sm:$0xff] }
  0x15   : > { %v303_v23 = vmax.f32 %v287_v17, 0.0  ;;  %639 = vmatmul.msk.f32.vlgmr.msra.gmra.mxu0 %vm312_vm1, %v295_v20  ;;  %v304_v39 = vmax.f32 %v288_v28, 0.0  ;;  %v269_v40 = vmul.f32 %v727_v1, %v249_v32  ;;  %v273_v42 = vmul.f32 %v727_v1, %v253_v38  ;;  %v254_v54 = vld [vmem:[%s735_s28 + $0x78] sm:$0xff] }
  0x16   : > { %643 = vmatmul.msk.f32.vlgmr.msra.gmra.mxu1 %vm312_vm1, %v299_v21  ;;  %v307_v29 = vmax.f32 %v291_v24, 0.0  ;;  %v308_v41 = vmax.f32 %v292_v33, 0.0  ;;  %v281_v43 = vadd.f32 %v740_v2, %v261_v35  ;;  %v285_v44 = vadd.f32 %v740_v2, %v265_v37 }
  0x17   : > { %647 = vmatmul.msk.f32.vlgmr.msra.gmra.mxu2 %vm312_vm1, %v303_v23  ;;  %v289_v46 = vadd.f32 %v740_v2, %v269_v40  ;;  %v293_v49 = vadd.f32 %v740_v2, %v273_v42  ;;  %v262_v51 = vmul.f32 %v727_v1, %v242_v45  ;;  %v266_v53 = vmul.f32 %v727_v1, %v246_v47 }
  0x18   : > { %651 = vmatmul.msk.f32.vlgmr.msra.gmra.mxu3 %vm312_vm1, %v307_v29  ;;  %v297_v50 = vmax.f32 %v281_v43, 0.0  ;;  %v301_v52 = vmax.f32 %v285_v44, 0.0  ;;  %v270_v56 = vmul.f32 %v727_v1, %v250_v48  ;;  %v274_v58 = vmul.f32 %v727_v1, %v254_v54 }
  0x19   : > { %v305_v55 = vmax.f32 %v289_v46, 0.0  ;;  %v309_v57 = vmax.f32 %v293_v49, 0.0  ;;  %v282_v59 = vadd.f32 %v740_v2, %v262_v51  ;;  %v286_v60 = vadd.f32 %v740_v2, %v266_v53 }
  0x1a   : > { %v290_v61 = vadd.f32 %v740_v2, %v270_v56  ;;  %v294_v62 = vadd.f32 %v740_v2, %v274_v58 }
  0x1b   : > { %v298_v63 = vmax.f32 %v282_v59, 0.0  ;;  %v302_v0 = vmax.f32 %v286_v60, 0.0 }
  0x1c   : > { %v306_v1 = vmax.f32 %v290_v61, 0.0  ;;  %v310_v3 = vmax.f32 %v294_v62, 0.0 }
  0x1d   : > { %640 = vmatmul.msk.f32.gmra.mxu0 %vm312_vm1, %v296_v34 }
  0x1e   : > { %644 = vmatmul.msk.f32.gmra.mxu1 %vm312_vm1, %v300_v36 }
  0x1f   : > { %648 = vmatmul.msk.f32.gmra.mxu2 %vm312_vm1, %v304_v39 }
  0x20   : > { %652 = vmatmul.msk.f32.gmra.mxu3 %vm312_vm1, %v308_v41 }
  0x25   : > { %641 = vmatmul.msk.f32.gmra.mxu0 %vm312_vm1, %v297_v50 }
  0x26   : > { %645 = vmatmul.msk.f32.gmra.mxu1 %vm312_vm1, %v301_v52 }
  0x27   : > { %649 = vmatmul.msk.f32.gmra.mxu2 %vm312_vm1, %v305_v55 }
  0x28   : > { %653 = vmatmul.msk.f32.gmra.mxu3 %vm312_vm1, %v309_v57 }
  0x2d   : > { %642 = vmatmul.msk.f32.gmra.mxu0 %vm312_vm1, %v298_v63 }
  0x2e   : > { %646 = vmatmul.msk.f32.gmra.mxu1 %vm312_vm1, %v302_v0 }
  0x2f   : > { %650 = vmatmul.msk.f32.gmra.mxu2 %vm312_vm1, %v306_v1 }
  0x30   : > { %654 = vmatmul.msk.f32.gmra.mxu3 %vm312_vm1, %v310_v3 }
  0x92   : > { %v382_v2 = vpop.f32.mrf.mxu0 }
  0x93   : > { %v394_v4 = vpop.f32.mrf.mxu1  ;;  %431 = vst.msk [vmem:[%s811_s8] sm:$0xff] %vm430_vm2, %v382_v2  ;;  %v484_v14 = vmul.f32 %v382_v2, %v382_v2  ;;  %v447_v17 = vsel %vm430_vm2, %v382_v2, 0.0 }
  0x94   : > { %435 = vst.msk [vmem:[%s811_s8 + $0x20] sm:$0xff] %vm430_vm2, %v394_v4  ;;  %v488_v28 = vmul.f32 %v394_v4, %v394_v4  ;;  %v454_v34 = vsel %vm430_vm2, %v394_v4, 0.0 }
  0x95   : > { %v500_v21 = vsel %vm430_vm2, %v484_v14, 0.0 }
  0x96   : > { %v507_v39 = vsel %vm430_vm2, %v488_v28, 0.0 }
  0x9a   : > { %v817_v5 = vpop.f32.mrf.mxu2  ;;  %v385_v6 = vpop.f32.mrf.mxu0 }
  0x9b   : > { %v397_v7 = vpop.f32.mrf.mxu1  ;;  %439 = vst.msk [vmem:[%s811_s8 + $0x40] sm:$0xff] %vm430_vm2, %v817_v5  ;;  %v824_v8 = vpop.f32.mrf.mxu3  ;;  %v485_v12 = vmul.f32 %v385_v6, %v385_v6  ;;  %v448_v15 = vsel %vm430_vm2, %v385_v6, 0.0  ;;  %v492_v51 = vmul.f32 %v817_v5, %v817_v5  ;;  %v462_v57 = vsel %vm430_vm2, %v817_v5, 0.0 }
  0x9c   : > { %432 = vst.msk [vmem:[%s811_s8 + $0x8] sm:$0xff] %vm430_vm2, %v385_v6  ;;  %v449_v20 = vadd.f32 %v448_v15, %v447_v17  ;;  %v489_v35 = vmul.f32 %v397_v7, %v397_v7  ;;  %v456_v40 = vsel %vm430_vm2, %v397_v7, 0.0  ;;  %v470_v15 = vsel %vm430_vm2, %v824_v8, 0.0 }
  0x9d   : > { %436 = vst.msk [vmem:[%s811_s8 + $0x28] sm:$0xff] %vm430_vm2, %v397_v7  ;;  %v501_v18 = vsel %vm430_vm2, %v485_v12, 0.0  ;;  %v515_v61 = vsel %vm430_vm2, %v492_v51, 0.0 }
  0x9e   : > { %443 = vst.msk [vmem:[%s811_s8 + $0x60] sm:$0xff] %vm430_vm2, %v824_v8  ;;  %v502_v24 = vadd.f32 %v501_v18, %v500_v21  ;;  %v509_v45 = vsel %vm430_vm2, %v489_v35, 0.0 }
  0xa2   : > { %v831_v9 = vpop.f32.mrf.mxu2  ;;  %v388_v10 = vpop.f32.mrf.mxu0 }
  0xa3   : > { %v400_v11 = vpop.f32.mrf.mxu1  ;;  %440 = vst.msk [vmem:[%s811_s8 + $0x48] sm:$0xff] %vm430_vm2, %v831_v9  ;;  %v838_v13 = vpop.f32.mrf.mxu3  ;;  %v486_v16 = vmul.f32 %v388_v10, %v388_v10  ;;  %v450_v19 = vsel %vm430_vm2, %v388_v10, 0.0  ;;  %v493_v58 = vmul.f32 %v831_v9, %v831_v9  ;;  %v464_v62 = vsel %vm430_vm2, %v831_v9, 0.0 }
  0xa4   : > { %433 = vst.msk [vmem:[%s811_s8 + $0x10] sm:$0xff] %vm430_vm2, %v388_v10  ;;  %v451_v25 = vadd.f32 %v450_v19, %v449_v20  ;;  %v490_v41 = vmul.f32 %v400_v11, %v400_v11  ;;  %v458_v46 = vsel %vm430_vm2, %v400_v11, 0.0  ;;  %v496_v10 = vmul.f32 %v824_v8, %v824_v8 }
  0xa5   : > { %437 = vst.msk [vmem:[%s811_s8 + $0x30] sm:$0xff] %vm430_vm2, %v400_v11  ;;  %v503_v22 = vsel %vm430_vm2, %v486_v16, 0.0  ;;  %v517_v2 = vsel %vm430_vm2, %v493_v58, 0.0  ;;  %v497_v16 = vmul.f32 %v838_v13, %v838_v13  ;;  %v472_v20 = vsel %vm430_vm2, %v838_v13, 0.0 }
  0xa6   : > { %444 = vst.msk [vmem:[%s811_s8 + $0x68] sm:$0xff] %vm430_vm2, %v838_v13  ;;  %v504_v32 = vadd.f32 %v503_v22, %v502_v24  ;;  %v511_v52 = vsel %vm430_vm2, %v490_v41, 0.0  ;;  %v523_v19 = vsel %vm430_vm2, %v496_v10, 0.0 }
  0xaa   : > { %v412_v23 = vpop.f32.mrf.mxu2  ;;  %v391_v26 = vpop.f32.mrf.mxu0 }
  0xab   : > { %v403_v27 = vpop.f32.mrf.mxu1  ;;  %441 = vst.msk [vmem:[%s811_s8 + $0x50] sm:$0xff] %vm430_vm2, %v412_v23  ;;  %v452_v29 = vsel %vm430_vm2, %v391_v26, 0.0  ;;  %v487_v30 = vmul.f32 %v391_v26, %v391_v26  ;;  %v424_v31 = vpop.f32.mrf.mxu3  ;;  %v494_v63 = vmul.f32 %v412_v23, %v412_v23  ;;  %v466_v4 = vsel %vm430_vm2, %v412_v23, 0.0 }
  0xac   : > { %434 = vst.msk [vmem:[%s811_s8 + $0x18] sm:$0xff] %vm430_vm2, %v391_v26  ;;  %v453_v33 = vadd.f32 %v452_v29, %v451_v25  ;;  %v491_v42 = vmul.f32 %v403_v27, %v403_v27  ;;  %v460_v47 = vsel %vm430_vm2, %v403_v27, 0.0  ;;  %v498_v21 = vmul.f32 %v424_v31, %v424_v31 }
  0xad   : > { %438 = vst.msk [vmem:[%s811_s8 + $0x38] sm:$0xff] %vm430_vm2, %v403_v27  ;;  %v505_v36 = vsel %vm430_vm2, %v487_v30, 0.0  ;;  %v519_v11 = vsel %vm430_vm2, %v494_v63, 0.0  ;;  %v525_v25 = vsel %vm430_vm2, %v497_v16, 0.0  ;;  %v474_v8 = vsel %vm430_vm2, %v424_v31, 0.0 }
  0xae   : > { %445 = vst.msk [vmem:[%s811_s8 + $0x70] sm:$0xff] %vm430_vm2, %v424_v31  ;;  %v455_v37 = vadd.f32 %v454_v34, %v453_v33  ;;  %v506_v38 = vadd.f32 %v505_v36, %v504_v32  ;;  %v513_v53 = vsel %vm430_vm2, %v491_v42, 0.0  ;;  %v527_v29 = vsel %vm430_vm2, %v498_v21, 0.0 }
  0xb0   : > { %v508_v43 = vadd.f32 %v507_v39, %v506_v38  ;;  %v457_v44 = vadd.f32 %v456_v40, %v455_v37 }
  0xb2   : > { %v415_v48 = vpop.f32.mrf.mxu2  ;;  %v459_v49 = vadd.f32 %v458_v46, %v457_v44  ;;  %v510_v50 = vadd.f32 %v509_v45, %v508_v43 }
  0xb3   : > { %442 = vst.msk [vmem:[%s811_s8 + $0x58] sm:$0xff] %vm430_vm2, %v415_v48  ;;  %v427_v54 = vpop.f32.mrf.mxu3  ;;  %v495_v0 = vmul.f32 %v415_v48, %v415_v48  ;;  %v468_v5 = vsel %vm430_vm2, %v415_v48, 0.0 }
  0xb4   : > { %v512_v55 = vadd.f32 %v511_v52, %v510_v50  ;;  %v461_v56 = vadd.f32 %v460_v47, %v459_v49  ;;  %446 = vst.msk [vmem:[%s811_s8 + $0x78] sm:$0xff] %vm430_vm2, %v427_v54  ;;  %v499_v22 = vmul.f32 %v427_v54, %v427_v54  ;;  %v476_v26 = vsel %vm430_vm2, %v427_v54, 0.0 }
  0xb5   : > { %v521_v12 = vsel %vm430_vm2, %v495_v0, 0.0 }
  0xb6   : > { %v463_v59 = vadd.f32 %v462_v57, %v461_v56  ;;  %v514_v60 = vadd.f32 %v513_v53, %v512_v55  ;;  %v529_v30 = vsel %vm430_vm2, %v499_v22, 0.0 }
  0xb8   : > { %v516_v1 = vadd.f32 %v515_v61, %v514_v60  ;;  %v465_v3 = vadd.f32 %v464_v62, %v463_v59 }
  0xba   : > { %v467_v6 = vadd.f32 %v466_v4, %v465_v3  ;;  %v518_v7 = vadd.f32 %v517_v2, %v516_v1 }
  0xbc   : > { %v520_v9 = vadd.f32 %v519_v11, %v518_v7  ;;  %v469_v14 = vadd.f32 %v468_v5, %v467_v6 }
  0xbe   : > { %v471_v17 = vadd.f32 %v470_v15, %v469_v14  ;;  %v522_v18 = vadd.f32 %v521_v12, %v520_v9 }
  0xc0   : > { %v524_v23 = vadd.f32 %v523_v19, %v522_v18  ;;  %v473_v24 = vadd.f32 %v472_v20, %v471_v17 }
  0xc2   : > { %v475_v27 = vadd.f32 %v474_v8, %v473_v24  ;;  %v526_v28 = vadd.f32 %v525_v25, %v524_v23 }
  0xc4   : > { %v528_v32 = vadd.f32 %v527_v29, %v526_v28  ;;  %v477_v13 = vadd.f32 %v476_v26, %v475_v27 }
  0xc6   : > { %v478_v33 = vrot.slane %v477_v13, 4  ;;  %v530_v34 = vadd.f32 %v529_v30, %v528_v32 }
  0xc8   : > { %v479_v35 = vadd.f32 %v478_v33, %v477_v13  ;;  %v531_v36 = vrot.slane %v530_v34, 4 }
  0xca   : > { %v480_v37 = vrot.slane %v479_v35, 2  ;;  %v532_v38 = vadd.f32 %v531_v36, %v530_v34 }
  0xcc   : > { %v481_v39 = vadd.f32 %v480_v37, %v479_v35  ;;  %v533_v31 = vrot.slane %v532_v38, 2 }
  0xce   : > { %v482_v40 = vrot.slane %v481_v39, 1  ;;  %v534_v41 = vadd.f32 %v533_v31, %v532_v38 }
  0xd0   : > { %v535_v42 = vrot.slane %v534_v41, 1  ;;  %v483_v43 = vadd.f32 %v482_v40, %v481_v39 }
  0xd2   : > { %v536_v44 = vadd.f32 %v535_v42, %v534_v41 }
  0xd4   : > { %v538_v45 = vsel %vm537_vm3, %v483_v43, %v536_v44 }
  0xd5   : > { %540 = vst.msk [vmem:[%s238_s12] sm:$0x3] %vm539_vm4, %v538_v45 }
  0xd6 PF: > { %s16_s18 = sadd.s32 1, %s676_s18  }
  0xd7   : > { %p13_p5 = scmp.ge.s32.totalorder %s16_s18, 6  }
  0xd9   :  { %15 = sbr.rel (!%p13_p5) target bundleno = 1 (0x1), region = 78 }

// kernel: bottleneck_forward.7
= control target key start
LH: loop header
LB: loop body
LE: loop exit
PB: predicated region body
PF: predicated region fallthrough
CT: control target
= control target key end

     0   :  { %s468_s15 = smov 0   ;;  %s605_s0 = inlined_call_operand.vmem [shape: f32[512,16], index: 0, kind: input, shape index: {}]   ;;  %s606_s1 = inlined_call_operand.vmem [shape: f32[1,16], index: 1, kind: input, shape index: {}]   ;;  %s607_s2 = inlined_call_operand.vmem [shape: f32[1,16], index: 2, kind: input, shape index: {}]   ;;  %s608_s3 = inlined_call_operand.vmem [shape: f32[512,16], index: 3, kind: input, shape index: {}]   ;;  %s609_s4 = inlined_call_operand.vmem [shape: f32[512,16], index: 4, kind: output, shape index: {}]  }
   0x1 LB: > { %s412_s16 = sadd.s32 4294967295, %s441_s15   ;;  %p416_p0 = scmp.ge.s32.totalorder %s441_s15, 1  ;;  %s441_s15 = sphi %s468_s15, %s14_s15  }
   0x2   : > { %p174_p1 = scmp.lt.s32.totalorder %s441_s15, 5 }
   0x4   : > { %p175_p2 = pnand %p416_p0, %p174_p1 }
   0x5   : > { %s417_s17 = sshll.u32 (!%p175_p2), %s412_s16, 4 }
   0x6   : > { %178 = sbr.rel (%p175_p2) target bundleno = 39 (0x27), region = 36  ;;  %p206_p3 = scmp.lt.s32.totalorder (!%p175_p2), %s417_s17, 63 }
   0xb   : > { %s611_s17 = smov (!%p206_p3, %s417_s17), 63  ;;  %v479_v0 = vld [vmem:[%s606_s1] ss:$0 sm:$0xff]  ;;  %vm327_vm0 = vcmask 130048  }
   0xc   : > { %s481_s20 = sshll.u32 %s611_s17, 3  ;;  %v498_v1 = vld [vmem:[%s607_s2] ss:$0 sm:$0xff] }
   0xd   : > { %s487_s23 = scalar_lea.vmem %s605_s0, %s481_s20  ;;  %s493_s26 = scalar_lea.vmem %s608_s3, %s481_s20 }
   0xe   : > { %v223_v2 = vld [vmem:[%s487_s23] sm:$0xff]  ;;  %v224_v3 = vld [vmem:[%s487_s23 + $0x8] sm:$0xff]  ;;  %v225_v7 = vld [vmem:[%s487_s23 + $0x10] sm:$0xff]  ;;  %s529_s5 = scalar_lea.vmem %s609_s4, %s481_s20 }
   0xf   : > { %v243_v4 = vmul.f32 %v479_v0, %v223_v2  ;;  %v279_v5 = vld [vmem:[%s493_s26] sm:$0xff]  ;;  %v244_v6 = vmul.f32 %v479_v0, %v224_v3  ;;  %v280_v8 = vld [vmem:[%s493_s26 + $0x8] sm:$0xff]  ;;  %v245_v9 = vmul.f32 %v479_v0, %v225_v7  ;;  %v226_v10 = vld [vmem:[%s487_s23 + $0x18] sm:$0xff] }
  0x10   : > { %v227_v11 = vld [vmem:[%s487_s23 + $0x20] sm:$0xff]  ;;  %v281_v14 = vld [vmem:[%s493_s26 + $0x10] sm:$0xff]  ;;  %v246_v15 = vmul.f32 %v479_v0, %v226_v10  ;;  %v282_v16 = vld [vmem:[%s493_s26 + $0x18] sm:$0xff] }
  0x11   : > { %v263_v12 = vadd.f32 %v498_v1, %v243_v4  ;;  %v264_v13 = vadd.f32 %v498_v1, %v244_v6  ;;  %v247_v17 = vmul.f32 %v479_v0, %v227_v11  ;;  %v228_v18 = vld [vmem:[%s487_s23 + $0x28] sm:$0xff]  ;;  %v265_v19 = vadd.f32 %v498_v1, %v245_v9  ;;  %v283_v20 = vld [vmem:[%s493_s26 + $0x20] sm:$0xff]  ;;  %v229_v22 = vld [vmem:[%s487_s23 + $0x30] sm:$0xff] }
  0x12   : > { %v248_v21 = vmul.f32 %v479_v0, %v228_v18  ;;  %v230_v23 = vld [vmem:[%s487_s23 + $0x38] sm:$0xff]  ;;  %v266_v26 = vadd.f32 %v498_v1, %v246_v15  ;;  %v284_v28 = vld [vmem:[%s493_s26 + $0x28] sm:$0xff]  ;;  %v249_v31 = vmul.f32 %v479_v0, %v229_v22  ;;  %v231_v33 = vld [vmem:[%s487_s23 + $0x40] sm:$0xff] }
  0x13   : > { %v295_v24 = vadd.f32 %v279_v5, %v263_v12  ;;  %v296_v25 = vadd.f32 %v280_v8, %v264_v13  ;;  %v267_v27 = vadd.f32 %v498_v1, %v247_v17  ;;  %v297_v29 = vadd.f32 %v281_v14, %v265_v19  ;;  %v232_v34 = vld [vmem:[%s487_s23 + $0x48] sm:$0xff]  ;;  %v285_v39 = vld [vmem:[%s493_s26 + $0x30] sm:$0xff]  ;;  %v286_v40 = vld [vmem:[%s493_s26 + $0x38] sm:$0xff] }
  0x14   : > { %v268_v30 = vadd.f32 %v498_v1, %v248_v21  ;;  %v250_v32 = vmul.f32 %v479_v0, %v230_v23  ;;  %v298_v37 = vadd.f32 %v282_v16, %v266_v26  ;;  %v233_v41 = vld [vmem:[%s487_s23 + $0x50] sm:$0xff]  ;;  %v269_v44 = vadd.f32 %v498_v1, %v249_v31  ;;  %v234_v46 = vld [vmem:[%s487_s23 + $0x58] sm:$0xff]  ;;  %v235_v47 = vld [vmem:[%s487_s23 + $0x60] sm:$0xff] }
  0x15   : > { %v311_v35 = vmax.f32 %v295_v24, 0.0  ;;  %v312_v36 = vmax.f32 %v296_v25, 0.0  ;;  %v299_v38 = vadd.f32 %v283_v20, %v267_v27  ;;  %v313_v42 = vmax.f32 %v297_v29, 0.0  ;;  %v236_v52 = vld [vmem:[%s487_s23 + $0x68] sm:$0xff]  ;;  %v287_v56 = vld [vmem:[%s493_s26 + $0x40] sm:$0xff]  ;;  %v289_v61 = vld [vmem:[%s493_s26 + $0x50] sm:$0xff] }
  0x16   : > { %v300_v43 = vadd.f32 %v284_v28, %v268_v30  ;;  %v270_v45 = vadd.f32 %v498_v1, %v250_v32  ;;  %v314_v48 = vmax.f32 %v298_v37, 0.0  ;;  %v251_v50 = vmul.f32 %v479_v0, %v231_v33  ;;  %v288_v57 = vld [vmem:[%s493_s26 + $0x48] sm:$0xff]  ;;  %v237_v2 = vld [vmem:[%s487_s23 + $0x70] sm:$0xff]  ;;  %v238_v3 = vld [vmem:[%s487_s23 + $0x78] sm:$0xff] }
  0x17   : > { %328 = vst.msk [vmem:[%s529_s5] sm:$0xff] %vm327_vm0, %v311_v35  ;;  %v315_v49 = vmax.f32 %v299_v38, 0.0  ;;  %v252_v51 = vmul.f32 %v479_v0, %v232_v34  ;;  %v301_v54 = vadd.f32 %v285_v39, %v269_v44  ;;  %v253_v58 = vmul.f32 %v479_v0, %v233_v41  ;;  %v290_v7 = vld [vmem:[%s493_s26 + $0x58] sm:$0xff]  ;;  %v291_v8 = vld [vmem:[%s493_s26 + $0x60] sm:$0xff]  ;;  %v292_v14 = vld [vmem:[%s493_s26 + $0x68] sm:$0xff] }
  0x18   : > { %329 = vst.msk [vmem:[%s529_s5 + $0x8] sm:$0xff] %vm327_vm0, %v312_v36  ;;  %v316_v53 = vmax.f32 %v300_v43, 0.0  ;;  %v302_v55 = vadd.f32 %v286_v40, %v270_v45  ;;  %v271_v59 = vadd.f32 %v498_v1, %v251_v50  ;;  %v254_v62 = vmul.f32 %v479_v0, %v234_v46  ;;  %v293_v23 = vld [vmem:[%s493_s26 + $0x70] sm:$0xff]  ;;  %v294_v24 = vld [vmem:[%s493_s26 + $0x78] sm:$0xff] }
  0x19   : > { %330 = vst.msk [vmem:[%s529_s5 + $0x10] sm:$0xff] %vm327_vm0, %v313_v42  ;;  %v272_v60 = vadd.f32 %v498_v1, %v252_v51  ;;  %v255_v63 = vmul.f32 %v479_v0, %v235_v47  ;;  %v317_v4 = vmax.f32 %v301_v54, 0.0  ;;  %v273_v6 = vadd.f32 %v498_v1, %v253_v58 }
  0x1a   : > { %331 = vst.msk [vmem:[%s529_s5 + $0x18] sm:$0xff] %vm327_vm0, %v314_v48  ;;  %v318_v5 = vmax.f32 %v302_v55, 0.0  ;;  %v256_v9 = vmul.f32 %v479_v0, %v236_v52  ;;  %v303_v10 = vadd.f32 %v287_v56, %v271_v59  ;;  %v274_v12 = vadd.f32 %v498_v1, %v254_v62 }
  0x1b   : > { %332 = vst.msk [vmem:[%s529_s5 + $0x20] sm:$0xff] %vm327_vm0, %v315_v49  ;;  %v304_v11 = vadd.f32 %v288_v57, %v272_v60  ;;  %v275_v13 = vadd.f32 %v498_v1, %v255_v63  ;;  %v305_v15 = vadd.f32 %v289_v61, %v273_v6  ;;  %v257_v17 = vmul.f32 %v479_v0, %v237_v2 }
  0x1c   : > { %333 = vst.msk [vmem:[%s529_s5 + $0x28] sm:$0xff] %vm327_vm0, %v316_v53  ;;  %v276_v16 = vadd.f32 %v498_v1, %v256_v9  ;;  %v258_v18 = vmul.f32 %v479_v0, %v238_v3  ;;  %v319_v19 = vmax.f32 %v303_v10, 0.0  ;;  %v306_v21 = vadd.f32 %v290_v7, %v274_v12 }
  0x1d   : > { %334 = vst.msk [vmem:[%s529_s5 + $0x30] sm:$0xff] %vm327_vm0, %v317_v4  ;;  %v320_v20 = vmax.f32 %v304_v11, 0.0  ;;  %v307_v22 = vadd.f32 %v291_v8, %v275_v13  ;;  %v321_v25 = vmax.f32 %v305_v15, 0.0  ;;  %v277_v0 = vadd.f32 %v498_v1, %v257_v17 }
  0x1e   : > { %335 = vst.msk [vmem:[%s529_s5 + $0x38] sm:$0xff] %vm327_vm0, %v318_v5  ;;  %v308_v26 = vadd.f32 %v292_v14, %v276_v16  ;;  %v278_v27 = vadd.f32 %v498_v1, %v258_v18  ;;  %v322_v28 = vmax.f32 %v306_v21, 0.0 }
  0x1f   : > { %336 = vst.msk [vmem:[%s529_s5 + $0x40] sm:$0xff] %vm327_vm0, %v319_v19  ;;  %v323_v29 = vmax.f32 %v307_v22, 0.0  ;;  %v309_v31 = vadd.f32 %v293_v23, %v277_v0 }
  0x20   : > { %337 = vst.msk [vmem:[%s529_s5 + $0x48] sm:$0xff] %vm327_vm0, %v320_v20  ;;  %v324_v30 = vmax.f32 %v308_v26, 0.0  ;;  %v310_v32 = vadd.f32 %v294_v24, %v278_v27 }
  0x21   : > { %338 = vst.msk [vmem:[%s529_s5 + $0x50] sm:$0xff] %vm327_vm0, %v321_v25  ;;  %v325_v33 = vmax.f32 %v309_v31, 0.0 }
  0x22   : > { %339 = vst.msk [vmem:[%s529_s5 + $0x58] sm:$0xff] %vm327_vm0, %v322_v28  ;;  %v326_v34 = vmax.f32 %v310_v32, 0.0 }
  0x23   : > { %340 = vst.msk [vmem:[%s529_s5 + $0x60] sm:$0xff] %vm327_vm0, %v323_v29 }
  0x24   : > { %341 = vst.msk [vmem:[%s529_s5 + $0x68] sm:$0xff] %vm327_vm0, %v324_v30 }
  0x25   : > { %342 = vst.msk [vmem:[%s529_s5 + $0x70] sm:$0xff] %vm327_vm0, %v325_v33 }
  0x26   : > { %343 = vst.msk [vmem:[%s529_s5 + $0x78] sm:$0xff] %vm327_vm0, %v326_v34 }
  0x27 PF: > { %s14_s15 = sadd.s32 1, %s441_s15  }
  0x28   : > { %p11_p4 = scmp.ge.s32.totalorder %s14_s15, 6  }
  0x2a   :  { %13 = sbr.rel (!%p11_p4) target bundleno = 1 (0x1), region = 69 }

// kernel: bottleneck_forward.5
= control target key start
LH: loop header
LB: loop body
LE: loop exit
PB: predicated region body
PF: predicated region fallthrough
CT: control target
= control target key end

     0   :  { %s3552_s18 = smov 0   ;;  %s4791_s0 = inlined_call_operand.vmem [shape: f32[2,16,16,4], index: 0, kind: input, shape index: {}]   ;;  %s4792_s1 = inlined_call_operand.vmem [shape: f32[1,4], index: 1, kind: input, shape index: {}]   ;;  %s4793_s2 = inlined_call_operand.vmem [shape: f32[1,4], index: 2, kind: input, shape index: {}]   ;;  %s4794_s3 = inlined_call_operand.vmem [shape: f32[9,4,4], index: 3, kind: input, shape index: {}]   ;;  %s4795_s4 = inlined_call_operand.vmem [shape: f32[2,16,16,4], index: 4, kind: output, shape index: {0}]   ;;  %s4796_s5 = inlined_call_operand.vmem [shape: f32[2,2,4], index: 5, kind: output, shape index: {1}]  }
   0x1 LB: > { %s3178_s19 = sadd.s32 4294967295, %s3519_s18   ;;  %p3182_p0 = scmp.ge.s32.totalorder %s3519_s18, 1  ;;  %s3519_s18 = sphi %s3552_s18, %s16_s18  }
   0x2   : > { %p190_p1 = scmp.lt.s32.totalorder %s3519_s18, 3 }
   0x4   : > { %p191_p2 = pnand %p3182_p0, %p190_p1 }
   0x6   : > { %194 = sbr.rel (%p191_p2) target bundleno = 781 (0x30d), region = 36 }
   0xb   : > { %v3188_v0 = vld [vmem:[%s4794_s3 + $0x4] sm:$0xf]  ;;  %vm610_vm0 = vcmask 1043456   ;;  %p222_p3 = scmp.lt.s32.totalorder %s3178_s19, 1  ;;  %v3255_v1 = vld [vmem:[%s4794_s3 + $0x8] sm:$0xf] }
   0xc   : > { %3497 = vmatpush.msk.msra.mxu1 %vm610_vm0, %v3188_v0  ;;  %3498 = vmatpush.msk.msra.mxu2 %vm610_vm0, %v3188_v0  ;;  %v3289_v2 = vld [vmem:[%s4794_s3 + $0xc] sm:$0xf]  ;;  %v3578_v3 = vld [vmem:[%s4792_s1] ss:$0 sm:$0xff]  ;;  %vm372_vm1 = vcmask 31744   ;;  %v3521_v5 = vmov 0.0  }
   0xd   : > { %s4914_s19 = smov (!%p222_p3, %s3178_s19), 1  ;;  %3499 = vmatpush.msk.msra.mxu3 %vm610_vm0, %v3188_v0  ;;  %3189 = vmatpush.msk.msra.mxu0 %vm610_vm0, %v3188_v0  ;;  %v479_v4 = vld [vmem:[%s4794_s3] sm:$0xf]  ;;  %374 = vst.msk [vmem:[#allocation2 + $0x8] sm:$0xff] %vm372_vm1, %v3521_v5  ;;  %v3323_v31 = vld [vmem:[%s4794_s3 + $0x10] sm:$0xf] }
   0xe   : > { %3256 = vmatpush.msk.msrb.mxu2 %vm610_vm0, %v3255_v1  ;;  %s3495_s30 = sshll.u32 %s4914_s19, 8  ;;  %3222 = vmatpush.msk.msrb.mxu1 %vm610_vm0, %v479_v4  ;;  %v3599_v6 = vld [vmem:[%s4793_s2] ss:$0 sm:$0xff]  ;;  %373 = vst.msk [vmem:[#allocation2] sm:$0xff] %vm372_vm1, %v3521_v5  ;;  %vm3088_vm2 = vcmask 1040384   ;;  %vm3090_vm3 = vcmask 25600  }
   0xf   : > { %3290 = vmatpush.msk.msrb.mxu3 %vm610_vm0, %v3289_v2  ;;  %s3594_s8 = scalar_lea.vmem %s4791_s0, %s3495_s30  ;;  %375 = vst.msk [vmem:[#allocation2 + $0x10] sm:$0xff] %vm372_vm1, %v3521_v5  ;;  %3324 = vmatpush.msk.msrb.mxu0 %vm610_vm0, %v3323_v31  ;;  %s4554_s29 = scalar_lea.vmem %s4795_s4, %s3495_s30 }
  0x10   : > { %v244_v7 = vld [vmem:[%s3594_s8 + $0x30] sm:$0xff]  ;;  %v245_v13 = vld [vmem:[%s3594_s8 + $0x38] sm:$0xff]  ;;  %376 = vst.msk [vmem:[#allocation2 + $0x18] sm:$0xff] %vm372_vm1, %v3521_v5  ;;  %v246_v36 = vld [vmem:[%s3594_s8 + $0x40] sm:$0xff]  ;;  %s3187_s30 = sshll.u32 %s4914_s19, 1 }
  0x11   : > { %v252_v8 = vld [vmem:[%s3594_s8 + $0x70] sm:$0xff]  ;;  %v279_v10 = vmul.f32 %v3578_v3, %v244_v7  ;;  %v253_v14 = vld [vmem:[%s3594_s8 + $0x78] sm:$0xff]  ;;  %v280_v15 = vmul.f32 %v3578_v3, %v245_v13  ;;  %378 = vst.msk [vmem:[#allocation2 + $0x220] sm:$0xff] %vm372_vm1, %v3521_v5  ;;  %v254_v37 = vld [vmem:[%s3594_s8 + $0x80] sm:$0xff]  ;;  %v281_v40 = vmul.f32 %v3578_v3, %v246_v36 }
  0x12   : > { %v260_v9 = vld [vmem:[%s3594_s8 + $0xb0] sm:$0xff]  ;;  %v287_v11 = vmul.f32 %v3578_v3, %v252_v8  ;;  %v288_v16 = vmul.f32 %v3578_v3, %v253_v14  ;;  %379 = vst.msk [vmem:[#allocation2 + $0x228] sm:$0xff] %vm372_vm1, %v3521_v5  ;;  %v261_v35 = vld [vmem:[%s3594_s8 + $0xb8] sm:$0xff]  ;;  %v262_v39 = vld [vmem:[%s3594_s8 + $0xc0] sm:$0xff]  ;;  %v289_v42 = vmul.f32 %v3578_v3, %v254_v37 }
  0x13   : > { %v295_v12 = vmul.f32 %v3578_v3, %v260_v9  ;;  %v314_v17 = vadd.f32 %v3599_v6, %v279_v10  ;;  %v315_v20 = vadd.f32 %v3599_v6, %v280_v15  ;;  %380 = vst.msk [vmem:[#allocation2 + $0x230] sm:$0xff] %vm372_vm1, %v3521_v5  ;;  %v296_v38 = vmul.f32 %v3578_v3, %v261_v35  ;;  %v247_v41 = vld [vmem:[%s3594_s8 + $0x48] sm:$0xff]  ;;  %v238_v45 = vld [vmem:[%s3594_s8] sm:$0xff]  ;;  %v248_v51 = vld [vmem:[%s3594_s8 + $0x50] sm:$0xff] }
  0x14   : > { %v322_v18 = vadd.f32 %v3599_v6, %v287_v11  ;;  %v323_v21 = vadd.f32 %v3599_v6, %v288_v16  ;;  %v480_v25 = vld [vmem:[#allocation2 + $0x8] sm:$0xff]  ;;  %381 = vst.msk [vmem:[#allocation2 + $0x238] sm:$0xff] %vm372_vm1, %v3521_v5  ;;  %v297_v44 = vmul.f32 %v3578_v3, %v262_v39  ;;  %v282_v47 = vmul.f32 %v3578_v3, %v247_v41  ;;  %v256_v54 = vld [vmem:[%s3594_s8 + $0x90] sm:$0xff]  ;;  %v249_v1 = vld [vmem:[%s3594_s8 + $0x58] sm:$0xff] }
  0x15   : > { %v330_v19 = vadd.f32 %v3599_v6, %v295_v12  ;;  %v346_v22 = vmax.f32 %v314_v17, 0.0  ;;  %v347_v26 = vmax.f32 %v315_v20, 0.0  ;;  %3190 = vmatmul.msk.f32.vlgmr.msra.gmra.mxu0 %vm372_vm1, %v480_v25  ;;  %383 = vst.msk [vmem:[#allocation2 + $0x20] sm:$0xff] %vm372_vm1, %v3521_v5  ;;  %v255_v43 = vld [vmem:[%s3594_s8 + $0x88] sm:$0xff]  ;;  %v331_v46 = vadd.f32 %v3599_v6, %v296_v38  ;;  %v264_v61 = vld [vmem:[%s3594_s8 + $0xd0] sm:$0xff]  ;;  %v257_v8 = vld [vmem:[%s3594_s8 + $0x98] sm:$0xff] }
  0x16   : > { %v354_v23 = vmax.f32 %v322_v18, 0.0  ;;  %v355_v27 = vmax.f32 %v323_v21, 0.0  ;;  %384 = vst.msk [vmem:[#allocation2 + $0x40] sm:$0xff] %vm372_vm1, %v3521_v5  ;;  %v481_v34 = vld [vmem:[#allocation2 + $0x10] sm:$0xff]  ;;  %v263_v48 = vld [vmem:[%s3594_s8 + $0xc8] sm:$0xff]  ;;  %v316_v49 = vadd.f32 %v3599_v6, %v281_v40  ;;  %v290_v50 = vmul.f32 %v3578_v3, %v255_v43  ;;  %v265_v16 = vld [vmem:[%s3594_s8 + $0xd8] sm:$0xff] }
  0x17   : > { %v362_v24 = vmax.f32 %v330_v19, 0.0  ;;  %421 = vst.msk [vmem:[#allocation2 + $0x88] sm:$0xff] %vm372_vm1, %v346_v22  ;;  %v324_v52 = vadd.f32 %v3599_v6, %v289_v42  ;;  %v273_v53 = vmul.f32 %v3578_v3, %v238_v45  ;;  %v332_v55 = vadd.f32 %v3599_v6, %v297_v44  ;;  %v239_v57 = vld [vmem:[%s3594_s8 + $0x8] sm:$0xff]  ;;  %v240_v12 = vld [vmem:[%s3594_s8 + $0x10] sm:$0xff]  ;;  %v250_v19 = vld [vmem:[%s3594_s8 + $0x60] sm:$0xff] }
  0x18   : > { %429 = vst.msk [vmem:[#allocation2 + $0x108] sm:$0xff] %vm372_vm1, %v354_v23  ;;  %v298_v56 = vmul.f32 %v3578_v3, %v263_v48  ;;  %v363_v58 = vmax.f32 %v331_v46, 0.0  ;;  %v317_v59 = vadd.f32 %v3599_v6, %v282_v47  ;;  %v283_v60 = vmul.f32 %v3578_v3, %v248_v51  ;;  %v258_v23 = vld [vmem:[%s3594_s8 + $0xa0] sm:$0xff]  ;;  %v251_v46 = vld [vmem:[%s3594_s8 + $0x68] sm:$0xff] }
  0x19   : > { %437 = vst.msk [vmem:[#allocation2 + $0x188] sm:$0xff] %vm372_vm1, %v362_v24  ;;  %v348_v62 = vmax.f32 %v316_v49, 0.0  ;;  %v325_v63 = vadd.f32 %v3599_v6, %v290_v50  ;;  %v291_v0 = vmul.f32 %v3578_v3, %v256_v54  ;;  %v356_v2 = vmax.f32 %v324_v52, 0.0  ;;  %v266_v35 = vld [vmem:[%s3594_s8 + $0xe0] sm:$0xff]  ;;  %v259_v47 = vld [vmem:[%s3594_s8 + $0xa8] sm:$0xff] }
  0x1a   : > { %422 = vst.msk [vmem:[#allocation2 + $0x90] sm:$0xff] %vm372_vm1, %v347_v26  ;;  %v308_v4 = vadd.f32 %v3599_v6, %v273_v53  ;;  %v274_v7 = vmul.f32 %v3578_v3, %v239_v57  ;;  %v364_v9 = vmax.f32 %v332_v55, 0.0  ;;  %v333_v10 = vadd.f32 %v3599_v6, %v298_v56  ;;  %v242_v56 = vld [vmem:[%s3594_s8 + $0x20] sm:$0xff]  ;;  %v267_v57 = vld [vmem:[%s3594_s8 + $0xe8] sm:$0xff] }
  0x1b   : > { %430 = vst.msk [vmem:[#allocation2 + $0x110] sm:$0xff] %vm372_vm1, %v355_v27  ;;  %v299_v11 = vmul.f32 %v3578_v3, %v264_v61  ;;  %v349_v13 = vmax.f32 %v317_v59, 0.0  ;;  %v318_v14 = vadd.f32 %v3599_v6, %v283_v60  ;;  %v284_v15 = vmul.f32 %v3578_v3, %v249_v1  ;;  %v241_v27 = vld [vmem:[%s3594_s8 + $0x18] sm:$0xff] }
  0x1c   : > { %385 = vst.msk [vmem:[#allocation2 + $0x60] sm:$0xff] %vm372_vm1, %v3521_v5  ;;  %v357_v17 = vmax.f32 %v325_v63, 0.0  ;;  %v292_v18 = vmul.f32 %v3578_v3, %v257_v8  ;;  %v340_v20 = vmax.f32 %v308_v4, 0.0  ;;  %v309_v21 = vadd.f32 %v3599_v6, %v274_v7 }
  0x1d   : > { %386 = vst.msk [vmem:[#allocation2 + $0x80] sm:$0xff] %vm372_vm1, %v3521_v5  ;;  %3191 = vmatmul.msk.f32.gmra.mxu0 %vm372_vm1, %v481_v34  ;;  %v275_v22 = vmul.f32 %v3578_v3, %v240_v12  ;;  %v365_v24 = vmax.f32 %v333_v10, 0.0  ;;  %v334_v25 = vadd.f32 %v3599_v6, %v299_v11  ;;  %v300_v26 = vmul.f32 %v3578_v3, %v265_v16 }
  0x1e   : > { %v3642_v28 = vld [vmem:[#allocation2 + $0x88] sm:$0xff]  ;;  %387 = vst.msk [vmem:[#allocation2 + $0xa0] sm:$0xff] %vm372_vm1, %v3521_v5  ;;  %v319_v31 = vadd.f32 %v3599_v6, %v284_v15  ;;  %v285_v34 = vmul.f32 %v3578_v3, %v250_v19  ;;  %v327_v37 = vadd.f32 %v3599_v6, %v292_v18  ;;  %v293_v38 = vmul.f32 %v3578_v3, %v258_v23 }
  0x1f   : > { %3198 = vmatmul.msk.f32.vlgmr.msra.gmra.mxu1 %vm372_vm1, %v3642_v28  ;;  %v3648_v29 = vld [vmem:[#allocation2 + $0x108] sm:$0xff]  ;;  %388 = vst.msk [vmem:[#allocation2 + $0xc0] sm:$0xff] %vm372_vm1, %v3521_v5  ;;  %v341_v39 = vmax.f32 %v309_v21, 0.0  ;;  %v310_v40 = vadd.f32 %v3599_v6, %v275_v22  ;;  %v276_v41 = vmul.f32 %v3578_v3, %v241_v27  ;;  %v366_v43 = vmax.f32 %v334_v25, 0.0 }
  0x20   : > { %3206 = vmatmul.msk.f32.vlgmr.msra.gmra.mxu2 %vm372_vm1, %v3648_v29  ;;  %v504_v30 = vld [vmem:[#allocation2 + $0x188] sm:$0xff]  ;;  %389 = vst.msk [vmem:[#allocation2 + $0xe0] sm:$0xff] %vm372_vm1, %v3521_v5  ;;  %v335_v44 = vadd.f32 %v3599_v6, %v300_v26  ;;  %v301_v45 = vmul.f32 %v3578_v3, %v266_v35  ;;  %v351_v49 = vmax.f32 %v319_v31, 0.0  ;;  %v320_v50 = vadd.f32 %v3599_v6, %v285_v34  ;;  %v3425_v31 = vld [vmem:[%s4794_s3 + $0x1c] sm:$0xf] }
  0x21   : > { %3214 = vmatmul.msk.f32.vlgmr.msra.gmra.mxu3 %vm372_vm1, %v504_v30  ;;  %390 = vst.msk [vmem:[#allocation2 + $0x100] sm:$0xff] %vm372_vm1, %v3521_v5  ;;  %v3666_v32 = vld [vmem:[#allocation2 + $0x90] sm:$0xff]  ;;  %v350_v30 = vmax.f32 %v318_v14, 0.0  ;;  %v286_v51 = vmul.f32 %v3578_v3, %v251_v46  ;;  %v359_v53 = vmax.f32 %v327_v37, 0.0  ;;  %v328_v54 = vadd.f32 %v3599_v6, %v293_v38 }
  0x22   : > { %391 = vst.msk [vmem:[#allocation2 + $0x120] sm:$0xff] %vm372_vm1, %v3521_v5  ;;  %v3671_v33 = vld [vmem:[#allocation2 + $0x110] sm:$0xff]  ;;  %v294_v55 = vmul.f32 %v3578_v3, %v259_v47  ;;  %v311_v59 = vadd.f32 %v3599_v6, %v276_v41  ;;  %v277_v60 = vmul.f32 %v3578_v3, %v242_v56  ;;  %v367_v61 = vmax.f32 %v335_v44, 0.0  ;;  %3426 = vmatpush.msk.msra.mxu3 %vm610_vm0, %v3425_v31  ;;  %v447_v47 = vld [vmem:[#allocation2 + $0x7] sm:$0xff] }
  0x23   : > { %392 = vst.msk [vmem:[#allocation2 + $0x140] sm:$0xff] %vm372_vm1, %v3521_v5  ;;  %v302_v63 = vmul.f32 %v3578_v3, %v267_v57  ;;  %v321_v1 = vadd.f32 %v3599_v6, %v286_v51  ;;  %v360_v7 = vmax.f32 %v328_v54, 0.0  ;;  %v3357_v34 = vld [vmem:[%s4794_s3 + $0x14] sm:$0xf] }
  0x24   : > { %393 = vst.msk [vmem:[#allocation2 + $0x160] sm:$0xff] %vm372_vm1, %v3521_v5  ;;  %v329_v8 = vadd.f32 %v3599_v6, %v294_v55  ;;  %v343_v10 = vmax.f32 %v311_v59, 0.0  ;;  %v312_v11 = vadd.f32 %v3599_v6, %v277_v60  ;;  %3358 = vmatpush.msk.msra.mxu1 %vm610_vm0, %v3357_v34  ;;  %v448_v51 = vld [vmem:[#allocation2 + $0xf] sm:$0xff] }
  0x25   : > { %394 = vst.msk [vmem:[#allocation2 + $0x180] sm:$0xff] %vm372_vm1, %v3521_v5  ;;  %v337_v14 = vadd.f32 %v3599_v6, %v302_v63  ;;  %v353_v15 = vmax.f32 %v321_v1, 0.0 }
  0x26   : > { %395 = vst.msk [vmem:[#allocation2 + $0x1a0] sm:$0xff] %vm372_vm1, %v3521_v5  ;;  %v361_v16 = vmax.f32 %v329_v8, 0.0  ;;  %v4018_v8 = vld [vmem:[#allocation2 + $0x89] sm:$0xff] }
  0x27   : > { %3199 = vmatmul.msk.f32.gmra.mxu1 %vm372_vm1, %v3666_v32  ;;  %396 = vst.msk [vmem:[#allocation2 + $0x1c0] sm:$0xff] %vm372_vm1, %v3521_v5 }
  0x28   : > { %3207 = vmatmul.msk.f32.gmra.mxu2 %vm372_vm1, %v3671_v33  ;;  %397 = vst.msk [vmem:[#allocation2 + $0x1e0] sm:$0xff] %vm372_vm1, %v3521_v5 }
  0x29   : > { %398 = vst.msk [vmem:[#allocation2 + $0x200] sm:$0xff] %vm372_vm1, %v3521_v5 }
  0x2a   : > { %399 = vst.msk [vmem:[#allocation2 + $0x38] sm:$0xff] %vm372_vm1, %v3521_v5 }
  0x2b   : > { %400 = vst.msk [vmem:[#allocation2 + $0x58] sm:$0xff] %vm372_vm1, %v3521_v5 }
  0x2c   : > { %401 = vst.msk [vmem:[#allocation2 + $0x78] sm:$0xff] %vm372_vm1, %v3521_v5 }
  0x2d   : > { %402 = vst.msk [vmem:[#allocation2 + $0x98] sm:$0xff] %vm372_vm1, %v3521_v5 }
  0x2e   : > { %403 = vst.msk [vmem:[#allocation2 + $0xb8] sm:$0xff] %vm372_vm1, %v3521_v5 }
  0x2f   : > { %404 = vst.msk [vmem:[#allocation2 + $0xd8] sm:$0xff] %vm372_vm1, %v3521_v5 }
  0x30   : > { %405 = vst.msk [vmem:[#allocation2 + $0xf8] sm:$0xff] %vm372_vm1, %v3521_v5 }
  0x31   : > { %406 = vst.msk [vmem:[#allocation2 + $0x118] sm:$0xff] %vm372_vm1, %v3521_v5 }
  0x32   : > { %407 = vst.msk [vmem:[#allocation2 + $0x138] sm:$0xff] %vm372_vm1, %v3521_v5 }
  0x33   : > { %408 = vst.msk [vmem:[#allocation2 + $0x158] sm:$0xff] %vm372_vm1, %v3521_v5 }
  0x34   : > { %409 = vst.msk [vmem:[#allocation2 + $0x178] sm:$0xff] %vm372_vm1, %v3521_v5 }
  0x35   : > { %410 = vst.msk [vmem:[#allocation2 + $0x198] sm:$0xff] %vm372_vm1, %v3521_v5 }
  0x36   : > { %411 = vst.msk [vmem:[#allocation2 + $0x1b8] sm:$0xff] %vm372_vm1, %v3521_v5 }
  0x37   : > { %412 = vst.msk [vmem:[#allocation2 + $0x1d8] sm:$0xff] %vm372_vm1, %v3521_v5 }
  0x38   : > { %413 = vst.msk [vmem:[#allocation2 + $0x1f8] sm:$0xff] %vm372_vm1, %v3521_v5 }
  0x39   : > { %414 = vst.msk [vmem:[#allocation2 + $0x218] sm:$0xff] %vm372_vm1, %v3521_v5  ;;  %v326_v5 = vadd.f32 %v3599_v6, %v291_v0  ;;  %v352_v0 = vmax.f32 %v320_v50, 0.0 }
  0x3a   : > { %438 = vst.msk [vmem:[#allocation2 + $0x190] sm:$0xff] %vm372_vm1, %v363_v58  ;;  %v342_v58 = vmax.f32 %v310_v40, 0.0 }
  0x3b   : > { %423 = vst.msk [vmem:[#allocation2 + $0xa8] sm:$0xff] %vm372_vm1, %v348_v62  ;;  %v358_v36 = vmax.f32 %v326_v5, 0.0  ;;  %v336_v62 = vadd.f32 %v3599_v6, %v301_v45  ;;  %v344_v5 = vmax.f32 %v312_v11, 0.0 }
  0x3c   : > { %431 = vst.msk [vmem:[#allocation2 + $0x128] sm:$0xff] %vm372_vm1, %v356_v2 }
  0x3d   : > { %439 = vst.msk [vmem:[#allocation2 + $0x1a8] sm:$0xff] %vm372_vm1, %v364_v9 }
  0x3e   : > { %424 = vst.msk [vmem:[#allocation2 + $0xb0] sm:$0xff] %vm372_vm1, %v349_v13  ;;  %v368_v13 = vmax.f32 %v336_v62, 0.0 }
  0x3f   : > { %432 = vst.msk [vmem:[#allocation2 + $0x130] sm:$0xff] %vm372_vm1, %v357_v17  ;;  %v243_v17 = vld [vmem:[%s3594_s8 + $0x28] sm:$0xff] }
  0x40   : > { %415 = vst.msk [vmem:[#allocation2 + $0x28] sm:$0xff] %vm372_vm1, %v340_v20  ;;  %v278_v18 = vmul.f32 %v3578_v3, %v243_v17  ;;  %v369_v20 = vmax.f32 %v337_v14, 0.0 }
  0x41   : > { %v3783_v42 = vld [vmem:[#allocation2 + $0x190] sm:$0xff]  ;;  %440 = vst.msk [vmem:[#allocation2 + $0x1b0] sm:$0xff] %vm372_vm1, %v365_v24 }
  0x42   : > { %3215 = vmatmul.msk.f32.gmra.mxu3 %vm372_vm1, %v3783_v42  ;;  %v3792_v48 = vld [vmem:[#allocation2 + $0xa8] sm:$0xff]  ;;  %425 = vst.msk [vmem:[#allocation2 + $0xc8] sm:$0xff] %vm372_vm1, %v350_v30  ;;  %v313_v21 = vadd.f32 %v3599_v6, %v278_v18  ;;  %v3391_v6 = vld [vmem:[%s4794_s3 + $0x18] sm:$0xf] }
  0x43   : > { %3200 = vmatmul.msk.f32.gmra.mxu1 %vm372_vm1, %v3792_v48  ;;  %v3799_v52 = vld [vmem:[#allocation2 + $0x128] sm:$0xff]  ;;  %433 = vst.msk [vmem:[#allocation2 + $0x148] sm:$0xff] %vm372_vm1, %v358_v36  ;;  %3392 = vmatpush.msk.msra.mxu2 %vm610_vm0, %v3391_v6 }
  0x44   : > { %3208 = vmatmul.msk.f32.gmra.mxu2 %vm372_vm1, %v3799_v52  ;;  %416 = vst.msk [vmem:[#allocation2 + $0x30] sm:$0xff] %vm372_vm1, %v341_v39  ;;  %v3816_v2 = vld [vmem:[#allocation2 + $0x1a8] sm:$0xff]  ;;  %v345_v3 = vmax.f32 %v313_v21, 0.0  ;;  %v3459_v39 = vld [vmem:[%s4794_s3 + $0x20] sm:$0xf] }
  0x45   : > { %441 = vst.msk [vmem:[#allocation2 + $0x1c8] sm:$0xff] %vm372_vm1, %v366_v43  ;;  %v3822_v9 = vld [vmem:[#allocation2 + $0xb0] sm:$0xff]  ;;  %3460 = vmatpush.msk.msra.mxu0 %vm610_vm0, %v3459_v39 }
  0x46   : > { %426 = vst.msk [vmem:[#allocation2 + $0xd0] sm:$0xff] %vm372_vm1, %v351_v49  ;;  %v3828_v12 = vld [vmem:[#allocation2 + $0x130] sm:$0xff] }
  0x47   : > { %v3818_v4 = vld [vmem:[#allocation2 + $0x28] sm:$0xff]  ;;  %434 = vst.msk [vmem:[#allocation2 + $0x150] sm:$0xff] %vm372_vm1, %v359_v53  ;;  %v940_v53 = vld [vmem:[#allocation2 + $0x11] sm:$0xff] }
  0x48   : > { %3192 = vmatmul.msk.f32.gmra.mxu0 %vm372_vm1, %v3818_v4  ;;  %417 = vst.msk [vmem:[#allocation2 + $0x48] sm:$0xff] %vm372_vm1, %v342_v58  ;;  %v3848_v22 = vld [vmem:[#allocation2 + $0x1b0] sm:$0xff]  ;;  %v1217_v50 = vld [vmem:[#allocation2 + $0x27] sm:$0xff] }
  0x49   : > { %442 = vst.msk [vmem:[#allocation2 + $0x1d0] sm:$0xff] %vm372_vm1, %v367_v61  ;;  %v3851_v23 = vld [vmem:[#allocation2 + $0xc8] sm:$0xff] }
  0x4a   : > { %3216 = vmatmul.msk.f32.gmra.mxu3 %vm372_vm1, %v3816_v2  ;;  %427 = vst.msk [vmem:[#allocation2 + $0xe8] sm:$0xff] %vm372_vm1, %v352_v0  ;;  %v3856_v24 = vld [vmem:[#allocation2 + $0x148] sm:$0xff] }
  0x4b   : > { %3201 = vmatmul.msk.f32.gmra.mxu1 %vm372_vm1, %v3822_v9  ;;  %435 = vst.msk [vmem:[#allocation2 + $0x168] sm:$0xff] %vm372_vm1, %v360_v7  ;;  %v3843_v19 = vld [vmem:[#allocation2 + $0x30] sm:$0xff]  ;;  %v4000_v0 = vld [vmem:[#allocation2 + $0x87] sm:$0xff] }
  0x4c   : > { %3209 = vmatmul.msk.f32.gmra.mxu2 %vm372_vm1, %v3828_v12  ;;  %418 = vst.msk [vmem:[#allocation2 + $0x50] sm:$0xff] %vm372_vm1, %v343_v10  ;;  %v3872_v26 = vld [vmem:[#allocation2 + $0x1c8] sm:$0xff]  ;;  %v3957_v57 = vld [vmem:[#allocation2 + $0x31] sm:$0xff] }
  0x4d   : > { %443 = vst.msk [vmem:[#allocation2 + $0x1e8] sm:$0xff] %vm372_vm1, %v368_v13  ;;  %v3874_v27 = vld [vmem:[#allocation2 + $0xd0] sm:$0xff]  ;;  %v4032_v13 = vld [vmem:[#allocation2 + $0xa7] sm:$0xff] }
  0x4e   : > { %428 = vst.msk [vmem:[#allocation2 + $0xf0] sm:$0xff] %vm372_vm1, %v353_v15  ;;  %v3878_v30 = vld [vmem:[#allocation2 + $0x150] sm:$0xff] }
  0x4f   : > { %436 = vst.msk [vmem:[#allocation2 + $0x170] sm:$0xff] %vm372_vm1, %v361_v16  ;;  %v3869_v25 = vld [vmem:[#allocation2 + $0x48] sm:$0xff] }
  0x50   : > { %3193 = vmatmul.msk.f32.gmra.mxu0 %vm372_vm1, %v3843_v19  ;;  %419 = vst.msk [vmem:[#allocation2 + $0x68] sm:$0xff] %vm372_vm1, %v344_v5  ;;  %v3896_v36 = vld [vmem:[#allocation2 + $0x1d0] sm:$0xff]  ;;  %v3953_v56 = vld [vmem:[#allocation2 + $0x47] sm:$0xff] }
  0x51   : > { %444 = vst.msk [vmem:[#allocation2 + $0x1f0] sm:$0xff] %vm372_vm1, %v369_v20  ;;  %v3898_v37 = vld [vmem:[#allocation2 + $0xe8] sm:$0xff] }
  0x52   : > { %3217 = vmatmul.msk.f32.gmra.mxu3 %vm372_vm1, %v3848_v22  ;;  %420 = vst.msk [vmem:[#allocation2 + $0x70] sm:$0xff] %vm372_vm1, %v345_v3  ;;  %v3902_v38 = vld [vmem:[#allocation2 + $0x168] sm:$0xff]  ;;  %v4076_v3 = vld [vmem:[#allocation2 + $0xb1] sm:$0xff] }
  0x53   : > { %3202 = vmatmul.msk.f32.gmra.mxu1 %vm372_vm1, %v3851_v23  ;;  %v3894_v35 = vld [vmem:[#allocation2 + $0x50] sm:$0xff]  ;;  %4830 = vst [vmem:[#allocation4_spill] sm:$0xff] %v4018_v8  ;;  %v4068_v20 = vld [vmem:[#allocation2 + $0xc7] sm:$0xff] }
  0x54   : > { %3210 = vmatmul.msk.f32.gmra.mxu2 %vm372_vm1, %v3856_v24  ;;  %v3916_v41 = vld [vmem:[#allocation2 + $0x1e8] sm:$0xff]  ;;  %v3980_v61 = vld [vmem:[#allocation2 + $0x51] sm:$0xff]  ;;  %4831 = vst [vmem:[#allocation5_spill] sm:$0xff] %v4032_v13 }
  0x55   : > { %v3918_v43 = vld [vmem:[#allocation2 + $0xf0] sm:$0xff]  ;;  %4837 = vst [vmem:[#allocation11_spill] sm:$0xff] %v4068_v20 }
  0x56   : > { %v3922_v44 = vld [vmem:[#allocation2 + $0x170] sm:$0xff]  ;;  %4838 = vst [vmem:[#allocation12_spill] sm:$0xff] %v4076_v3 }
  0x57   : > { %v3914_v40 = vld [vmem:[#allocation2 + $0x68] sm:$0xff] }
  0x58   : > { %3194 = vmatmul.msk.f32.gmra.mxu0 %vm372_vm1, %v3869_v25  ;;  %v3932_v46 = vld [vmem:[#allocation2 + $0x1f0] sm:$0xff]  ;;  %v3976_v60 = vld [vmem:[#allocation2 + $0x67] sm:$0xff] }
  0x59   : > { %v3930_v45 = vld [vmem:[#allocation2 + $0x70] sm:$0xff] }
  0x5a   : > { %3218 = vmatmul.msk.f32.gmra.mxu3 %vm372_vm1, %v3872_v26  ;;  %v939_v49 = vld [vmem:[#allocation2 + $0x9] sm:$0xff]  ;;  %v4004_v1 = vld [vmem:[#allocation2 + $0x71] sm:$0xff] }
  0x5b   : > { %3203 = vmatmul.msk.f32.gmra.mxu1 %vm372_vm1, %v3874_v27  ;;  %v1218_v54 = vld [vmem:[#allocation2 + $0x2f] sm:$0xff] }
  0x5c   : > { %3211 = vmatmul.msk.f32.gmra.mxu2 %vm372_vm1, %v3878_v30  ;;  %v3947_v55 = vld [vmem:[#allocation2 + $0x29] sm:$0xff] }
  0x5d   : > { %v3964_v58 = vld [vmem:[#allocation2 + $0x4f] sm:$0xff] }
  0x5e   : > { %v3968_v59 = vld [vmem:[#allocation2 + $0x49] sm:$0xff] }
  0x5f   : > { %v3988_v62 = vld [vmem:[#allocation2 + $0x6f] sm:$0xff] }
  0x60   : > { %3195 = vmatmul.msk.f32.gmra.mxu0 %vm372_vm1, %v3894_v35  ;;  %v3992_v63 = vld [vmem:[#allocation2 + $0x69] sm:$0xff] }
  0x61   : > { %v4014_v7 = vld [vmem:[#allocation2 + $0x8f] sm:$0xff] }
  0x62   : > { %3219 = vmatmul.msk.f32.gmra.mxu3 %vm372_vm1, %v3896_v36  ;;  %4829 = vst [vmem:[#allocation3_spill] sm:$0xff] %v4014_v7  ;;  %v4050_v17 = vld [vmem:[#allocation2 + $0xaf] sm:$0xff] }
  0x63   : > { %3204 = vmatmul.msk.f32.gmra.mxu1 %vm372_vm1, %v3898_v37  ;;  %4834 = vst [vmem:[#allocation8_spill] sm:$0xff] %v4050_v17  ;;  %v4056_v5 = vld [vmem:[#allocation2 + $0xa9] sm:$0xff] }
  0x64   : > { %3212 = vmatmul.msk.f32.gmra.mxu2 %vm372_vm1, %v3902_v38  ;;  %4835 = vst [vmem:[#allocation9_spill] sm:$0xff] %v4056_v5  ;;  %v4088_v34 = vld [vmem:[#allocation2 + $0xcf] sm:$0xff] }
  0x65   : > { %4840 = vst [vmem:[#allocation14_spill] sm:$0xff] %v4088_v34 }
  0x68   : > { %3196 = vmatmul.msk.f32.gmra.mxu0 %vm372_vm1, %v3914_v40 }
  0x6a   : > { %3220 = vmatmul.msk.f32.gmra.mxu3 %vm372_vm1, %v3916_v41 }
  0x6b   : > { %3205 = vmatmul.msk.f32.gmra.mxu1 %vm372_vm1, %v3918_v43 }
  0x6c   : > { %3213 = vmatmul.msk.f32.gmra.mxu2 %vm372_vm1, %v3922_v44 }
  0x70   : > { %3197 = vmatmul.msk.f32.gmra.mxu0 %vm372_vm1, %v3930_v45 }
  0x72   : > { %3221 = vmatmul.msk.f32.gmra.mxu3 %vm372_vm1, %v3932_v46 }
  0x73   : > { %3223 = vmatmul.msk.f32.vlgmr.msrb.gmra.mxu1 %vm372_vm1, %v447_v47  ;;  %v4096_v47 = vld [vmem:[#allocation2 + $0xc9] sm:$0xff] }
  0x74   : > { %3257 = vmatmul.msk.f32.vlgmr.msrb.gmra.mxu2 %vm372_vm1, %v939_v49  ;;  %4841 = vst [vmem:[#allocation15_spill] sm:$0xff] %v4096_v47 }
  0x78   : > { %3325 = vmatmul.msk.f32.vlgmr.msrb.gmra.mxu0 %vm372_vm1, %v3818_v4 }
  0x7a   : > { %3291 = vmatmul.msk.f32.vlgmr.msrb.gmra.mxu3 %vm372_vm1, %v1217_v50 }
  0x7b   : > { %3224 = vmatmul.msk.f32.gmra.mxu1 %vm372_vm1, %v448_v51  ;;  %v4108_v51 = vld [vmem:[#allocation2 + $0xe7] sm:$0xff] }
  0x7c   : > { %3258 = vmatmul.msk.f32.gmra.mxu2 %vm372_vm1, %v940_v53  ;;  %4843 = vst [vmem:[#allocation17_spill] sm:$0xff] %v4108_v51 }
  0x80   : > { %3326 = vmatmul.msk.f32.gmra.mxu0 %vm372_vm1, %v3843_v19 }
  0x82   : > { %3292 = vmatmul.msk.f32.gmra.mxu3 %vm372_vm1, %v1218_v54 }
  0x83   : > { %3225 = vmatmul.msk.f32.gmra.mxu1 %vm372_vm1, %v1217_v50 }
  0x84   : > { %3259 = vmatmul.msk.f32.gmra.mxu2 %vm372_vm1, %v3947_v55 }
  0x88   : > { %3327 = vmatmul.msk.f32.gmra.mxu0 %vm372_vm1, %v3869_v25 }
  0x8a   : > { %3293 = vmatmul.msk.f32.gmra.mxu3 %vm372_vm1, %v3953_v56 }
  0x8b   : > { %3226 = vmatmul.msk.f32.gmra.mxu1 %vm372_vm1, %v1218_v54  ;;  %v4116_v54 = vld [vmem:[#allocation2 + $0xd1] sm:$0xff] }
  0x8c   : > { %3260 = vmatmul.msk.f32.gmra.mxu2 %vm372_vm1, %v3957_v57  ;;  %4844 = vst [vmem:[#allocation18_spill] sm:$0xff] %v4116_v54 }
  0x90   : > { %3328 = vmatmul.msk.f32.gmra.mxu0 %vm372_vm1, %v3894_v35 }
  0x92   : > { %3294 = vmatmul.msk.f32.gmra.mxu3 %vm372_vm1, %v3964_v58 }
  0x93   : > { %3227 = vmatmul.msk.f32.gmra.mxu1 %vm372_vm1, %v3953_v56 }
  0x94   : > { %3261 = vmatmul.msk.f32.gmra.mxu2 %vm372_vm1, %v3968_v59 }
  0x98   : > { %3329 = vmatmul.msk.f32.gmra.mxu0 %vm372_vm1, %v3914_v40 }
  0x9a   : > { %3295 = vmatmul.msk.f32.gmra.mxu3 %vm372_vm1, %v3976_v60 }
  0x9b   : > { %3228 = vmatmul.msk.f32.gmra.mxu1 %vm372_vm1, %v3964_v58 }
  0x9c   : > { %3262 = vmatmul.msk.f32.gmra.mxu2 %vm372_vm1, %v3980_v61  ;;  %v4012_v4 = vpop.f32.mrf.mxu1 }
  0xa0   : > { %3330 = vmatmul.msk.f32.gmra.mxu0 %vm372_vm1, %v3930_v45 }
  0xa2   : > { %3296 = vmatmul.msk.f32.gmra.mxu3 %vm372_vm1, %v3988_v62 }
  0xa3   : > { %3229 = vmatmul.msk.f32.gmra.mxu1 %vm372_vm1, %v3976_v60  ;;  %v4026_v10 = vpop.f32.mrf.mxu2 }
  0xa4   : > { %3263 = vmatmul.msk.f32.gmra.mxu2 %vm372_vm1, %v3992_v63  ;;  %v4030_v11 = vpop.f32.mrf.mxu1  ;;  %v4040_v14 = vpop.f32.mrf.mxu3 }
  0xa5   : > { %4833 = vst [vmem:[#allocation7_spill] sm:$0xff] %v4040_v14  ;;  %v4136_v14 = vld [vmem:[#allocation2 + $0xe9] sm:$0xff] }
  0xa6   : > { %4848 = vst [vmem:[#allocation22_spill] sm:$0xff] %v4136_v14 }
  0xa8   : > { %3331 = vmatmul.msk.f32.gmra.mxu0 %vm372_vm1, %v3642_v28  ;;  %v4020_v28 = vpop.f32.mrf.mxu0 }
  0xaa   : > { %3297 = vmatmul.msk.f32.gmra.mxu3 %vm372_vm1, %v4000_v0 }
  0xab   : > { %3230 = vmatmul.msk.f32.gmra.mxu1 %vm372_vm1, %v3988_v62  ;;  %v4048_v16 = vpop.f32.mrf.mxu2 }
  0xac   : > { %3264 = vmatmul.msk.f32.gmra.mxu2 %vm372_vm1, %v4004_v1 }
  0xb0   : > { %3332 = vmatmul.msk.f32.gmra.mxu0 %vm372_vm1, %v3666_v32  ;;  %v4036_v32 = vld [vmem:[#allocation2 + $0x91] sm:$0xff]  ;;  %v4044_v15 = vpop.f32.mrf.mxu0 }
  0xb1   : > { %4832 = vst [vmem:[#allocation6_spill] sm:$0xff] %v4036_v32 }
  0xb2   : > { %3298 = vmatmul.msk.f32.gmra.mxu3 %vm372_vm1, %v4014_v7 }
  0xb3   : > { %3231 = vmatmul.msk.f32.gmra.mxu1 %vm372_vm1, %v4000_v0 }
  0xb4   : > { %3265 = vmatmul.msk.f32.gmra.mxu2 %vm372_vm1, %v4018_v8 }
  0xb8   : > { %3333 = vmatmul.msk.f32.gmra.mxu0 %vm372_vm1, %v3792_v48 }
  0xba   : > { %3299 = vmatmul.msk.f32.gmra.mxu3 %vm372_vm1, %v4032_v13 }
  0xbb   : > { %3232 = vmatmul.msk.f32.gmra.mxu1 %vm372_vm1, %v4014_v7 }
  0xbc   : > { %3266 = vmatmul.msk.f32.gmra.mxu2 %vm372_vm1, %v4036_v32  ;;  %v4198_v32 = vld [vmem:[#allocation2 + $0x12f] sm:$0xff] }
  0xc0   : > { %v4052_v48 = vpop.f32.mrf.mxu1  ;;  %3334 = vmatmul.msk.f32.gmra.mxu0 %vm372_vm1, %v3822_v9 }
  0xc2   : > { %3300 = vmatmul.msk.f32.gmra.mxu3 %vm372_vm1, %v4050_v17 }
  0xc3   : > { %3233 = vmatmul.msk.f32.gmra.mxu1 %vm372_vm1, %v4032_v13  ;;  %v4189_v13 = vld [vmem:[#allocation2 + $0x111] sm:$0xff] }
  0xc4   : > { %3267 = vmatmul.msk.f32.gmra.mxu2 %vm372_vm1, %v4056_v5  ;;  %v4174_v5 = vld [vmem:[#allocation2 + $0x109] sm:$0xff] }
  0xc5   : > { %v4064_v18 = vpop.f32.mrf.mxu3  ;;  %v4066_v19 = vpop.f32.mrf.mxu0  ;;  %4855 = vst [vmem:[#allocation29_spill] sm:$0xff] %v4174_v5 }
  0xc6   : > { %4836 = vst [vmem:[#allocation10_spill] sm:$0xff] %v4064_v18  ;;  %v4128_v18 = vld [vmem:[#allocation2 + $0xef] sm:$0xff] }
  0xc7   : > { %v4070_v21 = vpop.f32.mrf.mxu2  ;;  %4846 = vst [vmem:[#allocation20_spill] sm:$0xff] %v4128_v18 }
  0xc8   : > { %v4072_v9 = vpop.f32.mrf.mxu1  ;;  %3335 = vmatmul.msk.f32.gmra.mxu0 %vm372_vm1, %v3851_v23 }
  0xca   : > { %3301 = vmatmul.msk.f32.gmra.mxu3 %vm372_vm1, %v4068_v20 }
  0xcb   : > { %3234 = vmatmul.msk.f32.gmra.mxu1 %vm372_vm1, %v4050_v17 }
  0xcc   : > { %3268 = vmatmul.msk.f32.gmra.mxu2 %vm372_vm1, %v4076_v3  ;;  %v4156_v3 = vld [vmem:[#allocation2 + $0xf1] sm:$0xff] }
  0xcd   : > { %v4084_v6 = vpop.f32.mrf.mxu3  ;;  %v4086_v31 = vpop.f32.mrf.mxu0  ;;  %4852 = vst [vmem:[#allocation26_spill] sm:$0xff] %v4156_v3 }
  0xce   : > { %4839 = vst [vmem:[#allocation13_spill] sm:$0xff] %v4084_v6 }
  0xcf   : > { %v4090_v39 = vpop.f32.mrf.mxu2 }
  0xd0   : > { %v4092_v23 = vpop.f32.mrf.mxu1  ;;  %3336 = vmatmul.msk.f32.gmra.mxu0 %vm372_vm1, %v3874_v27 }
  0xd2   : > { %3302 = vmatmul.msk.f32.gmra.mxu3 %vm372_vm1, %v4088_v34 }
  0xd3   : > { %3235 = vmatmul.msk.f32.gmra.mxu1 %vm372_vm1, %v4068_v20 }
  0xd4   : > { %3269 = vmatmul.msk.f32.gmra.mxu2 %vm372_vm1, %v4096_v47 }
  0xd5   : > { %v4104_v49 = vpop.f32.mrf.mxu3  ;;  %v4106_v50 = vpop.f32.mrf.mxu0 }
  0xd6   : > { %4842 = vst [vmem:[#allocation16_spill] sm:$0xff] %v4104_v49 }
  0xd7   : > { %v4110_v53 = vpop.f32.mrf.mxu2 }
  0xd8   : > { %v4112_v27 = vpop.f32.mrf.mxu1  ;;  %3337 = vmatmul.msk.f32.gmra.mxu0 %vm372_vm1, %v3898_v37 }
  0xda   : > { %3303 = vmatmul.msk.f32.gmra.mxu3 %vm372_vm1, %v4108_v51 }
  0xdb   : > { %3236 = vmatmul.msk.f32.gmra.mxu1 %vm372_vm1, %v4088_v34  ;;  %v4148_v34 = vld [vmem:[#allocation2 + $0x107] sm:$0xff] }
  0xdc   : > { %3270 = vmatmul.msk.f32.gmra.mxu2 %vm372_vm1, %v4116_v54  ;;  %4850 = vst [vmem:[#allocation24_spill] sm:$0xff] %v4148_v34 }
  0xdd   : > { %v4124_v49 = vpop.f32.mrf.mxu3  ;;  %v4126_v6 = vpop.f32.mrf.mxu0 }
  0xde   : > { %4845 = vst [vmem:[#allocation19_spill] sm:$0xff] %v4124_v49 }
  0xdf   : > { %v4130_v47 = vpop.f32.mrf.mxu2 }
  0xe0   : > { %4847 = vst [vmem:[#allocation21_spill] sm:$0xff] %v4130_v47  ;;  %v4132_v37 = vpop.f32.mrf.mxu1  ;;  %3338 = vmatmul.msk.f32.gmra.mxu0 %vm372_vm1, %v3918_v43 }
  0xe2   : > { %3304 = vmatmul.msk.f32.gmra.mxu3 %vm372_vm1, %v4128_v18 }
  0xe3   : > { %3237 = vmatmul.msk.f32.gmra.mxu1 %vm372_vm1, %v4108_v51  ;;  %v4168_v51 = vld [vmem:[#allocation2 + $0x10f] sm:$0xff] }
  0xe4   : > { %3271 = vmatmul.msk.f32.gmra.mxu2 %vm372_vm1, %v4136_v14 }
  0xe5   : > { %v4144_v49 = vpop.f32.mrf.mxu3  ;;  %v4146_v54 = vpop.f32.mrf.mxu0 }
  0xe6   : > { %4849 = vst [vmem:[#allocation23_spill] sm:$0xff] %v4144_v49 }
  0xe7   : > { %v4150_v20 = vpop.f32.mrf.mxu2 }
  0xe8   : > { %4851 = vst [vmem:[#allocation25_spill] sm:$0xff] %v4150_v20  ;;  %v4152_v43 = vpop.f32.mrf.mxu1  ;;  %3339 = vmatmul.msk.f32.gmra.mxu0 %vm372_vm1, %v3648_v29 }
  0xea   : > { %3305 = vmatmul.msk.f32.gmra.mxu3 %vm372_vm1, %v4148_v34 }
  0xeb   : > { %3238 = vmatmul.msk.f32.gmra.mxu1 %vm372_vm1, %v4128_v18  ;;  %v4184_v18 = vld [vmem:[#allocation2 + $0x127] sm:$0xff] }
  0xec   : > { %3272 = vmatmul.msk.f32.gmra.mxu2 %vm372_vm1, %v4156_v3 }
  0xed   : > { %v4164_v49 = vpop.f32.mrf.mxu3  ;;  %v4166_v14 = vpop.f32.mrf.mxu0 }
  0xee   : > { %4853 = vst [vmem:[#allocation27_spill] sm:$0xff] %v4164_v49 }
  0xef   : > { %v4170_v17 = vpop.f32.mrf.mxu2 }
  0xf0   : > { %4854 = vst [vmem:[#allocation28_spill] sm:$0xff] %v4170_v17  ;;  %v843_v29 = vpop.f32.mrf.mxu1  ;;  %3340 = vmatmul.msk.f32.gmra.mxu0 %vm372_vm1, %v3671_v33 }
  0xf1   : > { %v844_v20 = vadd.f32 %v843_v29, %v4020_v28 }
  0xf2   : > { %3306 = vmatmul.msk.f32.gmra.mxu3 %vm372_vm1, %v4168_v51 }
  0xf3   : > { %3239 = vmatmul.msk.f32.gmra.mxu1 %vm372_vm1, %v4148_v34 }
  0xf4   : > { %3273 = vmatmul.msk.f32.gmra.mxu2 %vm372_vm1, %v4174_v5 }
  0xf5   : > { %v4182_v49 = vpop.f32.mrf.mxu3  ;;  %v1645_v3 = vpop.f32.mrf.mxu0 }
  0xf6   : > { %4856 = vst [vmem:[#allocation30_spill] sm:$0xff] %v4182_v49 }
  0xf7   : > { %v1089_v17 = vpop.f32.mrf.mxu2 }
  0xf8   : > { %v846_v33 = vpop.f32.mrf.mxu1  ;;  %3341 = vmatmul.msk.f32.gmra.mxu0 %vm372_vm1, %v3799_v52  ;;  %v1185_v34 = vadd.f32 %v1089_v17, %v844_v20  ;;  %v4204_v17 = vld [vmem:[#allocation2 + $0x129] sm:$0xff] }
  0xf9   : > { %v847_v28 = vadd.f32 %v846_v33, %v4044_v15 }
  0xfa   : > { %3307 = vmatmul.msk.f32.gmra.mxu3 %vm372_vm1, %v4184_v18 }
  0xfb   : > { %3240 = vmatmul.msk.f32.gmra.mxu1 %vm372_vm1, %v4168_v51 }
  0xfc   : > { %3274 = vmatmul.msk.f32.gmra.mxu2 %vm372_vm1, %v4189_v13 }
  0xfd   : > { %v1367_v49 = vpop.f32.mrf.mxu3  ;;  %v1648_v5 = vpop.f32.mrf.mxu0 }
  0xfe   : > { %v1463_v29 = vadd.f32 %v1367_v49, %v1185_v34  ;;  %v4213_v49 = vld [vmem:[#allocation2 + $0x147] sm:$0xff] }
  0xff   : > { %v1092_v52 = vpop.f32.mrf.mxu2 }
 0x100   : > { %v4200_v47 = vadd.f32 %v1645_v3, %v1463_v29  ;;  %v1186_v7 = vadd.f32 %v1092_v52, %v847_v28  ;;  %v849_v8 = vpop.f32.mrf.mxu1  ;;  %3342 = vmatmul.msk.f32.gmra.mxu0 %vm372_vm1, %v3828_v12  ;;  %v4219_v52 = vld [vmem:[#allocation2 + $0x131] sm:$0xff] }
 0x101   : > { %v850_v3 = vadd.f32 %v849_v8, %v4066_v19 }
 0x102   : > { %3308 = vmatmul.msk.f32.gmra.mxu3 %vm372_vm1, %v4198_v32 }
 0x103   : > { %3241 = vmatmul.msk.f32.gmra.mxu1 %vm372_vm1, %v4184_v18 }
 0x104   : > { %3275 = vmatmul.msk.f32.gmra.mxu2 %vm372_vm1, %v4204_v17 }
 0x105   : > { %v1370_v15 = vpop.f32.mrf.mxu3  ;;  %v1651_v20 = vpop.f32.mrf.mxu0 }
 0x106   : > { %v1464_v34 = vadd.f32 %v1370_v15, %v1186_v7  ;;  %v4228_v15 = vld [vmem:[#allocation2 + $0x14f] sm:$0xff] }
 0x107   : > { %v1095_v33 = vpop.f32.mrf.mxu2 }
 0x108   : > { %v4215_v12 = vadd.f32 %v1648_v5, %v1464_v34  ;;  %v1187_v28 = vadd.f32 %v1095_v33, %v850_v3  ;;  %v852_v29 = vpop.f32.mrf.mxu1  ;;  %3343 = vmatmul.msk.f32.gmra.mxu0 %vm372_vm1, %v3856_v24 }
 0x109   : > { %v853_v5 = vadd.f32 %v852_v29, %v4086_v31 }
 0x10a   : > { %4857 = vst [vmem:[#allocation31_spill] sm:$0xff] %v4215_v12  ;;  %3309 = vmatmul.msk.f32.gmra.mxu3 %vm372_vm1, %v4213_v49  ;;  %v4234_v12 = vld [vmem:[#allocation2 + $0x149] sm:$0xff] }
 0x10b   : > { %3242 = vmatmul.msk.f32.gmra.mxu1 %vm372_vm1, %v4198_v32 }
 0x10c   : > { %3276 = vmatmul.msk.f32.gmra.mxu2 %vm372_vm1, %v4219_v52 }
 0x10d   : > { %v1373_v7 = vpop.f32.mrf.mxu3  ;;  %v1654_v8 = vpop.f32.mrf.mxu0 }
 0x10e   : > { %v1465_v19 = vadd.f32 %v1373_v7, %v1187_v28  ;;  %v4243_v7 = vld [vmem:[#allocation2 + $0x167] sm:$0xff] }
 0x10f   : > { %v1098_v3 = vpop.f32.mrf.mxu2  ;;  %4859 = vst [vmem:[#allocation33_spill] sm:$0xff] %v4243_v7 }
 0x110   : > { %v4230_v24 = vadd.f32 %v1651_v20, %v1465_v19  ;;  %v1188_v34 = vadd.f32 %v1098_v3, %v853_v5  ;;  %v855_v33 = vpop.f32.mrf.mxu1  ;;  %3344 = vmatmul.msk.f32.gmra.mxu0 %vm372_vm1, %v3878_v30 }
 0x111   : > { %v856_v20 = vadd.f32 %v855_v33, %v4106_v50 }
 0x112   : > { %4858 = vst [vmem:[#allocation32_spill] sm:$0xff] %v4230_v24  ;;  %3310 = vmatmul.msk.f32.gmra.mxu3 %vm372_vm1, %v4228_v15  ;;  %v4249_v24 = vld [vmem:[#allocation2 + $0x151] sm:$0xff] }
 0x113   : > { %3243 = vmatmul.msk.f32.gmra.mxu1 %vm372_vm1, %v4213_v49 }
 0x114   : > { %3277 = vmatmul.msk.f32.gmra.mxu2 %vm372_vm1, %v4234_v12 }
 0x115   : > { %v1376_v31 = vpop.f32.mrf.mxu3  ;;  %v1657_v28 = vpop.f32.mrf.mxu0 }
 0x116   : > { %v1466_v29 = vadd.f32 %v1376_v31, %v1188_v34  ;;  %v4258_v31 = vld [vmem:[#allocation2 + $0x16f] sm:$0xff] }
 0x117   : > { %v1101_v5 = vpop.f32.mrf.mxu2  ;;  %4861 = vst [vmem:[#allocation35_spill] sm:$0xff] %v4258_v31 }
 0x118   : > { %v4245_v30 = vadd.f32 %v1654_v8, %v1466_v29  ;;  %v1189_v19 = vadd.f32 %v1101_v5, %v856_v20  ;;  %v858_v3 = vpop.f32.mrf.mxu1  ;;  %3345 = vmatmul.msk.f32.gmra.mxu0 %vm372_vm1, %v3902_v38 }
 0x119   : > { %v859_v8 = vadd.f32 %v858_v3, %v4126_v6 }
 0x11a   : > { %4860 = vst [vmem:[#allocation34_spill] sm:$0xff] %v4245_v30  ;;  %3311 = vmatmul.msk.f32.gmra.mxu3 %vm372_vm1, %v4243_v7  ;;  %v4264_v30 = vld [vmem:[#allocation2 + $0x169] sm:$0xff] }
 0x11b   : > { %3244 = vmatmul.msk.f32.gmra.mxu1 %vm372_vm1, %v4228_v15 }
 0x11c   : > { %3278 = vmatmul.msk.f32.gmra.mxu2 %vm372_vm1, %v4249_v24 }
 0x11d   : > { %v1379_v50 = vpop.f32.mrf.mxu3  ;;  %v1660_v34 = vpop.f32.mrf.mxu0 }
 0x11e   : > { %v1467_v33 = vadd.f32 %v1379_v50, %v1189_v19 }
 0x11f   : > { %v1104_v20 = vpop.f32.mrf.mxu2 }
 0x120   : > { %v4260_v38 = vadd.f32 %v1657_v28, %v1467_v33  ;;  %v1190_v29 = vadd.f32 %v1104_v20, %v859_v8  ;;  %v861_v5 = vpop.f32.mrf.mxu1  ;;  %3346 = vmatmul.msk.f32.gmra.mxu0 %vm372_vm1, %v3922_v44  ;;  %v4272_v28 = vld [vmem:[#allocation2 + $0x188] sm:$0xff] }
 0x121   : > { %4863 = vst [vmem:[#allocation37_spill] sm:$0xff] %v4272_v28  ;;  %v862_v3 = vadd.f32 %v861_v5, %v4146_v54  ;;  %v4275_v8 = vld [vmem:[#allocation2 + $0x187] sm:$0xff] }
 0x122   : > { %4862 = vst [vmem:[#allocation36_spill] sm:$0xff] %v4260_v38  ;;  %3312 = vmatmul.msk.f32.gmra.mxu3 %vm372_vm1, %v4258_v31 }
 0x123   : > { %3245 = vmatmul.msk.f32.gmra.mxu1 %vm372_vm1, %v4243_v7  ;;  %4864 = vst [vmem:[#allocation38_spill] sm:$0xff] %v4275_v8  ;;  %v4281_v7 = vld [vmem:[#allocation2 + $0x171] sm:$0xff] }
 0x124   : > { %3279 = vmatmul.msk.f32.gmra.mxu2 %vm372_vm1, %v4264_v30  ;;  %4866 = vst [vmem:[#allocation40_spill] sm:$0xff] %v4281_v7 }
 0x125   : > { %v1382_v6 = vpop.f32.mrf.mxu3  ;;  %v1663_v19 = vpop.f32.mrf.mxu0 }
 0x126   : > { %v1468_v50 = vadd.f32 %v1382_v6, %v1190_v29  ;;  %v1240_v6 = vld [vmem:[#allocation2 + $0x18f] sm:$0xff] }
 0x127   : > { %v1107_v44 = vpop.f32.mrf.mxu2 }
 0x128   : > { %v4277_v33 = vadd.f32 %v1660_v34, %v1468_v50  ;;  %v1191_v20 = vadd.f32 %v1107_v44, %v862_v3  ;;  %v864_v38 = vpop.f32.mrf.mxu1  ;;  %3347 = vmatmul.msk.f32.gmra.mxu0 %vm372_vm1, %v4272_v28  ;;  %v4294_v28 = vld [vmem:[#allocation2 + $0x189] sm:$0xff] }
 0x129   : > { %v865_v34 = vadd.f32 %v864_v38, %v4166_v14  ;;  %4868 = vst [vmem:[#allocation42_spill] sm:$0xff] %v4294_v28 }
 0x12a   : > { %4865 = vst [vmem:[#allocation39_spill] sm:$0xff] %v4277_v33  ;;  %3313 = vmatmul.msk.f32.gmra.mxu3 %vm372_vm1, %v4275_v8 }
 0x12b   : > { %3246 = vmatmul.msk.f32.gmra.mxu1 %vm372_vm1, %v4258_v31 }
 0x12c   : > { %3280 = vmatmul.msk.f32.gmra.mxu2 %vm372_vm1, %v4281_v7 }
 0x12d   : > { %v1385_v54 = vpop.f32.mrf.mxu3  ;;  %v1666_v29 = vpop.f32.mrf.mxu0 }
 0x12e   : > { %v1469_v5 = vadd.f32 %v1385_v54, %v1191_v20  ;;  %v1241_v20 = vld [vmem:[#allocation2 + $0x1a7] sm:$0xff] }
 0x12f   : > { %v1110_v3 = vpop.f32.mrf.mxu2 }
 0x130   : > { %v4290_v50 = vadd.f32 %v1663_v19, %v1469_v5  ;;  %v1192_v44 = vadd.f32 %v1110_v3, %v865_v34  ;;  %v867_v33 = vpop.f32.mrf.mxu1  ;;  %3348 = vmatmul.msk.f32.gmra.mxu0 %vm372_vm1, %v3783_v42  ;;  %v964_v3 = vld [vmem:[#allocation2 + $0x191] sm:$0xff] }
 0x131   : > { %v868_v34 = vadd.f32 %v867_v33, %v4012_v4 }
 0x132   : > { %4867 = vst [vmem:[#allocation41_spill] sm:$0xff] %v4290_v50  ;;  %3314 = vmatmul.msk.f32.gmra.mxu3 %vm372_vm1, %v1240_v6 }
 0x133   : > { %3247 = vmatmul.msk.f32.gmra.mxu1 %vm372_vm1, %v4275_v8  ;;  %v965_v8 = vld [vmem:[#allocation2 + $0x1a9] sm:$0xff] }
 0x134   : > { %3281 = vmatmul.msk.f32.gmra.mxu2 %vm372_vm1, %v4294_v28  ;;  %v268_v28 = vld [vmem:[%s3594_s8 + $0xf0] sm:$0xff] }
 0x135   : > { %v1388_v14 = vpop.f32.mrf.mxu3  ;;  %v1669_v38 = vpop.f32.mrf.mxu0 }
 0x136   : > { %v1470_v19 = vadd.f32 %v1388_v14, %v1192_v44  ;;  %v3511_v44 = vld [vmem:[%s4792_s1] ss:$0 sm:$0xff] }
 0x137   : > { %v1113_v54 = vpop.f32.mrf.mxu2  ;;  %v303_v4 = vmul.f32 %v3511_v44, %v268_v28 }
 0x138   : > { %v4302_v5 = vadd.f32 %v1666_v29, %v1470_v19  ;;  %v870_v42 = vpop.f32.mrf.mxu1  ;;  %3349 = vmatmul.msk.f32.gmra.mxu0 %vm372_vm1, %v3816_v2  ;;  %v1193_v50 = vadd.f32 %v1113_v54, %v868_v34  ;;  %v3512_v2 = vld [vmem:[%s4793_s2] ss:$0 sm:$0xff]  ;;  %v1242_v54 = vld [vmem:[#allocation2 + $0x1af] sm:$0xff] }
 0x139   : > { %v338_v19 = vadd.f32 %v3512_v2, %v303_v4  ;;  %v269_v4 = vld [vmem:[%s3594_s8 + $0xf8] sm:$0xff]  ;;  %s235_s8 = scalar_lea.vmem %s4796_s5, %s3187_s30 }
 0x13a   : > { %4869 = vst [vmem:[#allocation43_spill] sm:$0xff] %v4302_v5  ;;  %3315 = vmatmul.msk.f32.gmra.mxu3 %vm372_vm1, %v1241_v20 }
 0x13b   : > { %3248 = vmatmul.msk.f32.gmra.mxu1 %vm372_vm1, %v1240_v6  ;;  %v871_v6 = vadd.f32 %v870_v42, %v4030_v11  ;;  %v370_v28 = vmax.f32 %v338_v19, 0.0 }
 0x13c   : > { %3282 = vmatmul.msk.f32.gmra.mxu2 %vm372_vm1, %v964_v3 }
 0x13d   : > { %v1391_v33 = vpop.f32.mrf.mxu3  ;;  %v1672_v29 = vpop.f32.mrf.mxu0  ;;  %445 = vst.msk [vmem:[#allocation2 + $0x208] sm:$0xff] %vm372_vm1, %v370_v28 }
 0x13e   : > { %v1471_v14 = vadd.f32 %v1391_v33, %v1193_v50  ;;  %v304_v33 = vmul.f32 %v3511_v44, %v269_v4 }
 0x13f   : > { %v1116_v34 = vpop.f32.mrf.mxu2 }
 0x140   : > { %v4317_v5 = vadd.f32 %v1669_v38, %v1471_v14  ;;  %v873_v3 = vpop.f32.mrf.mxu1  ;;  %3350 = vmatmul.msk.f32.gmra.mxu0 %vm372_vm1, %v3848_v22  ;;  %v1194_v50 = vadd.f32 %v1116_v34, %v871_v6  ;;  %v339_v14 = vadd.f32 %v3512_v2, %v304_v33 }
 0x141   : > { %v874_v22 = vadd.f32 %v873_v3, %v4052_v48 }
 0x142   : > { %4870 = vst [vmem:[#allocation44_spill] sm:$0xff] %v4317_v5  ;;  %3316 = vmatmul.msk.f32.gmra.mxu3 %vm372_vm1, %v1242_v54  ;;  %v1243_v5 = vld [vmem:[#allocation2 + $0x1c7] sm:$0xff]  ;;  %v371_v34 = vmax.f32 %v339_v14, 0.0 }
 0x143   : > { %3249 = vmatmul.msk.f32.gmra.mxu1 %vm372_vm1, %v1241_v20  ;;  %v966_v20 = vld [vmem:[#allocation2 + $0x1b1] sm:$0xff] }
 0x144   : > { %3283 = vmatmul.msk.f32.gmra.mxu2 %vm372_vm1, %v965_v8  ;;  %446 = vst.msk [vmem:[#allocation2 + $0x210] sm:$0xff] %vm372_vm1, %v371_v34 }
 0x145   : > { %v1394_v11 = vpop.f32.mrf.mxu3  ;;  %v1675_v38 = vpop.f32.mrf.mxu0 }
 0x146   : > { %v1472_v42 = vadd.f32 %v1394_v11, %v1194_v50  ;;  %v1245_v11 = vld [vmem:[#allocation2 + $0x1e7] sm:$0xff] }
 0x147   : > { %v1119_v7 = vpop.f32.mrf.mxu2 }
 0x148   : > { %v4327_v19 = vadd.f32 %v1672_v29, %v1472_v42  ;;  %v876_v31 = vpop.f32.mrf.mxu1  ;;  %3351 = vmatmul.msk.f32.gmra.mxu0 %vm372_vm1, %v3872_v26  ;;  %v1195_v8 = vadd.f32 %v1119_v7, %v874_v22  ;;  %v1244_v29 = vld [vmem:[#allocation2 + $0x1cf] sm:$0xff] }
 0x149   : > { %v877_v3 = vadd.f32 %v876_v31, %v4072_v9  ;;  %v967_v7 = vld [vmem:[#allocation2 + $0x1c9] sm:$0xff] }
 0x14a   : > { %3317 = vmatmul.msk.f32.gmra.mxu3 %vm372_vm1, %v1243_v5 }
 0x14b   : > { %3250 = vmatmul.msk.f32.gmra.mxu1 %vm372_vm1, %v1242_v54 }
 0x14c   : > { %3284 = vmatmul.msk.f32.gmra.mxu2 %vm372_vm1, %v966_v20  ;;  %v1246_v20 = vld [vmem:[#allocation2 + $0x1ef] sm:$0xff] }
 0x14d   : > { %v1397_v44 = vpop.f32.mrf.mxu3  ;;  %v1678_v2 = vpop.f32.mrf.mxu0 }
 0x14e   : > { %v1473_v48 = vadd.f32 %v1397_v44, %v1195_v8 }
 0x14f   : > { %v1122_v6 = vpop.f32.mrf.mxu2 }
 0x150   : > { %v4336_v28 = vadd.f32 %v1675_v38, %v1473_v48  ;;  %v879_v26 = vpop.f32.mrf.mxu1  ;;  %3352 = vmatmul.msk.f32.gmra.mxu0 %vm372_vm1, %v3896_v36  ;;  %v1196_v50 = vadd.f32 %v1122_v6, %v877_v3  ;;  %v968_v36 = vld [vmem:[#allocation2 + $0x1d1] sm:$0xff]  ;;  %v1525_v3 = vld [vmem:[#allocation2 + $0x208] sm:$0xff] }
 0x151   : > { %v880_v9 = vadd.f32 %v879_v26, %v4092_v23 }
 0x152   : > { %3318 = vmatmul.msk.f32.gmra.mxu3 %vm372_vm1, %v1244_v29 }
 0x153   : > { %3251 = vmatmul.msk.f32.gmra.mxu1 %vm372_vm1, %v1243_v5 }
 0x154   : > { %3285 = vmatmul.msk.f32.gmra.mxu2 %vm372_vm1, %v967_v7  ;;  %v1247_v7 = vld [vmem:[#allocation2 + $0x207] sm:$0xff] }
 0x155   : > { %v1400_v54 = vpop.f32.mrf.mxu3  ;;  %v1681_v4 = vpop.f32.mrf.mxu0 }
 0x156   : > { %v1474_v33 = vadd.f32 %v1400_v54, %v1196_v50 }
 0x157   : > { %v1125_v42 = vpop.f32.mrf.mxu2 }
 0x158   : > { %v4344_v31 = vadd.f32 %v1678_v2, %v1474_v33  ;;  %v882_v38 = vpop.f32.mrf.mxu1  ;;  %3353 = vmatmul.msk.f32.gmra.mxu0 %vm372_vm1, %v3916_v41  ;;  %v1197_v14 = vadd.f32 %v1125_v42, %v880_v9  ;;  %v969_v41 = vld [vmem:[#allocation2 + $0x1e9] sm:$0xff] }
 0x159   : > { %v883_v23 = vadd.f32 %v882_v38, %v4112_v27  ;;  %v1526_v9 = vld [vmem:[#allocation2 + $0x210] sm:$0xff] }
 0x15a   : > { %3319 = vmatmul.msk.f32.gmra.mxu3 %vm372_vm1, %v1245_v11 }
 0x15b   : > { %3252 = vmatmul.msk.f32.gmra.mxu1 %vm372_vm1, %v1244_v29 }
 0x15c   : > { %3286 = vmatmul.msk.f32.gmra.mxu2 %vm372_vm1, %v968_v36  ;;  %v1248_v36 = vld [vmem:[#allocation2 + $0x20f] sm:$0xff] }
 0x15d   : > { %v1403_v5 = vpop.f32.mrf.mxu3  ;;  %v1684_v22 = vpop.f32.mrf.mxu0 }
 0x15e   : > { %v1475_v34 = vadd.f32 %v1403_v5, %v1197_v14 }
 0x15f   : > { %v1128_v8 = vpop.f32.mrf.mxu2 }
 0x160   : > { %v4352_v44 = vadd.f32 %v1681_v4, %v1475_v34  ;;  %v885_v2 = vpop.f32.mrf.mxu1  ;;  %3354 = vmatmul.msk.f32.gmra.mxu0 %vm372_vm1, %v3932_v46  ;;  %v1198_v48 = vadd.f32 %v1128_v8, %v883_v23  ;;  %v970_v46 = vld [vmem:[#allocation2 + $0x1f1] sm:$0xff] }
 0x161   : > { %v886_v50 = vadd.f32 %v885_v2, %v4132_v37 }
 0x162   : > { %3320 = vmatmul.msk.f32.gmra.mxu3 %vm372_vm1, %v1246_v20 }
 0x163   : > { %3253 = vmatmul.msk.f32.gmra.mxu1 %vm372_vm1, %v1245_v11 }
 0x164   : > { %3287 = vmatmul.msk.f32.gmra.mxu2 %vm372_vm1, %v969_v41 }
 0x165   : > { %v1406_v29 = vpop.f32.mrf.mxu3  ;;  %v1687_v6 = vpop.f32.mrf.mxu0 }
 0x166   : > { %v1476_v26 = vadd.f32 %v1406_v29, %v1198_v48 }
 0x167   : > { %v1131_v27 = vpop.f32.mrf.mxu2 }
 0x168   : > { %v4360_v54 = vadd.f32 %v1684_v22, %v1476_v26  ;;  %v888_v4 = vpop.f32.mrf.mxu1  ;;  %3355 = vmatmul.msk.f32.gmra.mxu0 %vm372_vm1, %v1525_v3  ;;  %v1199_v33 = vadd.f32 %v1131_v27, %v886_v50 }
 0x169   : > { %v889_v37 = vadd.f32 %v888_v4, %v4152_v43 }
 0x16a   : > { %3321 = vmatmul.msk.f32.gmra.mxu3 %vm372_vm1, %v1247_v7 }
 0x16b   : > { %3254 = vmatmul.msk.f32.gmra.mxu1 %vm372_vm1, %v1246_v20 }
 0x16c   : > { %3288 = vmatmul.msk.f32.gmra.mxu2 %vm372_vm1, %v970_v46 }
 0x16d   : > { %v1409_v11 = vpop.f32.mrf.mxu3  ;;  %v1690_v42 = vpop.f32.mrf.mxu0 }
 0x16e   : > { %v1477_v38 = vadd.f32 %v1409_v11, %v1199_v33 }
 0x16f   : > { %v1134_v14 = vpop.f32.mrf.mxu2 }
 0x170   : > { %v4367_v5 = vadd.f32 %v1687_v6, %v1477_v38  ;;  %v891_v22 = vpop.f32.mrf.mxu1  ;;  %3356 = vmatmul.msk.f32.gmra.mxu0 %vm372_vm1, %v1526_v9  ;;  %v1200_v34 = vadd.f32 %v1134_v14, %v889_v37 }
 0x171   : > { %v892_v43 = vadd.f32 %v891_v22, %v4026_v10 }
 0x172   : > { %3322 = vmatmul.msk.f32.gmra.mxu3 %vm372_vm1, %v1248_v36 }
 0x173   : > { %3359 = vmatmul.msk.f32.vlgmr.msra.gmra.mxu1 %vm372_vm1, %v3947_v55 }
 0x174   : > { %3393 = vmatmul.msk.f32.vlgmr.msra.gmra.mxu2 %vm372_vm1, %v3953_v56 }
 0x175   : > { %v1412_v20 = vpop.f32.mrf.mxu3  ;;  %v1693_v8 = vpop.f32.mrf.mxu0 }
 0x176   : > { %v1478_v23 = vadd.f32 %v1412_v20, %v1200_v34  ;;  %v4871_v34 = vld [vmem:[#allocation4_spill] sm:$0xff] }
 0x177   : > { %v1137_v2 = vpop.f32.mrf.mxu2 }
 0x178   : > { %v4376_v41 = vadd.f32 %v1690_v42, %v1478_v23  ;;  %v894_v48 = vpop.f32.mrf.mxu1  ;;  %3461 = vmatmul.msk.f32.vlgmr.msra.gmra.mxu0 %vm372_vm1, %v3968_v59  ;;  %v1201_v29 = vadd.f32 %v1137_v2, %v892_v43  ;;  %v2335_v23 = vld [vmem:[#allocation2 + $0x90] sm:$0xff] }
 0x179   : > { %v895_v3 = vadd.f32 %v894_v48, %v4048_v16  ;;  %v4873_v2 = vld [vmem:[#allocation21_spill] sm:$0xff] }
 0x17a   : > { %3427 = vmatmul.msk.f32.vlgmr.msra.gmra.mxu3 %vm372_vm1, %v3869_v25 }
 0x17b   : > { %3360 = vmatmul.msk.f32.gmra.mxu1 %vm372_vm1, %v3957_v57 }
 0x17c   : > { %3394 = vmatmul.msk.f32.gmra.mxu2 %vm372_vm1, %v3964_v58 }
 0x17d   : > { %v1415_v55 = vpop.f32.mrf.mxu3  ;;  %v1696_v56 = vpop.f32.mrf.mxu0 }
 0x17e   : > { %v1479_v6 = vadd.f32 %v1415_v55, %v1201_v29  ;;  %v4874_v55 = vld [vmem:[#allocation6_spill] sm:$0xff] }
 0x17f   : > { %v1140_v10 = vpop.f32.mrf.mxu2 }
 0x180   : > { %v4387_v26 = vadd.f32 %v1693_v8, %v1479_v6  ;;  %v897_v7 = vpop.f32.mrf.mxu1  ;;  %3462 = vmatmul.msk.f32.gmra.mxu0 %vm372_vm1, %v3980_v61  ;;  %v1202_v25 = vadd.f32 %v1140_v10, %v895_v3 }
 0x181   : > { %v898_v50 = vadd.f32 %v897_v7, %v4070_v21  ;;  %v2336_v7 = vld [vmem:[#allocation2 + $0xa8] sm:$0xff] }
 0x182   : > { %3428 = vmatmul.msk.f32.gmra.mxu3 %vm372_vm1, %v3894_v35 }
 0x183   : > { %3361 = vmatmul.msk.f32.gmra.mxu1 %vm372_vm1, %v3968_v59 }
 0x184   : > { %3395 = vmatmul.msk.f32.gmra.mxu2 %vm372_vm1, %v3976_v60 }
 0x185   : > { %v1418_v57 = vpop.f32.mrf.mxu3  ;;  %v1699_v58 = vpop.f32.mrf.mxu0 }
 0x186   : > { %v1480_v27 = vadd.f32 %v1418_v57, %v1202_v25  ;;  %v4876_v57 = vld [vmem:[#allocation25_spill] sm:$0xff] }
 0x187   : > { %v1143_v16 = vpop.f32.mrf.mxu2 }
 0x188   : > { %v4398_v4 = vadd.f32 %v1696_v56, %v1480_v27  ;;  %v900_v46 = vpop.f32.mrf.mxu1  ;;  %3463 = vmatmul.msk.f32.gmra.mxu0 %vm372_vm1, %v3992_v63  ;;  %v1203_v35 = vadd.f32 %v1143_v16, %v898_v50  ;;  %v4877_v50 = vld [vmem:[#allocation9_spill] sm:$0xff] }
 0x189   : > { %v901_v11 = vadd.f32 %v900_v46, %v4090_v39  ;;  %v2334_v39 = vld [vmem:[#allocation2 + $0x88] sm:$0xff] }
 0x18a   : > { %3429 = vmatmul.msk.f32.gmra.mxu3 %vm372_vm1, %v3914_v40 }
 0x18b   : > { %3362 = vmatmul.msk.f32.gmra.mxu1 %vm372_vm1, %v3980_v61 }
 0x18c   : > { %3396 = vmatmul.msk.f32.gmra.mxu2 %vm372_vm1, %v3988_v62 }
 0x18d   : > { %v1421_v59 = vpop.f32.mrf.mxu3  ;;  %v1702_v60 = vpop.f32.mrf.mxu0 }
 0x18e   : > { %v1481_v33 = vadd.f32 %v1421_v59, %v1203_v35  ;;  %v4878_v35 = vld [vmem:[#allocation8_spill] sm:$0xff] }
 0x18f   : > { %v1146_v21 = vpop.f32.mrf.mxu2 }
 0x190   : > { %v4409_v42 = vadd.f32 %v1699_v58, %v1481_v33  ;;  %v903_v9 = vpop.f32.mrf.mxu1  ;;  %3464 = vmatmul.msk.f32.gmra.mxu0 %vm372_vm1, %v4004_v1  ;;  %v1204_v40 = vadd.f32 %v1146_v21, %v901_v11  ;;  %v2337_v21 = vld [vmem:[#allocation2 + $0xb0] sm:$0xff] }
 0x191   : > { %v904_v14 = vadd.f32 %v903_v9, %v4110_v53  ;;  %v4879_v9 = vld [vmem:[#allocation28_spill] sm:$0xff] }
 0x192   : > { %3430 = vmatmul.msk.f32.gmra.mxu3 %vm372_vm1, %v3930_v45 }
 0x193   : > { %3363 = vmatmul.msk.f32.gmra.mxu1 %vm372_vm1, %v3992_v63  ;;  %v4872_v63 = vld [vmem:[#allocation3_spill] sm:$0xff] }
 0x194   : > { %3397 = vmatmul.msk.f32.gmra.mxu2 %vm372_vm1, %v4000_v0 }
 0x195   : > { %v1424_v61 = vpop.f32.mrf.mxu3  ;;  %v1705_v62 = vpop.f32.mrf.mxu0 }
 0x196   : > { %v1482_v38 = vadd.f32 %v1424_v61, %v1204_v40 }
 0x197   : > { %v1149_v36 = vpop.f32.mrf.mxu2 }
 0x198   : > { %v4420_v37 = vadd.f32 %v1702_v60, %v1482_v38  ;;  %v906_v22 = vpop.f32.mrf.mxu1  ;;  %3465 = vmatmul.msk.f32.gmra.mxu0 %vm372_vm1, %v4871_v34  ;;  %v1205_v45 = vadd.f32 %v1149_v36, %v904_v14  ;;  %v4880_v38 = vld [vmem:[#allocation12_spill] sm:$0xff]  ;;  %v4881_v36 = vld [vmem:[#allocation11_spill] sm:$0xff] }
 0x199   : > { %v907_v43 = vadd.f32 %v906_v22, %v4873_v2 }
 0x19a   : > { %3431 = vmatmul.msk.f32.gmra.mxu3 %vm372_vm1, %v2334_v39 }
 0x19b   : > { %3364 = vmatmul.msk.f32.gmra.mxu1 %vm372_vm1, %v4004_v1  ;;  %v4875_v1 = vld [vmem:[#allocation5_spill] sm:$0xff] }
 0x19c   : > { %3398 = vmatmul.msk.f32.gmra.mxu2 %vm372_vm1, %v4872_v63 }
 0x19d   : > { %v1427_v0 = vpop.f32.mrf.mxu3  ;;  %v1708_v20 = vpop.f32.mrf.mxu0 }
 0x19e   : > { %v1483_v8 = vadd.f32 %v1427_v0, %v1205_v45  ;;  %v2338_v45 = vld [vmem:[#allocation2 + $0xc8] sm:$0xff]  ;;  %v4882_v0 = vld [vmem:[#allocation7_spill] sm:$0xff] }
 0x19f   : > { %v1152_v53 = vpop.f32.mrf.mxu2 }
 0x1a0   : > { %v4430_v48 = vadd.f32 %v1705_v62, %v1483_v8  ;;  %v909_v29 = vpop.f32.mrf.mxu1  ;;  %3466 = vmatmul.msk.f32.gmra.mxu0 %vm372_vm1, %v4874_v55  ;;  %v1206_v56 = vadd.f32 %v1152_v53, %v907_v43  ;;  %v4883_v53 = vld [vmem:[#allocation15_spill] sm:$0xff]  ;;  %v4884_v43 = vld [vmem:[#allocation14_spill] sm:$0xff] }
 0x1a1   : > { %v910_v58 = vadd.f32 %v909_v29, %v4876_v57  ;;  %v4886_v57 = vld [vmem:[#allocation18_spill] sm:$0xff] }
 0x1a2   : > { %3432 = vmatmul.msk.f32.gmra.mxu3 %vm372_vm1, %v2335_v23 }
 0x1a3   : > { %3365 = vmatmul.msk.f32.gmra.mxu1 %vm372_vm1, %v4871_v34 }
 0x1a4   : > { %3399 = vmatmul.msk.f32.gmra.mxu2 %vm372_vm1, %v4875_v1  ;;  %v2339_v1 = vld [vmem:[#allocation2 + $0xd0] sm:$0xff] }
 0x1a5   : > { %v1430_v6 = vpop.f32.mrf.mxu3  ;;  %v1711_v10 = vpop.f32.mrf.mxu0 }
 0x1a6   : > { %v1484_v3 = vadd.f32 %v1430_v6, %v1206_v56 }
 0x1a7   : > { %v1155_v25 = vpop.f32.mrf.mxu2 }
 0x1a8   : > { %v4440_v27 = vadd.f32 %v1708_v20, %v1484_v3  ;;  %v912_v16 = vpop.f32.mrf.mxu1  ;;  %3467 = vmatmul.msk.f32.gmra.mxu0 %vm372_vm1, %v4877_v50  ;;  %v1207_v46 = vadd.f32 %v1155_v25, %v910_v58 }
 0x1a9   : > { %v913_v40 = vadd.f32 %v912_v16, %v4879_v9  ;;  %v4887_v16 = vld [vmem:[#allocation17_spill] sm:$0xff] }
 0x1aa   : > { %3433 = vmatmul.msk.f32.gmra.mxu3 %vm372_vm1, %v2336_v7 }
 0x1ab   : > { %3366 = vmatmul.msk.f32.gmra.mxu1 %vm372_vm1, %v4874_v55 }
 0x1ac   : > { %3400 = vmatmul.msk.f32.gmra.mxu2 %vm372_vm1, %v4878_v35 }
 0x1ad   : > { %v1433_v59 = vpop.f32.mrf.mxu3  ;;  %v1714_v60 = vpop.f32.mrf.mxu0 }
 0x1ae   : > { %v1485_v33 = vadd.f32 %v1433_v59, %v1207_v46  ;;  %v2340_v59 = vld [vmem:[#allocation2 + $0xe8] sm:$0xff] }
 0x1af   : > { %v1158_v11 = vpop.f32.mrf.mxu2 }
 0x1b0   : > { %v4450_v61 = vadd.f32 %v1711_v10, %v1485_v33  ;;  %v915_v62 = vpop.f32.mrf.mxu1  ;;  %3468 = vmatmul.msk.f32.gmra.mxu0 %vm372_vm1, %v4880_v38  ;;  %v1208_v39 = vadd.f32 %v1158_v11, %v913_v40  ;;  %v4885_v10 = vld [vmem:[#allocation10_spill] sm:$0xff]  ;;  %v4888_v33 = vld [vmem:[#allocation13_spill] sm:$0xff] }
 0x1b1   : > { %v916_v20 = vadd.f32 %v915_v62, %v4882_v0  ;;  %v4889_v40 = vld [vmem:[#allocation22_spill] sm:$0xff] }
 0x1b2   : > { %3434 = vmatmul.msk.f32.gmra.mxu3 %vm372_vm1, %v2337_v21 }
 0x1b3   : > { %3367 = vmatmul.msk.f32.gmra.mxu1 %vm372_vm1, %v4877_v50 }
 0x1b4   : > { %3401 = vmatmul.msk.f32.gmra.mxu2 %vm372_vm1, %v4881_v36 }
 0x1b5   : > { %v1436_v14 = vpop.f32.mrf.mxu3  ;;  %v1717_v22 = vpop.f32.mrf.mxu0 }
 0x1b6   : > { %v1486_v34 = vadd.f32 %v1436_v14, %v1208_v39 }
 0x1b7   : > { %v1161_v63 = vpop.f32.mrf.mxu2 }
 0x1b8   : > { %v4460_v8 = vadd.f32 %v1714_v60, %v1486_v34  ;;  %v918_v23 = vpop.f32.mrf.mxu1  ;;  %3469 = vmatmul.msk.f32.gmra.mxu0 %vm372_vm1, %v4883_v53  ;;  %v1209_v2 = vadd.f32 %v1161_v63, %v916_v20 }
 0x1b9   : > { %v919_v3 = vadd.f32 %v918_v23, %v4885_v10  ;;  %v4892_v23 = vld [vmem:[#allocation26_spill] sm:$0xff] }
 0x1ba   : > { %3435 = vmatmul.msk.f32.gmra.mxu3 %vm372_vm1, %v2338_v45  ;;  %v4891_v45 = vld [vmem:[#allocation16_spill] sm:$0xff] }
 0x1bb   : > { %3368 = vmatmul.msk.f32.gmra.mxu1 %vm372_vm1, %v4880_v38  ;;  %v4890_v38 = vld [vmem:[#allocation20_spill] sm:$0xff] }
 0x1bc   : > { %3402 = vmatmul.msk.f32.gmra.mxu2 %vm372_vm1, %v4884_v43 }
 0x1bd   : > { %v1439_v29 = vpop.f32.mrf.mxu3  ;;  %v1720_v55 = vpop.f32.mrf.mxu0 }
 0x1be   : > { %v1487_v56 = vadd.f32 %v1439_v29, %v1209_v2  ;;  %v4893_v2 = vld [vmem:[#allocation24_spill] sm:$0xff] }
 0x1bf   : > { %v1164_v6 = vpop.f32.mrf.mxu2 }
 0x1c0   : > { %v4470_v7 = vadd.f32 %v1717_v22, %v1487_v56  ;;  %v921_v25 = vpop.f32.mrf.mxu1  ;;  %3470 = vmatmul.msk.f32.gmra.mxu0 %vm372_vm1, %v4886_v57  ;;  %v1210_v58 = vadd.f32 %v1164_v6, %v919_v3  ;;  %v2341_v22 = vld [vmem:[#allocation2 + $0xf0] sm:$0xff]  ;;  %v2342_v56 = vld [vmem:[#allocation2 + $0x108] sm:$0xff]  ;;  %v4894_v6 = vld [vmem:[#allocation19_spill] sm:$0xff] }
 0x1c1   : > { %v922_v21 = vadd.f32 %v921_v25, %v4888_v33 }
 0x1c2   : > { %3436 = vmatmul.msk.f32.gmra.mxu3 %vm372_vm1, %v2339_v1 }
 0x1c3   : > { %3369 = vmatmul.msk.f32.gmra.mxu1 %vm372_vm1, %v4883_v53 }
 0x1c4   : > { %3403 = vmatmul.msk.f32.gmra.mxu2 %vm372_vm1, %v4887_v16 }
 0x1c5   : > { %v1442_v50 = vpop.f32.mrf.mxu3  ;;  %v1723_v46 = vpop.f32.mrf.mxu0 }
 0x1c6   : > { %v1488_v35 = vadd.f32 %v1442_v50, %v1210_v58 }
 0x1c7   : > { %v1167_v60 = vpop.f32.mrf.mxu2 }
 0x1c8   : > { %v4480_v11 = vadd.f32 %v1720_v55, %v1488_v35  ;;  %v924_v9 = vpop.f32.mrf.mxu1  ;;  %3471 = vmatmul.msk.f32.gmra.mxu0 %vm372_vm1, %v4889_v40  ;;  %v1211_v62 = vadd.f32 %v1167_v60, %v922_v21  ;;  %v2343_v35 = vld [vmem:[#allocation2 + $0x110] sm:$0xff]  ;;  %v4896_v60 = vld [vmem:[#allocation23_spill] sm:$0xff] }
 0x1c9   : > { %v925_v63 = vadd.f32 %v924_v9, %v4891_v45 }
 0x1ca   : > { %3437 = vmatmul.msk.f32.gmra.mxu3 %vm372_vm1, %v2340_v59 }
 0x1cb   : > { %3370 = vmatmul.msk.f32.gmra.mxu1 %vm372_vm1, %v4886_v57  ;;  %v4895_v57 = vld [vmem:[#allocation29_spill] sm:$0xff] }
 0x1cc   : > { %3404 = vmatmul.msk.f32.gmra.mxu2 %vm372_vm1, %v4890_v38 }
 0x1cd   : > { %v1445_v39 = vpop.f32.mrf.mxu3  ;;  %v1726_v36 = vpop.f32.mrf.mxu0 }
 0x1ce   : > { %v1489_v14 = vadd.f32 %v1445_v39, %v1211_v62  ;;  %v2344_v39 = vld [vmem:[#allocation2 + $0x128] sm:$0xff] }
 0x1cf   : > { %v1170_v34 = vpop.f32.mrf.mxu2 }
 0x1d0   : > { %v4490_v0 = vadd.f32 %v1723_v46, %v1489_v14  ;;  %v927_v20 = vpop.f32.mrf.mxu1  ;;  %3472 = vmatmul.msk.f32.gmra.mxu0 %vm372_vm1, %v4892_v23  ;;  %v1212_v53 = vadd.f32 %v1170_v34, %v925_v63  ;;  %v4897_v14 = vld [vmem:[#allocation27_spill] sm:$0xff] }
 0x1d1   : > { %v928_v10 = vadd.f32 %v927_v20, %v4894_v6 }
 0x1d2   : > { %3438 = vmatmul.msk.f32.gmra.mxu3 %vm372_vm1, %v2341_v22 }
 0x1d3   : > { %3371 = vmatmul.msk.f32.gmra.mxu1 %vm372_vm1, %v4889_v40 }
 0x1d4   : > { %3405 = vmatmul.msk.f32.gmra.mxu2 %vm372_vm1, %v4893_v2 }
 0x1d5   : > { %v1448_v43 = vpop.f32.mrf.mxu3  ;;  %v1729_v29 = vpop.f32.mrf.mxu0 }
 0x1d6   : > { %v1490_v55 = vadd.f32 %v1448_v43, %v1212_v53  ;;  %v2345_v53 = vld [vmem:[#allocation2 + $0x130] sm:$0xff]  ;;  %v4898_v43 = vld [vmem:[#allocation30_spill] sm:$0xff] }
 0x1d7   : > { %v1173_v1 = vpop.f32.mrf.mxu2 }
 0x1d8   : > { %v4500_v3 = vadd.f32 %v1726_v36, %v1490_v55  ;;  %v930_v25 = vpop.f32.mrf.mxu1  ;;  %3473 = vmatmul.msk.f32.gmra.mxu0 %vm372_vm1, %v4895_v57  ;;  %v1213_v58 = vadd.f32 %v1173_v1, %v928_v10  ;;  %v2346_v10 = vld [vmem:[#allocation2 + $0x148] sm:$0xff] }
 0x1d9   : > { %v931_v33 = vadd.f32 %v930_v25, %v4896_v60 }
 0x1da   : > { %3439 = vmatmul.msk.f32.gmra.mxu3 %vm372_vm1, %v2342_v56 }
 0x1db   : > { %3372 = vmatmul.msk.f32.gmra.mxu1 %vm372_vm1, %v4892_v23 }
 0x1dc   : > { %3406 = vmatmul.msk.f32.gmra.mxu2 %vm372_vm1, %v4168_v51 }
 0x1dd   : > { %v1451_v16 = vpop.f32.mrf.mxu3  ;;  %v1732_v50 = vpop.f32.mrf.mxu0 }
 0x1de   : > { %v1491_v46 = vadd.f32 %v1451_v16, %v1213_v58 }
 0x1df   : > { %v1176_v59 = vpop.f32.mrf.mxu2 }
 0x1e0   : > { %v4510_v21 = vadd.f32 %v1729_v29, %v1491_v46  ;;  %v933_v9 = vpop.f32.mrf.mxu1  ;;  %3474 = vmatmul.msk.f32.gmra.mxu0 %vm372_vm1, %v4189_v13  ;;  %v1214_v40 = vadd.f32 %v1176_v59, %v931_v33  ;;  %v4899_v59 = vld [vmem:[#allocation31_spill] sm:$0xff] }
 0x1e1   : > { %v934_v22 = vadd.f32 %v933_v9, %v4897_v14  ;;  %v4901_v14 = vld [vmem:[#allocation32_spill] sm:$0xff] }
 0x1e2   : > { %3440 = vmatmul.msk.f32.gmra.mxu3 %vm372_vm1, %v2343_v35 }
 0x1e3   : > { %3373 = vmatmul.msk.f32.gmra.mxu1 %vm372_vm1, %v4895_v57 }
 0x1e4   : > { %3407 = vmatmul.msk.f32.gmra.mxu2 %vm372_vm1, %v4184_v18 }
 0x1e5   : > { %v1454_v51 = vpop.f32.mrf.mxu3  ;;  %v1735_v62 = vpop.f32.mrf.mxu0 }
 0x1e6   : > { %v1492_v38 = vadd.f32 %v1454_v51, %v1214_v40 }
 0x1e7   : > { %v1179_v36 = vpop.f32.mrf.mxu2 }
 0x1e8   : > { %v4520_v34 = vadd.f32 %v1732_v50, %v1492_v38  ;;  %v936_v45 = vpop.f32.mrf.mxu1  ;;  %3475 = vmatmul.msk.f32.gmra.mxu0 %vm372_vm1, %v4204_v17  ;;  %v1215_v63 = vadd.f32 %v1179_v36, %v934_v22  ;;  %v2348_v38 = vld [vmem:[#allocation2 + $0x168] sm:$0xff] }
 0x1e9   : > { %v937_v29 = vadd.f32 %v936_v45, %v4898_v43 }
 0x1ea   : > { %3441 = vmatmul.msk.f32.gmra.mxu3 %vm372_vm1, %v2344_v39 }
 0x1eb   : > { %3374 = vmatmul.msk.f32.gmra.mxu1 %vm372_vm1, %v4189_v13 }
 0x1ec   : > { %3408 = vmatmul.msk.f32.gmra.mxu2 %vm372_vm1, %v4198_v32 }
 0x1ed   : > { %v1457_v18 = vpop.f32.mrf.mxu3  ;;  %v1738_v20 = vpop.f32.mrf.mxu0 }
 0x1ee   : > { %v1493_v23 = vadd.f32 %v1457_v18, %v1215_v63 }
 0x1ef   : > { %v1182_v2 = vpop.f32.mrf.mxu2 }
 0x1f0   : > { %v4530_v55 = vadd.f32 %v1735_v62, %v1493_v23  ;;  %v1923_v56 = vpop.f32.mrf.mxu1  ;;  %3476 = vmatmul.msk.f32.gmra.mxu0 %vm372_vm1, %v4219_v52  ;;  %v1216_v1 = vadd.f32 %v1182_v2, %v937_v29  ;;  %v4902_v29 = vld [vmem:[#allocation35_spill] sm:$0xff] }
 0x1f1   : > { %v2019_v57 = vadd.f32 %v1923_v56, %v4200_v47  ;;  %v2347_v47 = vld [vmem:[#allocation2 + $0x150] sm:$0xff] }
 0x1f2   : > { %3442 = vmatmul.msk.f32.gmra.mxu3 %vm372_vm1, %v2345_v53 }
 0x1f3   : > { %3375 = vmatmul.msk.f32.gmra.mxu1 %vm372_vm1, %v4204_v17 }
 0x1f4   : > { %3409 = vmatmul.msk.f32.gmra.mxu2 %vm372_vm1, %v4213_v49 }
 0x1f5   : > { %v1460_v13 = vpop.f32.mrf.mxu3  ;;  %v2758_v32 = vpop.f32.mrf.mxu0 }
 0x1f6   : > { %v1494_v6 = vadd.f32 %v1460_v13, %v1216_v1 }
 0x1f7   : > { %v2202_v25 = vpop.f32.mrf.mxu2 }
 0x1f8   : > { %v4540_v58 = vadd.f32 %v1738_v20, %v1494_v6  ;;  %v1926_v16 = vpop.f32.mrf.mxu1  ;;  %3477 = vmatmul.msk.f32.gmra.mxu0 %vm372_vm1, %v4234_v12  ;;  %v2298_v17 = vadd.f32 %v2202_v25, %v2019_v57  ;;  %v2349_v6 = vld [vmem:[#allocation2 + $0x170] sm:$0xff]  ;;  %v4903_v25 = vld [vmem:[#allocation34_spill] sm:$0xff] }
 0x1f9   : > { %v2020_v60 = vadd.f32 %v1926_v16, %v4899_v59  ;;  %v4905_v59 = vld [vmem:[#allocation38_spill] sm:$0xff] }
 0x1fa   : > { %3443 = vmatmul.msk.f32.gmra.mxu3 %vm372_vm1, %v2346_v10 }
 0x1fb   : > { %3376 = vmatmul.msk.f32.gmra.mxu1 %vm372_vm1, %v4219_v52 }
 0x1fc   : > { %3410 = vmatmul.msk.f32.gmra.mxu2 %vm372_vm1, %v4228_v15  ;;  %v4900_v15 = vld [vmem:[#allocation33_spill] sm:$0xff] }
 0x1fd   : > { %v2480_v49 = vpop.f32.mrf.mxu3  ;;  %v2761_v50 = vpop.f32.mrf.mxu0 }
 0x1fe   : > { %v2576_v46 = vadd.f32 %v2480_v49, %v2298_v17  ;;  %v4904_v49 = vld [vmem:[#allocation40_spill] sm:$0xff] }
 0x1ff   : > { %v2205_v35 = vpop.f32.mrf.mxu2 }
 0x200   : > { %v2854_v33 = vadd.f32 %v2758_v32, %v2576_v46  ;;  %v1929_v9 = vpop.f32.mrf.mxu1  ;;  %3478 = vmatmul.msk.f32.gmra.mxu0 %vm372_vm1, %v4249_v24  ;;  %v2299_v52 = vadd.f32 %v2205_v35, %v2020_v60 }
 0x201   : > { %v2021_v22 = vadd.f32 %v1929_v9, %v4901_v14  ;;  %v2073_v14 = vld [vmem:[#allocation2 + $0x18f] sm:$0xff] }
 0x202   : > { %2886 = vst.msk [vmem:[%s4554_s29] sm:$0xff] %vm372_vm1, %v2854_v33  ;;  %3444 = vmatmul.msk.f32.gmra.mxu3 %vm372_vm1, %v2347_v47  ;;  %v2987_v36 = vmul.f32 %v2854_v33, %v2854_v33  ;;  %v2918_v18 = vsel %vm372_vm1, %v2854_v33, 0.0 }
 0x203   : > { %3377 = vmatmul.msk.f32.gmra.mxu1 %vm372_vm1, %v4234_v12 }
 0x204   : > { %3411 = vmatmul.msk.f32.gmra.mxu2 %vm372_vm1, %v4900_v15  ;;  %v3019_v2 = vsel %vm372_vm1, %v2987_v36, 0.0  ;;  %v4907_v36 = vld [vmem:[#allocation42_spill] sm:$0xff] }
 0x205   : > { %v2483_v40 = vpop.f32.mrf.mxu3  ;;  %v2764_v51 = vpop.f32.mrf.mxu0 }
 0x206   : > { %v2577_v62 = vadd.f32 %v2483_v40, %v2299_v52  ;;  %v4906_v40 = vld [vmem:[#allocation36_spill] sm:$0xff] }
 0x207   : > { %v2208_v39 = vpop.f32.mrf.mxu2 }
 0x208   : > { %v2855_v45 = vadd.f32 %v2761_v50, %v2577_v62  ;;  %v1932_v63 = vpop.f32.mrf.mxu1  ;;  %3479 = vmatmul.msk.f32.gmra.mxu0 %vm372_vm1, %v4264_v30  ;;  %v2300_v23 = vadd.f32 %v2208_v39, %v2021_v22  ;;  %v1794_v39 = vld [vmem:[#allocation2 + $0x171] sm:$0xff] }
 0x209   : > { %v2022_v57 = vadd.f32 %v1932_v63, %v4903_v25  ;;  %v2074_v25 = vld [vmem:[#allocation2 + $0x1a7] sm:$0xff] }
 0x20a   : > { %2887 = vst.msk [vmem:[%s4554_s29 + $0x8] sm:$0xff] %vm372_vm1, %v2855_v45  ;;  %v2919_v12 = vsel %vm372_vm1, %v2855_v45, 0.0  ;;  %v2988_v20 = vmul.f32 %v2855_v45, %v2855_v45  ;;  %3445 = vmatmul.msk.f32.gmra.mxu3 %vm372_vm1, %v2348_v38  ;;  %v4908_v45 = vld [vmem:[#allocation37_spill] sm:$0xff] }
 0x20b   : > { %v2920_v53 = vadd.f32 %v2919_v12, %v2918_v18  ;;  %3378 = vmatmul.msk.f32.gmra.mxu1 %vm372_vm1, %v4249_v24 }
 0x20c   : > { %v3020_v43 = vsel %vm372_vm1, %v2988_v20, 0.0  ;;  %3412 = vmatmul.msk.f32.gmra.mxu2 %vm372_vm1, %v4902_v29  ;;  %v2351_v29 = vld [vmem:[#allocation2 + $0x190] sm:$0xff] }
 0x20d   : > { %v3021_v56 = vadd.f32 %v3020_v43, %v3019_v2  ;;  %v2486_v1 = vpop.f32.mrf.mxu3  ;;  %v2767_v13 = vpop.f32.mrf.mxu0  ;;  %v2629_v2 = vld [vmem:[#allocation2 + $0x191] sm:$0xff] }
 0x20e   : > { %v2578_v32 = vadd.f32 %v2486_v1, %v2300_v23  ;;  %v4909_v1 = vld [vmem:[#allocation39_spill] sm:$0xff] }
 0x20f   : > { %v2211_v10 = vpop.f32.mrf.mxu2 }
 0x210   : > { %v2856_v16 = vadd.f32 %v2764_v51, %v2578_v32  ;;  %v1935_v17 = vpop.f32.mrf.mxu1  ;;  %3480 = vmatmul.msk.f32.gmra.mxu0 %vm372_vm1, %v4904_v49  ;;  %v2301_v46 = vadd.f32 %v2211_v10, %v2022_v57  ;;  %v1795_v10 = vld [vmem:[#allocation2 + $0x189] sm:$0xff] }
 0x211   : > { %v2023_v51 = vadd.f32 %v1935_v17, %v4906_v40 }
 0x212   : > { %2888 = vst.msk [vmem:[%s4554_s29 + $0x10] sm:$0xff] %vm372_vm1, %v2856_v16  ;;  %v2921_v24 = vsel %vm372_vm1, %v2856_v16, 0.0  ;;  %v2989_v50 = vmul.f32 %v2856_v16, %v2856_v16  ;;  %3446 = vmatmul.msk.f32.gmra.mxu3 %vm372_vm1, %v2349_v6 }
 0x213   : > { %v2922_v47 = vadd.f32 %v2921_v24, %v2920_v53  ;;  %3379 = vmatmul.msk.f32.gmra.mxu1 %vm372_vm1, %v4264_v30 }
 0x214   : > { %v3022_v35 = vsel %vm372_vm1, %v2989_v50, 0.0  ;;  %3413 = vmatmul.msk.f32.gmra.mxu2 %vm372_vm1, %v4905_v59 }
 0x215   : > { %v3023_v60 = vadd.f32 %v3022_v35, %v3021_v56  ;;  %v2489_v33 = vpop.f32.mrf.mxu3  ;;  %v2770_v9 = vpop.f32.mrf.mxu0  ;;  %v2630_v35 = vld [vmem:[#allocation2 + $0x1a9] sm:$0xff] }
 0x216   : > { %v2579_v52 = vadd.f32 %v2489_v33, %v2301_v46 }
 0x217   : > { %v2214_v15 = vpop.f32.mrf.mxu2 }
 0x218   : > { %v2857_v62 = vadd.f32 %v2767_v13, %v2579_v52  ;;  %v1938_v38 = vpop.f32.mrf.mxu1  ;;  %3481 = vmatmul.msk.f32.gmra.mxu0 %vm372_vm1, %v4907_v36  ;;  %v2302_v63 = vadd.f32 %v2214_v15, %v2023_v51  ;;  %v2075_v51 = vld [vmem:[#allocation2 + $0x1af] sm:$0xff] }
 0x219   : > { %v2024_v13 = vadd.f32 %v1938_v38, %v4909_v1 }
 0x21a   : > { %2889 = vst.msk [vmem:[%s4554_s29 + $0x18] sm:$0xff] %vm372_vm1, %v2857_v62  ;;  %v2923_v30 = vsel %vm372_vm1, %v2857_v62, 0.0  ;;  %v2990_v22 = vmul.f32 %v2857_v62, %v2857_v62  ;;  %3447 = vmatmul.msk.f32.gmra.mxu3 %vm372_vm1, %v4908_v45 }
 0x21b   : > { %v2924_v18 = vadd.f32 %v2923_v30, %v2922_v47  ;;  %3380 = vmatmul.msk.f32.gmra.mxu1 %vm372_vm1, %v1794_v39 }
 0x21c   : > { %v3024_v12 = vsel %vm372_vm1, %v2990_v22, 0.0  ;;  %3414 = vmatmul.msk.f32.gmra.mxu2 %vm372_vm1, %v2073_v14 }
 0x21d   : > { %v3025_v20 = vadd.f32 %v3024_v12, %v3023_v60  ;;  %v2492_v23 = vpop.f32.mrf.mxu3  ;;  %v2773_v53 = vpop.f32.mrf.mxu0  ;;  %v2352_v60 = vld [vmem:[#allocation2 + $0x1a8] sm:$0xff]  ;;  %v2353_v12 = vld [vmem:[#allocation2 + $0x1b0] sm:$0xff] }
 0x21e   : > { %v2580_v43 = vadd.f32 %v2492_v23, %v2302_v63  ;;  %v2631_v63 = vld [vmem:[#allocation2 + $0x1b1] sm:$0xff]  ;;  %v4911_v23 = vld [vmem:[#allocation43_spill] sm:$0xff] }
 0x21f   : > { %v2217_v56 = vpop.f32.mrf.mxu2 }
 0x220   : > { %v2858_v32 = vadd.f32 %v2770_v9, %v2580_v43  ;;  %v1941_v6 = vpop.f32.mrf.mxu1  ;;  %3482 = vmatmul.msk.f32.gmra.mxu0 %vm372_vm1, %v2629_v2  ;;  %v2303_v17 = vadd.f32 %v2217_v56, %v2024_v13  ;;  %v4910_v9 = vld [vmem:[#allocation41_spill] sm:$0xff]  ;;  %v2076_v56 = vld [vmem:[#allocation2 + $0x1c7] sm:$0xff] }
 0x221   : > { %v2025_v52 = vadd.f32 %v1941_v6, %v4910_v9 }
 0x222   : > { %2890 = vst.msk [vmem:[%s4554_s29 + $0x20] sm:$0xff] %vm372_vm1, %v2858_v32  ;;  %v2925_v57 = vsel %vm372_vm1, %v2858_v32, 0.0  ;;  %v2991_v16 = vmul.f32 %v2858_v32, %v2858_v32  ;;  %3448 = vmatmul.msk.f32.gmra.mxu3 %vm372_vm1, %v2351_v29 }
 0x223   : > { %v2926_v49 = vadd.f32 %v2925_v57, %v2924_v18  ;;  %3381 = vmatmul.msk.f32.gmra.mxu1 %vm372_vm1, %v1795_v10 }
 0x224   : > { %v3026_v24 = vsel %vm372_vm1, %v2991_v16, 0.0  ;;  %3415 = vmatmul.msk.f32.gmra.mxu2 %vm372_vm1, %v2074_v25  ;;  %v2632_v16 = vld [vmem:[#allocation2 + $0x1c9] sm:$0xff] }
 0x225   : > { %v3027_v50 = vadd.f32 %v3026_v24, %v3025_v20  ;;  %v2495_v46 = vpop.f32.mrf.mxu3  ;;  %v2776_v47 = vpop.f32.mrf.mxu0 }
 0x226   : > { %v2581_v59 = vadd.f32 %v2495_v46, %v2303_v17 }
 0x227   : > { %v2220_v33 = vpop.f32.mrf.mxu2 }
 0x228   : > { %v2859_v15 = vadd.f32 %v2773_v53, %v2581_v59  ;;  %v1944_v40 = vpop.f32.mrf.mxu1  ;;  %3483 = vmatmul.msk.f32.gmra.mxu0 %vm372_vm1, %v2630_v35  ;;  %v2304_v39 = vadd.f32 %v2220_v33, %v2025_v52 }
 0x229   : > { %v2026_v53 = vadd.f32 %v1944_v40, %v4911_v23 }
 0x22a   : > { %2891 = vst.msk [vmem:[%s4554_s29 + $0x28] sm:$0xff] %vm372_vm1, %v2859_v15  ;;  %v2927_v62 = vsel %vm372_vm1, %v2859_v15, 0.0  ;;  %v2992_v38 = vmul.f32 %v2859_v15, %v2859_v15  ;;  %3449 = vmatmul.msk.f32.gmra.mxu3 %vm372_vm1, %v2352_v60  ;;  %v2077_v60 = vld [vmem:[#allocation2 + $0x1cf] sm:$0xff] }
 0x22b   : > { %v2928_v36 = vadd.f32 %v2927_v62, %v2926_v49  ;;  %3382 = vmatmul.msk.f32.gmra.mxu1 %vm372_vm1, %v2629_v2  ;;  %v2354_v49 = vld [vmem:[#allocation2 + $0x1c8] sm:$0xff] }
 0x22c   : > { %v3028_v14 = vsel %vm372_vm1, %v2992_v38, 0.0  ;;  %3416 = vmatmul.msk.f32.gmra.mxu2 %vm372_vm1, %v2075_v51  ;;  %v2633_v38 = vld [vmem:[#allocation2 + $0x1d1] sm:$0xff] }
 0x22d   : > { %v3029_v30 = vadd.f32 %v3028_v14, %v3027_v50  ;;  %v2498_v22 = vpop.f32.mrf.mxu3  ;;  %v2779_v45 = vpop.f32.mrf.mxu0  ;;  %v4912_v50 = vld [vmem:[#allocation44_spill] sm:$0xff] }
 0x22e   : > { %v2582_v18 = vadd.f32 %v2498_v22, %v2304_v39 }
 0x22f   : > { %v2223_v20 = vpop.f32.mrf.mxu2 }
 0x230   : > { %v2860_v43 = vadd.f32 %v2776_v47, %v2582_v18  ;;  %v1947_v29 = vpop.f32.mrf.mxu1  ;;  %3484 = vmatmul.msk.f32.gmra.mxu0 %vm372_vm1, %v2631_v63  ;;  %v2305_v13 = vadd.f32 %v2223_v20, %v2026_v53  ;;  %v2078_v18 = vld [vmem:[#allocation2 + $0x1e7] sm:$0xff] }
 0x231   : > { %v2027_v46 = vadd.f32 %v1947_v29, %v4912_v50 }
 0x232   : > { %2892 = vst.msk [vmem:[%s4554_s29 + $0x30] sm:$0xff] %vm372_vm1, %v2860_v43  ;;  %v2929_v2 = vsel %vm372_vm1, %v2860_v43, 0.0  ;;  %v2993_v1 = vmul.f32 %v2860_v43, %v2860_v43  ;;  %3450 = vmatmul.msk.f32.gmra.mxu3 %vm372_vm1, %v2353_v12 }
 0x233   : > { %v2930_v32 = vadd.f32 %v2929_v2, %v2928_v36  ;;  %3383 = vmatmul.msk.f32.gmra.mxu1 %vm372_vm1, %v2630_v35  ;;  %v2355_v36 = vld [vmem:[#allocation2 + $0x1d0] sm:$0xff] }
 0x234   : > { %v3030_v6 = vsel %vm372_vm1, %v2993_v1, 0.0  ;;  %3417 = vmatmul.msk.f32.gmra.mxu2 %vm372_vm1, %v2076_v56  ;;  %v2634_v56 = vld [vmem:[#allocation2 + $0x1e9] sm:$0xff] }
 0x235   : > { %v3031_v10 = vadd.f32 %v3030_v6, %v3029_v30  ;;  %v2501_v25 = vpop.f32.mrf.mxu3  ;;  %v2782_v57 = vpop.f32.mrf.mxu0  ;;  %v2356_v1 = vld [vmem:[#allocation2 + $0x1e8] sm:$0xff] }
 0x236   : > { %v2583_v17 = vadd.f32 %v2501_v25, %v2305_v13  ;;  %v2079_v25 = vld [vmem:[#allocation2 + $0x1ef] sm:$0xff] }
 0x237   : > { %v2226_v24 = vpop.f32.mrf.mxu2 }
 0x238   : > { %v2861_v47 = vadd.f32 %v2779_v45, %v2583_v17  ;;  %v1950_v59 = vpop.f32.mrf.mxu1  ;;  %3485 = vmatmul.msk.f32.gmra.mxu0 %vm372_vm1, %v2632_v16  ;;  %v2306_v9 = vadd.f32 %v2226_v24, %v2027_v46 }
 0x239   : > { %v2028_v30 = vadd.f32 %v1950_v59, %v4327_v19 }
 0x23a   : > { %2893 = vst.msk [vmem:[%s4554_s29 + $0x38] sm:$0xff] %vm372_vm1, %v2861_v47  ;;  %v2931_v35 = vsel %vm372_vm1, %v2861_v47, 0.0  ;;  %v2994_v33 = vmul.f32 %v2861_v47, %v2861_v47  ;;  %3451 = vmatmul.msk.f32.gmra.mxu3 %vm372_vm1, %v2354_v49  ;;  %v2635_v47 = vld [vmem:[#allocation2 + $0x1f1] sm:$0xff] }
 0x23b   : > { %v2932_v52 = vadd.f32 %v2931_v35, %v2930_v32  ;;  %3384 = vmatmul.msk.f32.gmra.mxu1 %vm372_vm1, %v2631_v63 }
 0x23c   : > { %v3032_v15 = vsel %vm372_vm1, %v2994_v33, 0.0  ;;  %3418 = vmatmul.msk.f32.gmra.mxu2 %vm372_vm1, %v2077_v60  ;;  %v2357_v60 = vld [vmem:[#allocation2 + $0x1f0] sm:$0xff] }
 0x23d   : > { %v3033_v40 = vadd.f32 %v3032_v15, %v3031_v10  ;;  %v2504_v51 = vpop.f32.mrf.mxu3  ;;  %v2785_v62 = vpop.f32.mrf.mxu0  ;;  %v2080_v15 = vld [vmem:[#allocation2 + $0x207] sm:$0xff] }
 0x23e   : > { %v2584_v39 = vadd.f32 %v2504_v51, %v2306_v9 }
 0x23f   : > { %v2229_v14 = vpop.f32.mrf.mxu2 }
 0x240   : > { %v2862_v22 = vadd.f32 %v2782_v57, %v2584_v39  ;;  %v1953_v45 = vpop.f32.mrf.mxu1  ;;  %3486 = vmatmul.msk.f32.gmra.mxu0 %vm372_vm1, %v2633_v38  ;;  %v2307_v20 = vadd.f32 %v2229_v14, %v2028_v30  ;;  %v2636_v30 = vld [vmem:[#allocation2 + $0x209] sm:$0xff] }
 0x241   : > { %v2029_v32 = vadd.f32 %v1953_v45, %v4336_v28  ;;  %v2358_v45 = vld [vmem:[#allocation2 + $0x208] sm:$0xff] }
 0x242   : > { %2894 = vst.msk [vmem:[%s4554_s29 + $0x40] sm:$0xff] %vm372_vm1, %v2862_v22  ;;  %v2933_v63 = vsel %vm372_vm1, %v2862_v22, 0.0  ;;  %v2995_v12 = vmul.f32 %v2862_v22, %v2862_v22  ;;  %3452 = vmatmul.msk.f32.gmra.mxu3 %vm372_vm1, %v2355_v36 }
 0x243   : > { %v2934_v23 = vadd.f32 %v2933_v63, %v2932_v52  ;;  %3385 = vmatmul.msk.f32.gmra.mxu1 %vm372_vm1, %v2632_v16 }
 0x244   : > { %v3034_v53 = vsel %vm372_vm1, %v2995_v12, 0.0  ;;  %3419 = vmatmul.msk.f32.gmra.mxu2 %vm372_vm1, %v2078_v18 }
 0x245   : > { %v3035_v19 = vadd.f32 %v3034_v53, %v3033_v40  ;;  %v2507_v43 = vpop.f32.mrf.mxu3  ;;  %v2788_v29 = vpop.f32.mrf.mxu0 }
 0x246   : > { %v2585_v2 = vadd.f32 %v2507_v43, %v2307_v20 }
 0x247   : > { %v2232_v13 = vpop.f32.mrf.mxu2 }
 0x248   : > { %v2863_v6 = vadd.f32 %v2785_v62, %v2585_v2  ;;  %v1956_v10 = vpop.f32.mrf.mxu1  ;;  %3487 = vmatmul.msk.f32.gmra.mxu0 %vm372_vm1, %v2634_v56  ;;  %v2308_v17 = vadd.f32 %v2232_v13, %v2029_v32  ;;  %v2637_v13 = vld [vmem:[#allocation2 + $0x211] sm:$0xff] }
 0x249   : > { %v2030_v33 = vadd.f32 %v1956_v10, %v4344_v31 }
 0x24a   : > { %2895 = vst.msk [vmem:[%s4554_s29 + $0x48] sm:$0xff] %vm372_vm1, %v2863_v6  ;;  %v2935_v57 = vsel %vm372_vm1, %v2863_v6, 0.0  ;;  %v2996_v16 = vmul.f32 %v2863_v6, %v2863_v6  ;;  %3453 = vmatmul.msk.f32.gmra.mxu3 %vm372_vm1, %v2356_v1  ;;  %v2359_v6 = vld [vmem:[#allocation2 + $0x210] sm:$0xff] }
 0x24b   : > { %v2936_v49 = vadd.f32 %v2935_v57, %v2934_v23  ;;  %3386 = vmatmul.msk.f32.gmra.mxu1 %vm372_vm1, %v2633_v38  ;;  %v2081_v23 = vld [vmem:[#allocation2 + $0x20f] sm:$0xff] }
 0x24c   : > { %v3036_v24 = vsel %vm372_vm1, %v2996_v16, 0.0  ;;  %3420 = vmatmul.msk.f32.gmra.mxu2 %vm372_vm1, %v2079_v25 }
 0x24d   : > { %v3037_v28 = vadd.f32 %v3036_v24, %v3035_v19  ;;  %v2510_v50 = vpop.f32.mrf.mxu3  ;;  %v2791_v46 = vpop.f32.mrf.mxu0 }
 0x24e   : > { %v2586_v59 = vadd.f32 %v2510_v50, %v2308_v17  ;;  %v2082_v17 = vld [vmem:[#allocation2 + $0x227] sm:$0xff] }
 0x24f   : > { %v2235_v35 = vpop.f32.mrf.mxu2 }
 0x250   : > { %v2864_v9 = vadd.f32 %v2788_v29, %v2586_v59  ;;  %v1959_v52 = vpop.f32.mrf.mxu1  ;;  %3488 = vmatmul.msk.f32.gmra.mxu0 %vm372_vm1, %v2635_v47  ;;  %v2309_v62 = vadd.f32 %v2235_v35, %v2030_v33  ;;  %v2360_v33 = vld [vmem:[#allocation2 + $0x228] sm:$0xff] }
 0x251   : > { %v2031_v63 = vadd.f32 %v1959_v52, %v4352_v44 }
 0x252   : > { %2896 = vst.msk [vmem:[%s4554_s29 + $0x50] sm:$0xff] %vm372_vm1, %v2864_v9  ;;  %v2937_v40 = vsel %vm372_vm1, %v2864_v9, 0.0  ;;  %v2997_v51 = vmul.f32 %v2864_v9, %v2864_v9  ;;  %3454 = vmatmul.msk.f32.gmra.mxu3 %vm372_vm1, %v2357_v60  ;;  %v2638_v60 = vld [vmem:[#allocation2 + $0x229] sm:$0xff] }
 0x253   : > { %v2938_v38 = vadd.f32 %v2937_v40, %v2936_v49  ;;  %3387 = vmatmul.msk.f32.gmra.mxu1 %vm372_vm1, %v2634_v56 }
 0x254   : > { %v3038_v39 = vsel %vm372_vm1, %v2997_v51, 0.0  ;;  %3421 = vmatmul.msk.f32.gmra.mxu2 %vm372_vm1, %v2080_v15  ;;  %v2083_v51 = vld [vmem:[#allocation2 + $0x22f] sm:$0xff] }
 0x255   : > { %v3039_v31 = vadd.f32 %v3038_v39, %v3037_v28  ;;  %v2513_v36 = vpop.f32.mrf.mxu3  ;;  %v2794_v14 = vpop.f32.mrf.mxu0 }
 0x256   : > { %v2587_v22 = vadd.f32 %v2513_v36, %v2309_v62 }
 0x257   : > { %v2238_v18 = vpop.f32.mrf.mxu2 }
 0x258   : > { %v2865_v12 = vadd.f32 %v2791_v46, %v2587_v22  ;;  %v1962_v20 = vpop.f32.mrf.mxu1  ;;  %3489 = vmatmul.msk.f32.gmra.mxu0 %vm372_vm1, %v2636_v30  ;;  %v2310_v43 = vadd.f32 %v2238_v18, %v2031_v63  ;;  %v2639_v22 = vld [vmem:[#allocation2 + $0x231] sm:$0xff] }
 0x259   : > { %v2032_v25 = vadd.f32 %v1962_v20, %v4360_v54  ;;  %v2361_v18 = vld [vmem:[#allocation2 + $0x230] sm:$0xff] }
 0x25a   : > { %2897 = vst.msk [vmem:[%s4554_s29 + $0x58] sm:$0xff] %vm372_vm1, %v2865_v12  ;;  %v2939_v53 = vsel %vm372_vm1, %v2865_v12, 0.0  ;;  %v2998_v19 = vmul.f32 %v2865_v12, %v2865_v12  ;;  %3455 = vmatmul.msk.f32.gmra.mxu3 %vm372_vm1, %v2358_v45 }
 0x25b   : > { %v2940_v29 = vadd.f32 %v2939_v53, %v2938_v38  ;;  %3388 = vmatmul.msk.f32.gmra.mxu1 %vm372_vm1, %v2635_v47 }
 0x25c   : > { %v3040_v56 = vsel %vm372_vm1, %v2998_v19, 0.0  ;;  %3422 = vmatmul.msk.f32.gmra.mxu2 %vm372_vm1, %v2081_v23 }
 0x25d   : > { %v3041_v44 = vadd.f32 %v3040_v56, %v3039_v31  ;;  %v2516_v2 = vpop.f32.mrf.mxu3  ;;  %v2797_v1 = vpop.f32.mrf.mxu0 }
 0x25e   : > { %v2588_v32 = vadd.f32 %v2516_v2, %v2310_v43 }
 0x25f   : > { %v2241_v10 = vpop.f32.mrf.mxu2 }
 0x260   : > { %v2866_v57 = vadd.f32 %v2794_v14, %v2588_v32  ;;  %v1965_v16 = vpop.f32.mrf.mxu1  ;;  %3490 = vmatmul.msk.f32.gmra.mxu0 %vm372_vm1, %v2637_v13  ;;  %v2311_v28 = vadd.f32 %v2241_v10, %v2032_v25 }
 0x261   : > { %v2033_v52 = vadd.f32 %v1965_v16, %v4367_v5 }
 0x262   : > { %2898 = vst.msk [vmem:[%s4554_s29 + $0x60] sm:$0xff] %vm372_vm1, %v2866_v57  ;;  %v2941_v49 = vsel %vm372_vm1, %v2866_v57, 0.0  ;;  %v2999_v24 = vmul.f32 %v2866_v57, %v2866_v57  ;;  %3456 = vmatmul.msk.f32.gmra.mxu3 %vm372_vm1, %v2359_v6 }
 0x263   : > { %v2942_v50 = vadd.f32 %v2941_v49, %v2940_v29  ;;  %3389 = vmatmul.msk.f32.gmra.mxu1 %vm372_vm1, %v2636_v30 }
 0x264   : > { %v3042_v46 = vsel %vm372_vm1, %v2999_v24, 0.0  ;;  %3423 = vmatmul.msk.f32.gmra.mxu2 %vm372_vm1, %v2082_v17 }
 0x265   : > { %v3043_v54 = vadd.f32 %v3042_v46, %v3041_v44  ;;  %v2519_v47 = vpop.f32.mrf.mxu3  ;;  %v2800_v59 = vpop.f32.mrf.mxu0 }
 0x266   : > { %v2589_v35 = vadd.f32 %v2519_v47, %v2311_v28 }
 0x267   : > { %v2244_v9 = vpop.f32.mrf.mxu2 }
 0x268   : > { %v2867_v15 = vadd.f32 %v2797_v1, %v2589_v35  ;;  %v1968_v40 = vpop.f32.mrf.mxu1  ;;  %3491 = vmatmul.msk.f32.gmra.mxu0 %vm372_vm1, %v2638_v60  ;;  %v2312_v39 = vadd.f32 %v2244_v9, %v2033_v52 }
 0x269   : > { %v2034_v12 = vadd.f32 %v1968_v40, %v4376_v41 }
 0x26a   : > { %2899 = vst.msk [vmem:[%s4554_s29 + $0x68] sm:$0xff] %vm372_vm1, %v2867_v15  ;;  %v2943_v62 = vsel %vm372_vm1, %v2867_v15, 0.0  ;;  %v3000_v38 = vmul.f32 %v2867_v15, %v2867_v15  ;;  %3457 = vmatmul.msk.f32.gmra.mxu3 %vm372_vm1, %v2360_v33 }
 0x26b   : > { %v2944_v31 = vadd.f32 %v2943_v62, %v2942_v50  ;;  %3390 = vmatmul.msk.f32.gmra.mxu1 %vm372_vm1, %v2637_v13 }
 0x26c   : > { %v3044_v36 = vsel %vm372_vm1, %v3000_v38, 0.0  ;;  %3424 = vmatmul.msk.f32.gmra.mxu2 %vm372_vm1, %v2083_v51 }
 0x26d   : > { %v3045_v5 = vadd.f32 %v3044_v36, %v3043_v54  ;;  %v2522_v14 = vpop.f32.mrf.mxu3  ;;  %v2803_v30 = vpop.f32.mrf.mxu0 }
 0x26e   : > { %v2590_v45 = vadd.f32 %v2522_v14, %v2312_v39 }
 0x26f   : > { %v2247_v63 = vpop.f32.mrf.mxu2 }
 0x270   : > { %v2868_v20 = vadd.f32 %v2800_v59, %v2590_v45  ;;  %v1971_v23 = vpop.f32.mrf.mxu1  ;;  %3492 = vmatmul.msk.f32.gmra.mxu0 %vm372_vm1, %v2639_v22  ;;  %v2313_v43 = vadd.f32 %v2247_v63, %v2034_v12 }
 0x271   : > { %v2035_v32 = vadd.f32 %v1971_v23, %v4387_v26 }
 0x272   : > { %2900 = vst.msk [vmem:[%s4554_s29 + $0x70] sm:$0xff] %vm372_vm1, %v2868_v20  ;;  %v2945_v53 = vsel %vm372_vm1, %v2868_v20, 0.0  ;;  %v3001_v19 = vmul.f32 %v2868_v20, %v2868_v20  ;;  %3458 = vmatmul.msk.f32.gmra.mxu3 %vm372_vm1, %v2361_v18 }
 0x273   : > { %v2946_v29 = vadd.f32 %v2945_v53, %v2944_v31 }
 0x274   : > { %v3046_v56 = vsel %vm372_vm1, %v3001_v19, 0.0 }
 0x275   : > { %v3047_v44 = vadd.f32 %v3046_v56, %v3045_v5  ;;  %v2525_v2 = vpop.f32.mrf.mxu3  ;;  %v2806_v1 = vpop.f32.mrf.mxu0 }
 0x276   : > { %v2591_v41 = vadd.f32 %v2525_v2, %v2313_v43 }
 0x277   : > { %v2250_v13 = vpop.f32.mrf.mxu2 }
 0x278   : > { %v2869_v6 = vadd.f32 %v2803_v30, %v2591_v41  ;;  %v1974_v10 = vpop.f32.mrf.mxu1  ;;  %v2314_v16 = vadd.f32 %v2250_v13, %v2035_v32 }
 0x279   : > { %v2036_v47 = vadd.f32 %v1974_v10, %v4398_v4 }
 0x27a   : > { %2901 = vst.msk [vmem:[%s4554_s29 + $0x78] sm:$0xff] %vm372_vm1, %v2869_v6  ;;  %v2947_v25 = vsel %vm372_vm1, %v2869_v6, 0.0  ;;  %v3002_v57 = vmul.f32 %v2869_v6, %v2869_v6 }
 0x27b   : > { %v2948_v17 = vadd.f32 %v2947_v25, %v2946_v29 }
 0x27c   : > { %v3048_v49 = vsel %vm372_vm1, %v3002_v57, 0.0 }
 0x27d   : > { %v3049_v24 = vadd.f32 %v3048_v49, %v3047_v44  ;;  %v2528_v28 = vpop.f32.mrf.mxu3  ;;  %v2809_v50 = vpop.f32.mrf.mxu0 }
 0x27e   : > { %v2592_v46 = vadd.f32 %v2528_v28, %v2314_v16 }
 0x27f   : > { %v2253_v54 = vpop.f32.mrf.mxu2 }
 0x280   : > { %v2870_v26 = vadd.f32 %v2806_v1, %v2592_v46  ;;  %v1977_v59 = vpop.f32.mrf.mxu1  ;;  %v2315_v33 = vadd.f32 %v2253_v54, %v2036_v47 }
 0x281   : > { %v2037_v39 = vadd.f32 %v1977_v59, %v4409_v42 }
 0x282   : > { %2902 = vst.msk [vmem:[%s4554_s29 + $0x80] sm:$0xff] %vm372_vm1, %v2870_v26  ;;  %v2949_v60 = vsel %vm372_vm1, %v2870_v26, 0.0  ;;  %v3003_v35 = vmul.f32 %v2870_v26, %v2870_v26 }
 0x283   : > { %v2950_v9 = vadd.f32 %v2949_v60, %v2948_v17 }
 0x284   : > { %v3050_v52 = vsel %vm372_vm1, %v3003_v35, 0.0 }
 0x285   : > { %v3051_v15 = vadd.f32 %v3050_v52, %v3049_v24  ;;  %v2531_v40 = vpop.f32.mrf.mxu3  ;;  %v2812_v51 = vpop.f32.mrf.mxu0 }
 0x286   : > { %v2593_v62 = vadd.f32 %v2531_v40, %v2315_v33 }
 0x287   : > { %v2256_v38 = vpop.f32.mrf.mxu2 }
 0x288   : > { %v2871_v4 = vadd.f32 %v2809_v50, %v2593_v62  ;;  %v1980_v31 = vpop.f32.mrf.mxu1  ;;  %v2316_v14 = vadd.f32 %v2256_v38, %v2037_v39 }
 0x289   : > { %v2038_v23 = vadd.f32 %v1980_v31, %v4420_v37 }
 0x28a   : > { %2903 = vst.msk [vmem:[%s4554_s29 + $0x88] sm:$0xff] %vm372_vm1, %v2871_v4  ;;  %v2951_v36 = vsel %vm372_vm1, %v2871_v4, 0.0  ;;  %v3004_v5 = vmul.f32 %v2871_v4, %v2871_v4 }
 0x28b   : > { %v2952_v30 = vadd.f32 %v2951_v36, %v2950_v9 }
 0x28c   : > { %v3052_v22 = vsel %vm372_vm1, %v3004_v5, 0.0 }
 0x28d   : > { %v3053_v45 = vadd.f32 %v3052_v22, %v3051_v15  ;;  %v2534_v18 = vpop.f32.mrf.mxu3  ;;  %v2815_v63 = vpop.f32.mrf.mxu0 }
 0x28e   : > { %v2594_v12 = vadd.f32 %v2534_v18, %v2316_v14 }
 0x28f   : > { %v2259_v20 = vpop.f32.mrf.mxu2 }
 0x290   : > { %v2872_v42 = vadd.f32 %v2812_v51, %v2594_v12  ;;  %v1983_v53 = vpop.f32.mrf.mxu1  ;;  %v2317_v29 = vadd.f32 %v2259_v20, %v2038_v23 }
 0x291   : > { %v2039_v6 = vadd.f32 %v1983_v53, %v4430_v48 }
 0x292   : > { %2904 = vst.msk [vmem:[%s4554_s29 + $0x90] sm:$0xff] %vm372_vm1, %v2872_v42  ;;  %v2953_v19 = vsel %vm372_vm1, %v2872_v42, 0.0  ;;  %v3005_v43 = vmul.f32 %v2872_v42, %v2872_v42 }
 0x293   : > { %v2954_v56 = vadd.f32 %v2953_v19, %v2952_v30 }
 0x294   : > { %v3054_v44 = vsel %vm372_vm1, %v3005_v43, 0.0 }
 0x295   : > { %v3055_v2 = vadd.f32 %v3054_v44, %v3053_v45  ;;  %v2537_v1 = vpop.f32.mrf.mxu3  ;;  %v2818_v41 = vpop.f32.mrf.mxu0 }
 0x296   : > { %v2595_v13 = vadd.f32 %v2537_v1, %v2317_v29 }
 0x297   : > { %v2262_v32 = vpop.f32.mrf.mxu2 }
 0x298   : > { %v2873_v37 = vadd.f32 %v2815_v63, %v2595_v13  ;;  %v1986_v10 = vpop.f32.mrf.mxu1  ;;  %v2318_v16 = vadd.f32 %v2262_v32, %v2039_v6 }
 0x299   : > { %v2040_v47 = vadd.f32 %v1986_v10, %v4440_v27 }
 0x29a   : > { %2905 = vst.msk [vmem:[%s4554_s29 + $0x98] sm:$0xff] %vm372_vm1, %v2873_v37  ;;  %v2955_v25 = vsel %vm372_vm1, %v2873_v37, 0.0  ;;  %v3006_v57 = vmul.f32 %v2873_v37, %v2873_v37 }
 0x29b   : > { %v2956_v17 = vadd.f32 %v2955_v25, %v2954_v56 }
 0x29c   : > { %v3056_v49 = vsel %vm372_vm1, %v3006_v57, 0.0 }
 0x29d   : > { %v3057_v24 = vadd.f32 %v3056_v49, %v3055_v2  ;;  %v2540_v28 = vpop.f32.mrf.mxu3  ;;  %v2821_v50 = vpop.f32.mrf.mxu0 }
 0x29e   : > { %v2596_v46 = vadd.f32 %v2540_v28, %v2318_v16 }
 0x29f   : > { %v2265_v54 = vpop.f32.mrf.mxu2 }
 0x2a0   : > { %v2874_v48 = vadd.f32 %v2818_v41, %v2596_v46  ;;  %v1989_v26 = vpop.f32.mrf.mxu1  ;;  %v2319_v35 = vadd.f32 %v2265_v54, %v2040_v47 }
 0x2a1   : > { %v2041_v38 = vadd.f32 %v1989_v26, %v4450_v61 }
 0x2a2   : > { %2906 = vst.msk [vmem:[%s4554_s29 + $0xa0] sm:$0xff] %vm372_vm1, %v2874_v48  ;;  %v2957_v59 = vsel %vm372_vm1, %v2874_v48, 0.0  ;;  %v3007_v60 = vmul.f32 %v2874_v48, %v2874_v48 }
 0x2a3   : > { %v2958_v33 = vadd.f32 %v2957_v59, %v2956_v17 }
 0x2a4   : > { %v3058_v9 = vsel %vm372_vm1, %v3007_v60, 0.0 }
 0x2a5   : > { %v3059_v52 = vadd.f32 %v3058_v9, %v3057_v24  ;;  %v2543_v15 = vpop.f32.mrf.mxu3  ;;  %v2824_v40 = vpop.f32.mrf.mxu0 }
 0x2a6   : > { %v2597_v51 = vadd.f32 %v2543_v15, %v2319_v35 }
 0x2a7   : > { %v2268_v62 = vpop.f32.mrf.mxu2 }
 0x2a8   : > { %v2875_v27 = vadd.f32 %v2821_v50, %v2597_v51  ;;  %v1992_v39 = vpop.f32.mrf.mxu1  ;;  %v2320_v36 = vadd.f32 %v2268_v62, %v2041_v38 }
 0x2a9   : > { %v2042_v12 = vadd.f32 %v1992_v39, %v4460_v8 }
 0x2aa   : > { %2907 = vst.msk [vmem:[%s4554_s29 + $0xa8] sm:$0xff] %vm372_vm1, %v2875_v27  ;;  %v2959_v4 = vsel %vm372_vm1, %v2875_v27, 0.0  ;;  %v3008_v31 = vmul.f32 %v2875_v27, %v2875_v27 }
 0x2ab   : > { %v2960_v5 = vadd.f32 %v2959_v4, %v2958_v33 }
 0x2ac   : > { %v3060_v14 = vsel %vm372_vm1, %v3008_v31, 0.0 }
 0x2ad   : > { %v3061_v30 = vadd.f32 %v3060_v14, %v3059_v52  ;;  %v2546_v22 = vpop.f32.mrf.mxu3  ;;  %v2827_v45 = vpop.f32.mrf.mxu0 }
 0x2ae   : > { %v2598_v18 = vadd.f32 %v2546_v22, %v2320_v36 }
 0x2af   : > { %v2271_v63 = vpop.f32.mrf.mxu2 }
 0x2b0   : > { %v2876_v61 = vadd.f32 %v2824_v40, %v2598_v18  ;;  %v1995_v20 = vpop.f32.mrf.mxu1  ;;  %v2321_v53 = vadd.f32 %v2271_v63, %v2042_v12 }
 0x2b1   : > { %v2043_v41 = vadd.f32 %v1995_v20, %v4470_v7 }
 0x2b2   : > { %2908 = vst.msk [vmem:[%s4554_s29 + $0xb0] sm:$0xff] %vm372_vm1, %v2876_v61  ;;  %v2961_v23 = vsel %vm372_vm1, %v2876_v61, 0.0  ;;  %v3009_v42 = vmul.f32 %v2876_v61, %v2876_v61 }
 0x2b3   : > { %v2962_v19 = vadd.f32 %v2961_v23, %v2960_v5 }
 0x2b4   : > { %v3062_v43 = vsel %vm372_vm1, %v3009_v42, 0.0 }
 0x2b5   : > { %v3063_v29 = vadd.f32 %v3062_v43, %v3061_v30  ;;  %v2549_v56 = vpop.f32.mrf.mxu3  ;;  %v2830_v44 = vpop.f32.mrf.mxu0 }
 0x2b6   : > { %v2599_v2 = vadd.f32 %v2549_v56, %v2321_v53 }
 0x2b7   : > { %v2274_v1 = vpop.f32.mrf.mxu2 }
 0x2b8   : > { %v2877_v8 = vadd.f32 %v2827_v45, %v2599_v2  ;;  %v1998_v13 = vpop.f32.mrf.mxu1  ;;  %v2322_v37 = vadd.f32 %v2274_v1, %v2043_v41 }
 0x2b9   : > { %v2044_v28 = vadd.f32 %v1998_v13, %v4480_v11 }
 0x2ba   : > { %2909 = vst.msk [vmem:[%s4554_s29 + $0xb8] sm:$0xff] %vm372_vm1, %v2877_v8  ;;  %v2963_v32 = vsel %vm372_vm1, %v2877_v8, 0.0  ;;  %v3010_v6 = vmul.f32 %v2877_v8, %v2877_v8 }
 0x2bb   : > { %v2964_v10 = vadd.f32 %v2963_v32, %v2962_v19 }
 0x2bc   : > { %v3064_v25 = vsel %vm372_vm1, %v3010_v6, 0.0 }
 0x2bd   : > { %v3065_v57 = vadd.f32 %v3064_v25, %v3063_v29  ;;  %v2552_v16 = vpop.f32.mrf.mxu3  ;;  %v2833_v17 = vpop.f32.mrf.mxu0 }
 0x2be   : > { %v2600_v49 = vadd.f32 %v2552_v16, %v2322_v37 }
 0x2bf   : > { %v2277_v24 = vpop.f32.mrf.mxu2 }
 0x2c0   : > { %v2878_v7 = vadd.f32 %v2830_v44, %v2600_v49  ;;  %v2001_v50 = vpop.f32.mrf.mxu1  ;;  %v2323_v47 = vadd.f32 %v2277_v24, %v2044_v28 }
 0x2c1   : > { %v2045_v52 = vadd.f32 %v2001_v50, %v4490_v0 }
 0x2c2   : > { %2910 = vst.msk [vmem:[%s4554_s29 + $0xc0] sm:$0xff] %vm372_vm1, %v2878_v7  ;;  %v2965_v46 = vsel %vm372_vm1, %v2878_v7, 0.0  ;;  %v3011_v54 = vmul.f32 %v2878_v7, %v2878_v7 }
 0x2c3   : > { %v2966_v48 = vadd.f32 %v2965_v46, %v2964_v10 }
 0x2c4   : > { %v3066_v26 = vsel %vm372_vm1, %v3011_v54, 0.0 }
 0x2c5   : > { %v3067_v59 = vadd.f32 %v3066_v26, %v3065_v57  ;;  %v2555_v60 = vpop.f32.mrf.mxu3  ;;  %v2836_v35 = vpop.f32.mrf.mxu0 }
 0x2c6   : > { %v2601_v33 = vadd.f32 %v2555_v60, %v2323_v47 }
 0x2c7   : > { %v2280_v9 = vpop.f32.mrf.mxu2 }
 0x2c8   : > { %v2879_v11 = vadd.f32 %v2833_v17, %v2601_v33  ;;  %v2004_v15 = vpop.f32.mrf.mxu1  ;;  %v2324_v62 = vadd.f32 %v2280_v9, %v2045_v52 }
 0x2c9   : > { %v2046_v14 = vadd.f32 %v2004_v15, %v4500_v3 }
 0x2ca   : > { %2911 = vst.msk [vmem:[%s4554_s29 + $0xc8] sm:$0xff] %vm372_vm1, %v2879_v11  ;;  %v2967_v40 = vsel %vm372_vm1, %v2879_v11, 0.0  ;;  %v3012_v51 = vmul.f32 %v2879_v11, %v2879_v11 }
 0x2cb   : > { %v2968_v38 = vadd.f32 %v2967_v40, %v2966_v48 }
 0x2cc   : > { %v3068_v27 = vsel %vm372_vm1, %v3012_v51, 0.0 }
 0x2cd   : > { %v3069_v39 = vadd.f32 %v3068_v27, %v3067_v59  ;;  %v2558_v4 = vpop.f32.mrf.mxu3  ;;  %v2839_v31 = vpop.f32.mrf.mxu0 }
 0x2ce   : > { %v2602_v36 = vadd.f32 %v2558_v4, %v2324_v62 }
 0x2cf   : > { %v2283_v5 = vpop.f32.mrf.mxu2 }
 0x2d0   : > { %v2880_v0 = vadd.f32 %v2836_v35, %v2602_v36  ;;  %v2007_v30 = vpop.f32.mrf.mxu1  ;;  %v2325_v18 = vadd.f32 %v2283_v5, %v2046_v14 }
 0x2d1   : > { %v2047_v19 = vadd.f32 %v2007_v30, %v4510_v21 }
 0x2d2   : > { %2912 = vst.msk [vmem:[%s4554_s29 + $0xd0] sm:$0xff] %vm372_vm1, %v2880_v0  ;;  %v2969_v22 = vsel %vm372_vm1, %v2880_v0, 0.0  ;;  %v3013_v45 = vmul.f32 %v2880_v0, %v2880_v0 }
 0x2d3   : > { %v2970_v63 = vadd.f32 %v2969_v22, %v2968_v38 }
 0x2d4   : > { %v3070_v12 = vsel %vm372_vm1, %v3013_v45, 0.0 }
 0x2d5   : > { %v3071_v61 = vadd.f32 %v3070_v12, %v3069_v39  ;;  %v2561_v20 = vpop.f32.mrf.mxu3  ;;  %v2842_v53 = vpop.f32.mrf.mxu0 }
 0x2d6   : > { %v2603_v23 = vadd.f32 %v2561_v20, %v2325_v18 }
 0x2d7   : > { %v2286_v42 = vpop.f32.mrf.mxu2 }
 0x2d8   : > { %v2881_v3 = vadd.f32 %v2839_v31, %v2603_v23  ;;  %v2010_v43 = vpop.f32.mrf.mxu1  ;;  %v2326_v44 = vadd.f32 %v2286_v42, %v2047_v19 }
 0x2d9   : > { %v2048_v6 = vadd.f32 %v2010_v43, %v4520_v34 }
 0x2da   : > { %2913 = vst.msk [vmem:[%s4554_s29 + $0xd8] sm:$0xff] %vm372_vm1, %v2881_v3  ;;  %v2971_v29 = vsel %vm372_vm1, %v2881_v3, 0.0  ;;  %v3014_v56 = vmul.f32 %v2881_v3, %v2881_v3 }
 0x2db   : > { %v2972_v2 = vadd.f32 %v2971_v29, %v2970_v63 }
 0x2dc   : > { %v3072_v1 = vsel %vm372_vm1, %v3014_v56, 0.0 }
 0x2dd   : > { %v3073_v41 = vadd.f32 %v3072_v1, %v3071_v61  ;;  %v2564_v8 = vpop.f32.mrf.mxu3  ;;  %v2845_v37 = vpop.f32.mrf.mxu0 }
 0x2de   : > { %v2604_v13 = vadd.f32 %v2564_v8, %v2326_v44 }
 0x2df   : > { %v2289_v32 = vpop.f32.mrf.mxu2 }
 0x2e0   : > { %v2882_v21 = vadd.f32 %v2842_v53, %v2604_v13  ;;  %v2327_v57 = vadd.f32 %v2289_v32, %v2048_v6  ;;  %v2013_v17 = vpop.f32.mrf.mxu1 }
 0x2e1   : > { %v2049_v46 = vadd.f32 %v2013_v17, %v4530_v55 }
 0x2e2   : > { %2914 = vst.msk [vmem:[%s4554_s29 + $0xe0] sm:$0xff] %vm372_vm1, %v2882_v21  ;;  %v2973_v10 = vsel %vm372_vm1, %v2882_v21, 0.0  ;;  %v3015_v25 = vmul.f32 %v2882_v21, %v2882_v21 }
 0x2e3   : > { %v2974_v16 = vadd.f32 %v2973_v10, %v2972_v2 }
 0x2e4   : > { %v3074_v49 = vsel %vm372_vm1, %v3015_v25, 0.0 }
 0x2e5   : > { %v3075_v24 = vadd.f32 %v3074_v49, %v3073_v41  ;;  %v2567_v28 = vpop.f32.mrf.mxu3  ;;  %v2848_v59 = vpop.f32.mrf.mxu0 }
 0x2e6   : > { %v2605_v7 = vadd.f32 %v2567_v28, %v2327_v57 }
 0x2e7   : > { %v2292_v50 = vpop.f32.mrf.mxu2 }
 0x2e8   : > { %v2883_v34 = vadd.f32 %v2845_v37, %v2605_v7  ;;  %v2328_v48 = vadd.f32 %v2292_v50, %v2049_v46  ;;  %v2016_v33 = vpop.f32.mrf.mxu1 }
 0x2e9   : > { %v2050_v55 = vadd.f32 %v2016_v33, %v4540_v58 }
 0x2ea   : > { %2915 = vst.msk [vmem:[%s4554_s29 + $0xe8] sm:$0xff] %vm372_vm1, %v2883_v34  ;;  %v2975_v54 = vsel %vm372_vm1, %v2883_v34, 0.0  ;;  %v3016_v47 = vmul.f32 %v2883_v34, %v2883_v34 }
 0x2eb   : > { %v2976_v26 = vadd.f32 %v2975_v54, %v2974_v16 }
 0x2ec   : > { %v3076_v60 = vsel %vm372_vm1, %v3016_v47, 0.0 }
 0x2ed   : > { %v3077_v35 = vadd.f32 %v3076_v60, %v3075_v24  ;;  %v2570_v9 = vpop.f32.mrf.mxu3  ;;  %v2851_v31 = vpop.f32.mrf.mxu0 }
 0x2ee   : > { %v2606_v52 = vadd.f32 %v2570_v9, %v2328_v48 }
 0x2ef   : > { %v2295_v11 = vpop.f32.mrf.mxu2 }
 0x2f0   : > { %v2884_v15 = vadd.f32 %v2848_v59, %v2606_v52  ;;  %v2329_v62 = vadd.f32 %v2295_v11, %v2050_v55 }
 0x2f2   : > { %2916 = vst.msk [vmem:[%s4554_s29 + $0xf0] sm:$0xff] %vm372_vm1, %v2884_v15  ;;  %v2977_v40 = vsel %vm372_vm1, %v2884_v15, 0.0  ;;  %v3017_v51 = vmul.f32 %v2884_v15, %v2884_v15 }
 0x2f3   : > { %v2978_v38 = vadd.f32 %v2977_v40, %v2976_v26 }
 0x2f4   : > { %v3078_v27 = vsel %vm372_vm1, %v3017_v51, 0.0 }
 0x2f5   : > { %v3079_v39 = vadd.f32 %v3078_v27, %v3077_v35  ;;  %v2573_v4 = vpop.f32.mrf.mxu3 }
 0x2f6   : > { %v2607_v36 = vadd.f32 %v2573_v4, %v2329_v62 }
 0x2f8   : > { %v2885_v5 = vadd.f32 %v2851_v31, %v2607_v36 }
 0x2fa   : > { %2917 = vst.msk [vmem:[%s4554_s29 + $0xf8] sm:$0xff] %vm372_vm1, %v2885_v5  ;;  %v2979_v58 = vsel %vm372_vm1, %v2885_v5, 0.0  ;;  %v3018_v14 = vmul.f32 %v2885_v5, %v2885_v5 }
 0x2fb   : > { %v2980_v0 = vadd.f32 %v2979_v58, %v2978_v38 }
 0x2fc   : > { %v3080_v30 = vsel %vm372_vm1, %v3018_v14, 0.0 }
 0x2fd   : > { %v2981_v22 = vrot.slane %v2980_v0, 4  ;;  %v3081_v45 = vadd.f32 %v3080_v30, %v3079_v39 }
 0x2ff   : > { %v2982_v18 = vadd.f32 %v2981_v22, %v2980_v0  ;;  %v3082_v63 = vrot.slane %v3081_v45, 4 }
 0x301   : > { %v2983_v12 = vrot.slane %v2982_v18, 2  ;;  %v3083_v61 = vadd.f32 %v3082_v63, %v3081_v45 }
 0x303   : > { %v2984_v20 = vadd.f32 %v2983_v12, %v2982_v18  ;;  %v3084_v23 = vrot.slane %v3083_v61, 2 }
 0x305   : > { %v2985_v42 = vrot.slane %v2984_v20, 1  ;;  %v3085_v53 = vadd.f32 %v3084_v23, %v3083_v61 }
 0x307   : > { %v3086_v19 = vrot.slane %v3085_v53, 1  ;;  %v2986_v3 = vadd.f32 %v2985_v42, %v2984_v20 }
 0x309   : > { %v3087_v43 = vadd.f32 %v3086_v19, %v3085_v53 }
 0x30b   : > { %v3089_v29 = vsel %vm3088_vm2, %v2986_v3, %v3087_v43 }
 0x30c   : > { %3091 = vst.msk [vmem:[%s235_s8] sm:$0x3] %vm3090_vm3, %v3089_v29 }
 0x30d PF: > { %s16_s18 = sadd.s32 1, %s3519_s18  }
 0x30e   : > { %p13_p4 = scmp.ge.s32.totalorder %s16_s18, 4  }
 0x310   :  { %15 = sbr.rel (!%p13_p4) target bundleno = 1 (0x1), region = 89 }

</bundles_post_ra>
